<compile_context>
chip_gen: v6e
topology: v6e:2x2x1
jax: 0.10.0
libtpu: 0.0.40
codegen_flags: <defaults>
</compile_context>

<pallas_src>
import functools
import math

import jax
import jax.numpy as jnp
from jax.experimental import pallas as pl
from jax.experimental.pallas import tpu as pltpu


# ----------------------------- Pallas kernel --------------------------------

def _encoder_layer_kernel(
    xq_ref,            # (1, TQ, D)  query rows (also the residual rows)
    xkv_ref,           # (1, S, D)   full sequence for K/V
    wq_ref, bq_ref,    # (D, H*dk) bf16, (1, H*dk) f32
    wkv_ref, bkv_ref,  # (D, H*dk + H*dv) bf16, (1, H*dk + H*dv) f32
    wo_ref, bo_ref,    # (H*dv, D) bf16, (1, D) f32
    g1_ref, be1_ref,   # (1, D), (1, D)   layer_norm1
    w1_ref, bf1_ref,   # (D, d_inner) bf16, (1, d_inner) f32
    w2_ref, bf2_ref,   # (d_inner, D) bf16, (1, D) f32
    g2_ref, be2_ref,   # (1, D), (1, D)   layer_norm2
    out_ref,           # (1, TQ, D)
    q3_ref,            # VMEM (H, TQ, dk) bf16
    k3_ref,            # VMEM (H, S,  dk) bf16
    v3_ref,            # VMEM (H, S,  dv) bf16
    o2_ref,            # VMEM (TQ, H*dv)  bf16
    *, n_head, d_k, d_v, eps,
):
    f32 = jnp.float32
    bf16 = jnp.bfloat16

    xq = xq_ref[0].astype(f32)        # (TQ, D) residual path stays f32
    xq_b = xq_ref[0].astype(bf16)
    xkv_b = xkv_ref[0].astype(bf16)   # (S, D)

    # --- fused projections: one wide MXU pass each (bf16 in, f32 accumulate) ---
    q = jnp.dot(xq_b, wq_ref[...], preferred_element_type=f32) + bq_ref[0]      # (TQ, H*dk)
    kv = jnp.dot(xkv_b, wkv_ref[...], preferred_element_type=f32) + bkv_ref[0]  # (S, H*(dk+dv))

    # fold softmax scale into q: VALU work ~ TQ*H*dk instead of H*TQ*S
    q = q * (1.0 / math.sqrt(d_k))

    hk = n_head * d_k
    k = kv[:, :hk]                    # (S, H*dk)
    v = kv[:, hk:]                    # (S, H*dv)

    # --- split heads into (H, rows, d) VMEM scratch (batched-matmul layout) ---
    for h in range(n_head):           # static, data-movement only (no matmuls)
        q3_ref[h] = q[:, h * d_k:(h + 1) * d_k].astype(bf16)
        k3_ref[h] = k[:, h * d_k:(h + 1) * d_k].astype(bf16)
        v3_ref[h] = v[:, h * d_v:(h + 1) * d_v].astype(bf16)

    q3 = q3_ref[...]                  # (H, TQ, dk)
    k3 = k3_ref[...]                  # (H, S,  dk)
    v3 = v3_ref[...]                  # (H, S,  dv)

    # --- head-batched attention (single dot_general with leading batch dim) ---
    s = jnp.einsum("hqd,hkd->hqk", q3, k3, preferred_element_type=f32)  # (H,TQ,S)
    s = s - jnp.max(s, axis=-1, keepdims=True)
    p = jnp.exp(s)
    p = p * pl.reciprocal(jnp.sum(p, axis=-1, keepdims=True), approx=True)
    o = jnp.einsum("hqk,hkd->hqd", p.astype(bf16), v3,
                   preferred_element_type=f32)                           # (H,TQ,dv)

    # per-head outputs written into a (TQ, H*dv) scratch (no lane concatenate),
    # then one full-K-width output projection.
    for h in range(n_head):
        o2_ref[:, h * d_v:(h + 1) * d_v] = o[h].astype(bf16)

    attn = jnp.dot(o2_ref[...], wo_ref[...], preferred_element_type=f32) + bo_ref[0]

    # dropout1 -> identity (inference)
    res1 = xq + attn

    # --- layer_norm1 ---
    mu1 = jnp.mean(res1, axis=-1, keepdims=True)
    var1 = jnp.mean(jnp.square(res1 - mu1), axis=-1, keepdims=True)
    out1 = (res1 - mu1) * jax.lax.rsqrt(var1 + eps) * g1_ref[0] + be1_ref[0]

    # --- position-wise feed forward (row-tiled together with attention) ---
    h1 = jnp.dot(out1.astype(bf16), w1_ref[...], preferred_element_type=f32) + bf1_ref[0]
    h1 = jnp.maximum(h1, 0.0)
    ffn = jnp.dot(h1.astype(bf16), w2_ref[...], preferred_element_type=f32) + bf2_ref[0]

    # dropout2 -> identity (inference)
    res2 = out1 + ffn

    # --- layer_norm2 ---
    mu2 = jnp.mean(res2, axis=-1, keepdims=True)
    var2 = jnp.mean(jnp.square(res2 - mu2), axis=-1, keepdims=True)
    out2 = (res2 - mu2) * jax.lax.rsqrt(var2 + eps) * g2_ref[0] + be2_ref[0]

    out_ref[0] = out2.astype(out_ref.dtype)


# ------------------------------ wrapper --------------------------------------

def encoder_layer(x, params, *, n_head, d_k, d_v, eps=1e-6, q_tile=128):
    """x: (B, S, d_model) float32.  Returns (B, S, d_model)."""
    B, S, D = x.shape
    tq = min(q_tile, S)
    assert S % tq == 0, "sequence length must be a multiple of the query tile"
    n_q = S // tq

    bf16 = jnp.bfloat16

    # Host-side weight prep:
    #  * fuse K|V projections into one (D, H*(dk+dv)) weight -> one MXU pass
    #    of the full sequence instead of two
    #  * cast matmul weights to bf16 (halves weight DMA + VMEM; f32 accumulate
    #    in-kernel); biases / LN params stay f32.
    wq = params["wq"].astype(bf16)
    wkv = jnp.concatenate([params["wk"], params["wv"]], axis=1).astype(bf16)
    bkv = jnp.concatenate([params["bk"], params["bv"]], axis=1)
    wo = params["wo"].astype(bf16)
    w1 = params["w1"].astype(bf16)
    w2 = params["w2"].astype(bf16)

    weights = [
        wq, params["bq"], wkv, bkv, wo, params["bo"],
        params["g1"], params["be1"], w1, params["bf1"],
        w2, params["bf2"], params["g2"], params["be2"],
    ]

    def const_spec(arr):
        nd = arr.ndim
        # full-array block, constant index -> fetched once, reused across grid.
        # TODO(synk): mark these single-buffered (pipeline_mode=pl.Buffered(1))
        # once that path is reliable in this JAX version; saves 1x weight VMEM.
        return pl.BlockSpec(arr.shape, lambda b, qi: (0,) * nd)

    in_specs = [
        pl.BlockSpec((1, tq, D), lambda b, qi: (b, qi, 0)),   # query / residual rows
        pl.BlockSpec((1, S, D), lambda b, qi: (b, 0, 0)),     # full sequence for K/V
    ] + [const_spec(w) for w in weights]

    scratch_defs = [
        ((n_head, tq, d_k), bf16),        # q heads
        ((n_head, S, d_k), bf16),         # k heads
        ((n_head, S, d_v), bf16),         # v heads
        ((tq, n_head * d_v), bf16),       # merged attention output (no lane concat)
    ]
    scratch_shapes = [pltpu.VMEM(shape, dt) for shape, dt in scratch_defs]
    scratch_bytes = sum(math.prod(shape) * jnp.dtype(dt).itemsize
                        for shape, dt in scratch_defs)

    # Explicit VMEM budget: double-buffered blocks + weights + scratch, with
    # headroom for in-kernel intermediates (scores, FFN hidden), capped at the
    # smallest physical VMEM (v7x: 64 MiB/TC).
    itemsize = x.dtype.itemsize
    blk_bytes = 2 * (tq * D * itemsize) * 2          # x_q block + out block
    blk_bytes += 2 * (S * D * itemsize)              # x_kv block
    blk_bytes += 2 * sum(w.size * w.dtype.itemsize for w in weights)
    blk_bytes += scratch_bytes
    vmem_limit = int(min(64 * 2**20, max(16 * 2**20, 6 * blk_bytes)))

    kernel = functools.partial(
        _encoder_layer_kernel, n_head=n_head, d_k=d_k, d_v=d_v, eps=eps)

    return pl.pallas_call(
        kernel,
        out_shape=jax.ShapeDtypeStruct((B, S, D), x.dtype),
        grid_spec=pltpu.PrefetchScalarGridSpec(
            num_scalar_prefetch=0,
            grid=(B, n_q),
            in_specs=in_specs,
            out_specs=pl.BlockSpec((1, tq, D), lambda b, qi: (b, qi, 0)),
            scratch_shapes=scratch_shapes,
        ),
        compiler_params=pltpu.CompilerParams(
            dimension_semantics=("parallel", "parallel"),
            vmem_limit_bytes=vmem_limit),
    )(x, x, *weights)


# -------------------------- deterministic params -----------------------------

def init_params(key, d_model, d_inner, n_head, d_k, d_v):
    ks = jax.random.split(key, 8)

    def lin(k, fan_in, fan_out):
        lim = 1.0 / math.sqrt(fan_in)
        w = jax.random.uniform(k, (fan_in, fan_out), jnp.float32, -lim, lim)
        b = jnp.zeros((1, fan_out), jnp.float32)
        return w, b

    wq, bq = lin(ks[0], d_model, n_head * d_k)
    wk, bk = lin(ks[1], d_model, n_head * d_k)
    wv, bv = lin(ks[2], d_model, n_head * d_v)
    wo, bo = lin(ks[3], n_head * d_v, d_model)
    w1, bf1 = lin(ks[4], d_model, d_inner)
    w2, bf2 = lin(ks[5], d_inner, d_model)
    return dict(
        wq=wq, bq=bq, wk=wk, bk=bk, wv=wv, bv=bv, wo=wo, bo=bo,
        g1=jnp.ones((1, d_model), jnp.float32), be1=jnp.zeros((1, d_model), jnp.float32),
        w1=w1, bf1=bf1, w2=w2, bf2=bf2,
        g2=jnp.ones((1, d_model), jnp.float32), be2=jnp.zeros((1, d_model), jnp.float32),
    )


# ----------------------------- pure-JAX reference ----------------------------

def reference(x, p, *, n_head, d_k, d_v, eps=1e-6):
    B, S, D = x.shape

    def ln(y, g, b):
        mu = jnp.mean(y, -1, keepdims=True)
        var = jnp.mean(jnp.square(y - mu), -1, keepdims=True)
        return (y - mu) / jnp.sqrt(var + eps) * g + b

    q = x @ p["wq"] + p["bq"][0]
    k = x @ p["wk"] + p["bk"][0]
    v = x @ p["wv"] + p["bv"][0]
    q = q.reshape(B, S, n_head, d_k).transpose(0, 2, 1, 3)
    k = k.reshape(B, S, n_head, d_k).transpose(0, 2, 1, 3)
    v = v.reshape(B, S, n_head, d_v).transpose(0, 2, 1, 3)
    s = jnp.einsum("bhqd,bhkd->bhqk", q, k) / math.sqrt(d_k)
    a = jax.nn.softmax(s, axis=-1)
    o = jnp.einsum("bhqk,bhkd->bhqd", a, v).transpose(0, 2, 1, 3).reshape(B, S, -1)
    attn_out = o @ p["wo"] + p["bo"][0]
    out1 = ln(x + attn_out, p["g1"][0], p["be1"][0])
    ffn = jnp.maximum(out1 @ p["w1"] + p["bf1"][0], 0.0) @ p["w2"] + p["bf2"][0]
    return ln(out1 + ffn, p["g2"][0], p["be2"][0])


# ---------------------------------- main --------------------------------------

if __name__ == "__main__":
    # Lane-dense small shapes: d_model, H*d_k, d_inner are multiples of 128.
    B, S = 2, 128
    d_model, d_inner, n_head, d_k, d_v = 128, 256, 4, 32, 32

    key = jax.random.PRNGKey(0)
    kx, kp = jax.random.split(key)
    x = jax.random.normal(kx, (B, S, d_model), jnp.float32)
    params = init_params(kp, d_model, d_inner, n_head, d_k, d_v)

    out = encoder_layer(x, params, n_head=n_head, d_k=d_k, d_v=d_v)
    out = jax.block_until_ready(out)

    ref = reference(x, params, n_head=n_head, d_k=d_k, d_v=d_v)
    assert out.shape == (B, S, d_model)
    max_err = float(jnp.max(jnp.abs(out - ref)))
    # bf16 MXU inputs (f32 accumulation) + approx softmax reciprocal vs. an
    # all-f32 reference -> loosened tolerance.
    assert max_err < 1e-1, f"mismatch vs pure-JAX reference: max_err={max_err}"

    # TODO(synk): dropout1/dropout2 are identity (inference mode); training-mode
    # dropout would need pltpu.prng_* inside the kernel.
    print("KERNEL_OK")
</pallas_src>

<mosaic_0001>
module attributes {stable_mosaic.version = 11 : i64} {
  func.func @_encoder_layer_kernel(%arg0: i32, %arg1: i32, %arg2: memref<1x128x128xf32, #tpu.memory_space<vmem>>, %arg3: memref<1x128x128xf32, #tpu.memory_space<vmem>>, %arg4: memref<128x128xbf16, #tpu.memory_space<vmem>>, %arg5: memref<1x128xf32, #tpu.memory_space<vmem>>, %arg6: memref<128x256xbf16, #tpu.memory_space<vmem>>, %arg7: memref<1x256xf32, #tpu.memory_space<vmem>>, %arg8: memref<128x128xbf16, #tpu.memory_space<vmem>>, %arg9: memref<1x128xf32, #tpu.memory_space<vmem>>, %arg10: memref<1x128xf32, #tpu.memory_space<vmem>>, %arg11: memref<1x128xf32, #tpu.memory_space<vmem>>, %arg12: memref<128x256xbf16, #tpu.memory_space<vmem>>, %arg13: memref<1x256xf32, #tpu.memory_space<vmem>>, %arg14: memref<256x128xbf16, #tpu.memory_space<vmem>>, %arg15: memref<1x128xf32, #tpu.memory_space<vmem>>, %arg16: memref<1x128xf32, #tpu.memory_space<vmem>>, %arg17: memref<1x128xf32, #tpu.memory_space<vmem>>, %arg18: memref<1x128x128xf32, #tpu.memory_space<vmem>>, %arg19: memref<4x128x32xbf16, #tpu.memory_space<vmem>>, %arg20: memref<4x128x32xbf16, #tpu.memory_space<vmem>>, %arg21: memref<4x128x32xbf16, #tpu.memory_space<vmem>>, %arg22: memref<128x128xbf16, #tpu.memory_space<vmem>>) attributes {dimension_semantics = [#tpu.dimension_semantics<parallel>, #tpu.dimension_semantics<parallel>], iteration_bounds = array<i64: 2, 1>, scalar_prefetch = 0 : i64, scratch_operands = 4 : i64, tpu.core_type = #tpu.core_type<tc>, window_params = [{transform_indices = @transform_0, window_bounds = array<i64: 1, 128, 128>}, {transform_indices = @transform_1, window_bounds = array<i64: 1, 128, 128>}, {pipeline_mode = #tpu.pipeline_mode<synchronous>, transform_indices = @transform_2, window_bounds = array<i64: 128, 128>}, {pipeline_mode = #tpu.pipeline_mode<synchronous>, transform_indices = @transform_3, window_bounds = array<i64: 1, 128>}, {pipeline_mode = #tpu.pipeline_mode<synchronous>, transform_indices = @transform_4, window_bounds = array<i64: 128, 256>}, {pipeline_mode = #tpu.pipeline_mode<synchronous>, transform_indices = @transform_5, window_bounds = array<i64: 1, 256>}, {pipeline_mode = #tpu.pipeline_mode<synchronous>, transform_indices = @transform_6, window_bounds = array<i64: 128, 128>}, {pipeline_mode = #tpu.pipeline_mode<synchronous>, transform_indices = @transform_7, window_bounds = array<i64: 1, 128>}, {pipeline_mode = #tpu.pipeline_mode<synchronous>, transform_indices = @transform_8, window_bounds = array<i64: 1, 128>}, {pipeline_mode = #tpu.pipeline_mode<synchronous>, transform_indices = @transform_9, window_bounds = array<i64: 1, 128>}, {pipeline_mode = #tpu.pipeline_mode<synchronous>, transform_indices = @transform_10, window_bounds = array<i64: 128, 256>}, {pipeline_mode = #tpu.pipeline_mode<synchronous>, transform_indices = @transform_11, window_bounds = array<i64: 1, 256>}, {pipeline_mode = #tpu.pipeline_mode<synchronous>, transform_indices = @transform_12, window_bounds = array<i64: 256, 128>}, {pipeline_mode = #tpu.pipeline_mode<synchronous>, transform_indices = @transform_13, window_bounds = array<i64: 1, 128>}, {pipeline_mode = #tpu.pipeline_mode<synchronous>, transform_indices = @transform_14, window_bounds = array<i64: 1, 128>}, {pipeline_mode = #tpu.pipeline_mode<synchronous>, transform_indices = @transform_15, window_bounds = array<i64: 1, 128>}, {transform_indices = @transform_16, window_bounds = array<i64: 1, 128, 128>}]} {
    %c0 = arith.constant 0 : index
    %c0_0 = arith.constant 0 : index
    %c0_1 = arith.constant 0 : index
    %0 = vector.load %arg2[%c0, %c0_0, %c0_1] : memref<1x128x128xf32, #tpu.memory_space<vmem>>, vector<1x128x128xf32>
    %1 = vector.shape_cast %0 : vector<1x128x128xf32> to vector<128x128xf32>
    %c0_2 = arith.constant 0 : index
    %c0_3 = arith.constant 0 : index
    %c0_4 = arith.constant 0 : index
    %2 = vector.load %arg2[%c0_2, %c0_3, %c0_4] : memref<1x128x128xf32, #tpu.memory_space<vmem>>, vector<1x128x128xf32>
    %3 = vector.shape_cast %2 : vector<1x128x128xf32> to vector<128x128xf32>
    %4 = arith.truncf %3 : vector<128x128xf32> to vector<128x128xbf16>
    %c0_5 = arith.constant 0 : index
    %c0_6 = arith.constant 0 : index
    %c0_7 = arith.constant 0 : index
    %5 = vector.load %arg3[%c0_5, %c0_6, %c0_7] : memref<1x128x128xf32, #tpu.memory_space<vmem>>, vector<1x128x128xf32>
    %6 = vector.shape_cast %5 : vector<1x128x128xf32> to vector<128x128xf32>
    %7 = arith.truncf %6 : vector<128x128xf32> to vector<128x128xbf16>
    %c0_8 = arith.constant 0 : index
    %c0_9 = arith.constant 0 : index
    %8 = vector.load %arg4[%c0_8, %c0_9] : memref<128x128xbf16, #tpu.memory_space<vmem>>, vector<128x128xbf16>
    %cst = arith.constant dense<0.000000e+00> : vector<128x128xf32>
    %9 = tpu.matmul %4, %8, %cst {dimension_numbers = #tpu.dot_dimension_numbers<[1], [0], [0], [1], [0, 0, 1, 1], [], []>} : vector<128x128xbf16>, vector<128x128xbf16>, vector<128x128xf32> -> vector<128x128xf32>
    %c0_10 = arith.constant 0 : index
    %c0_11 = arith.constant 0 : index
    %10 = vector.load %arg5[%c0_10, %c0_11] : memref<1x128xf32, #tpu.memory_space<vmem>>, vector<1x128xf32>
    %11 = vector.shape_cast %10 : vector<1x128xf32> to vector<128xf32>
    %12 = vector.shape_cast %11 : vector<128xf32> to vector<1x128xf32>
    %13 = vector.broadcast %12 : vector<1x128xf32> to vector<128x128xf32>
    %14 = arith.addf %9, %13 : vector<128x128xf32>
    %c0_12 = arith.constant 0 : index
    %c0_13 = arith.constant 0 : index
    %15 = vector.load %arg6[%c0_12, %c0_13] : memref<128x256xbf16, #tpu.memory_space<vmem>>, vector<128x256xbf16>
    %cst_14 = arith.constant dense<0.000000e+00> : vector<128x256xf32>
    %16 = tpu.matmul %7, %15, %cst_14 {dimension_numbers = #tpu.dot_dimension_numbers<[1], [0], [0], [1], [0, 0, 1, 1], [], []>} : vector<128x128xbf16>, vector<128x256xbf16>, vector<128x256xf32> -> vector<128x256xf32>
    %c0_15 = arith.constant 0 : index
    %c0_16 = arith.constant 0 : index
    %17 = vector.load %arg7[%c0_15, %c0_16] : memref<1x256xf32, #tpu.memory_space<vmem>>, vector<1x256xf32>
    %18 = vector.shape_cast %17 : vector<1x256xf32> to vector<256xf32>
    %19 = vector.shape_cast %18 : vector<256xf32> to vector<1x256xf32>
    %20 = vector.broadcast %19 : vector<1x256xf32> to vector<128x256xf32>
    %21 = arith.addf %16, %20 : vector<128x256xf32>
    %cst_17 = arith.constant 0.176776692 : f32
    %22 = vector.broadcast %cst_17 : f32 to vector<128x128xf32>
    %23 = arith.mulf %14, %22 : vector<128x128xf32>
    %24 = vector.extract_strided_slice %21 {offsets = [0, 0], sizes = [128, 128], strides = [1, 1]} : vector<128x256xf32> to vector<128x128xf32>
    %25 = vector.extract_strided_slice %21 {offsets = [0, 128], sizes = [128, 128], strides = [1, 1]} : vector<128x256xf32> to vector<128x128xf32>
    %26 = vector.extract_strided_slice %23 {offsets = [0, 0], sizes = [128, 32], strides = [1, 1]} : vector<128x128xf32> to vector<128x32xf32>
    %27 = arith.truncf %26 : vector<128x32xf32> to vector<128x32xbf16>
    %c0_18 = arith.constant 0 : index
    %c0_19 = arith.constant 0 : index
    %c0_20 = arith.constant 0 : index
    %28 = vector.load %arg19[%c0_18, %c0_19, %c0_20] : memref<4x128x32xbf16, #tpu.memory_space<vmem>>, vector<1x128x32xbf16>
    %29 = vector.shape_cast %28 : vector<1x128x32xbf16> to vector<128x32xbf16>
    %30 = vector.shape_cast %27 : vector<128x32xbf16> to vector<1x128x32xbf16>
    tpu.vector_store %arg19[%c0_18, %c0_19, %c0_20], %30 {strides = array<i32>} : memref<4x128x32xbf16, #tpu.memory_space<vmem>>, vector<1x128x32xbf16>,
    %31 = vector.extract_strided_slice %24 {offsets = [0, 0], sizes = [128, 32], strides = [1, 1]} : vector<128x128xf32> to vector<128x32xf32>
    %32 = arith.truncf %31 : vector<128x32xf32> to vector<128x32xbf16>
    %c0_21 = arith.constant 0 : index
    %c0_22 = arith.constant 0 : index
    %c0_23 = arith.constant 0 : index
    %33 = vector.load %arg20[%c0_21, %c0_22, %c0_23] : memref<4x128x32xbf16, #tpu.memory_space<vmem>>, vector<1x128x32xbf16>
    %34 = vector.shape_cast %33 : vector<1x128x32xbf16> to vector<128x32xbf16>
    %35 = vector.shape_cast %32 : vector<128x32xbf16> to vector<1x128x32xbf16>
    tpu.vector_store %arg20[%c0_21, %c0_22, %c0_23], %35 {strides = array<i32>} : memref<4x128x32xbf16, #tpu.memory_space<vmem>>, vector<1x128x32xbf16>,
    %36 = vector.extract_strided_slice %25 {offsets = [0, 0], sizes = [128, 32], strides = [1, 1]} : vector<128x128xf32> to vector<128x32xf32>
    %37 = arith.truncf %36 : vector<128x32xf32> to vector<128x32xbf16>
    %c0_24 = arith.constant 0 : index
    %c0_25 = arith.constant 0 : index
    %c0_26 = arith.constant 0 : index
    %38 = vector.load %arg21[%c0_24, %c0_25, %c0_26] : memref<4x128x32xbf16, #tpu.memory_space<vmem>>, vector<1x128x32xbf16>
    %39 = vector.shape_cast %38 : vector<1x128x32xbf16> to vector<128x32xbf16>
    %40 = vector.shape_cast %37 : vector<128x32xbf16> to vector<1x128x32xbf16>
    tpu.vector_store %arg21[%c0_24, %c0_25, %c0_26], %40 {strides = array<i32>} : memref<4x128x32xbf16, #tpu.memory_space<vmem>>, vector<1x128x32xbf16>,
    %41 = vector.extract_strided_slice %23 {offsets = [0, 32], sizes = [128, 32], strides = [1, 1]} : vector<128x128xf32> to vector<128x32xf32>
    %42 = arith.truncf %41 : vector<128x32xf32> to vector<128x32xbf16>
    %c1 = arith.constant 1 : index
    %c0_27 = arith.constant 0 : index
    %c0_28 = arith.constant 0 : index
    %43 = vector.load %arg19[%c1, %c0_27, %c0_28] : memref<4x128x32xbf16, #tpu.memory_space<vmem>>, vector<1x128x32xbf16>
    %44 = vector.shape_cast %43 : vector<1x128x32xbf16> to vector<128x32xbf16>
    %45 = vector.shape_cast %42 : vector<128x32xbf16> to vector<1x128x32xbf16>
    tpu.vector_store %arg19[%c1, %c0_27, %c0_28], %45 {strides = array<i32>} : memref<4x128x32xbf16, #tpu.memory_space<vmem>>, vector<1x128x32xbf16>,
    %46 = vector.extract_strided_slice %24 {offsets = [0, 32], sizes = [128, 32], strides = [1, 1]} : vector<128x128xf32> to vector<128x32xf32>
    %47 = arith.truncf %46 : vector<128x32xf32> to vector<128x32xbf16>
    %c1_29 = arith.constant 1 : index
    %c0_30 = arith.constant 0 : index
    %c0_31 = arith.constant 0 : index
    %48 = vector.load %arg20[%c1_29, %c0_30, %c0_31] : memref<4x128x32xbf16, #tpu.memory_space<vmem>>, vector<1x128x32xbf16>
    %49 = vector.shape_cast %48 : vector<1x128x32xbf16> to vector<128x32xbf16>
    %50 = vector.shape_cast %47 : vector<128x32xbf16> to vector<1x128x32xbf16>
    tpu.vector_store %arg20[%c1_29, %c0_30, %c0_31], %50 {strides = array<i32>} : memref<4x128x32xbf16, #tpu.memory_space<vmem>>, vector<1x128x32xbf16>,
    %51 = vector.extract_strided_slice %25 {offsets = [0, 32], sizes = [128, 32], strides = [1, 1]} : vector<128x128xf32> to vector<128x32xf32>
    %52 = arith.truncf %51 : vector<128x32xf32> to vector<128x32xbf16>
    %c1_32 = arith.constant 1 : index
    %c0_33 = arith.constant 0 : index
    %c0_34 = arith.constant 0 : index
    %53 = vector.load %arg21[%c1_32, %c0_33, %c0_34] : memref<4x128x32xbf16, #tpu.memory_space<vmem>>, vector<1x128x32xbf16>
    %54 = vector.shape_cast %53 : vector<1x128x32xbf16> to vector<128x32xbf16>
    %55 = vector.shape_cast %52 : vector<128x32xbf16> to vector<1x128x32xbf16>
    tpu.vector_store %arg21[%c1_32, %c0_33, %c0_34], %55 {strides = array<i32>} : memref<4x128x32xbf16, #tpu.memory_space<vmem>>, vector<1x128x32xbf16>,
    %56 = vector.extract_strided_slice %23 {offsets = [0, 64], sizes = [128, 32], strides = [1, 1]} : vector<128x128xf32> to vector<128x32xf32>
    %57 = arith.truncf %56 : vector<128x32xf32> to vector<128x32xbf16>
    %c2 = arith.constant 2 : index
    %c0_35 = arith.constant 0 : index
    %c0_36 = arith.constant 0 : index
    %58 = vector.load %arg19[%c2, %c0_35, %c0_36] : memref<4x128x32xbf16, #tpu.memory_space<vmem>>, vector<1x128x32xbf16>
    %59 = vector.shape_cast %58 : vector<1x128x32xbf16> to vector<128x32xbf16>
    %60 = vector.shape_cast %57 : vector<128x32xbf16> to vector<1x128x32xbf16>
    tpu.vector_store %arg19[%c2, %c0_35, %c0_36], %60 {strides = array<i32>} : memref<4x128x32xbf16, #tpu.memory_space<vmem>>, vector<1x128x32xbf16>,
    %61 = vector.extract_strided_slice %24 {offsets = [0, 64], sizes = [128, 32], strides = [1, 1]} : vector<128x128xf32> to vector<128x32xf32>
    %62 = arith.truncf %61 : vector<128x32xf32> to vector<128x32xbf16>
    %c2_37 = arith.constant 2 : index
    %c0_38 = arith.constant 0 : index
    %c0_39 = arith.constant 0 : index
    %63 = vector.load %arg20[%c2_37, %c0_38, %c0_39] : memref<4x128x32xbf16, #tpu.memory_space<vmem>>, vector<1x128x32xbf16>
    %64 = vector.shape_cast %63 : vector<1x128x32xbf16> to vector<128x32xbf16>
    %65 = vector.shape_cast %62 : vector<128x32xbf16> to vector<1x128x32xbf16>
    tpu.vector_store %arg20[%c2_37, %c0_38, %c0_39], %65 {strides = array<i32>} : memref<4x128x32xbf16, #tpu.memory_space<vmem>>, vector<1x128x32xbf16>,
    %66 = vector.extract_strided_slice %25 {offsets = [0, 64], sizes = [128, 32], strides = [1, 1]} : vector<128x128xf32> to vector<128x32xf32>
    %67 = arith.truncf %66 : vector<128x32xf32> to vector<128x32xbf16>
    %c2_40 = arith.constant 2 : index
    %c0_41 = arith.constant 0 : index
    %c0_42 = arith.constant 0 : index
    %68 = vector.load %arg21[%c2_40, %c0_41, %c0_42] : memref<4x128x32xbf16, #tpu.memory_space<vmem>>, vector<1x128x32xbf16>
    %69 = vector.shape_cast %68 : vector<1x128x32xbf16> to vector<128x32xbf16>
    %70 = vector.shape_cast %67 : vector<128x32xbf16> to vector<1x128x32xbf16>
    tpu.vector_store %arg21[%c2_40, %c0_41, %c0_42], %70 {strides = array<i32>} : memref<4x128x32xbf16, #tpu.memory_space<vmem>>, vector<1x128x32xbf16>,
    %71 = vector.extract_strided_slice %23 {offsets = [0, 96], sizes = [128, 32], strides = [1, 1]} : vector<128x128xf32> to vector<128x32xf32>
    %72 = arith.truncf %71 : vector<128x32xf32> to vector<128x32xbf16>
    %c3 = arith.constant 3 : index
    %c0_43 = arith.constant 0 : index
    %c0_44 = arith.constant 0 : index
    %73 = vector.load %arg19[%c3, %c0_43, %c0_44] : memref<4x128x32xbf16, #tpu.memory_space<vmem>>, vector<1x128x32xbf16>
    %74 = vector.shape_cast %73 : vector<1x128x32xbf16> to vector<128x32xbf16>
    %75 = vector.shape_cast %72 : vector<128x32xbf16> to vector<1x128x32xbf16>
    tpu.vector_store %arg19[%c3, %c0_43, %c0_44], %75 {strides = array<i32>} : memref<4x128x32xbf16, #tpu.memory_space<vmem>>, vector<1x128x32xbf16>,
    %76 = vector.extract_strided_slice %24 {offsets = [0, 96], sizes = [128, 32], strides = [1, 1]} : vector<128x128xf32> to vector<128x32xf32>
    %77 = arith.truncf %76 : vector<128x32xf32> to vector<128x32xbf16>
    %c3_45 = arith.constant 3 : index
    %c0_46 = arith.constant 0 : index
    %c0_47 = arith.constant 0 : index
    %78 = vector.load %arg20[%c3_45, %c0_46, %c0_47] : memref<4x128x32xbf16, #tpu.memory_space<vmem>>, vector<1x128x32xbf16>
    %79 = vector.shape_cast %78 : vector<1x128x32xbf16> to vector<128x32xbf16>
    %80 = vector.shape_cast %77 : vector<128x32xbf16> to vector<1x128x32xbf16>
    tpu.vector_store %arg20[%c3_45, %c0_46, %c0_47], %80 {strides = array<i32>} : memref<4x128x32xbf16, #tpu.memory_space<vmem>>, vector<1x128x32xbf16>,
    %81 = vector.extract_strided_slice %25 {offsets = [0, 96], sizes = [128, 32], strides = [1, 1]} : vector<128x128xf32> to vector<128x32xf32>
    %82 = arith.truncf %81 : vector<128x32xf32> to vector<128x32xbf16>
    %c3_48 = arith.constant 3 : index
    %c0_49 = arith.constant 0 : index
    %c0_50 = arith.constant 0 : index
    %83 = vector.load %arg21[%c3_48, %c0_49, %c0_50] : memref<4x128x32xbf16, #tpu.memory_space<vmem>>, vector<1x128x32xbf16>
    %84 = vector.shape_cast %83 : vector<1x128x32xbf16> to vector<128x32xbf16>
    %85 = vector.shape_cast %82 : vector<128x32xbf16> to vector<1x128x32xbf16>
    tpu.vector_store %arg21[%c3_48, %c0_49, %c0_50], %85 {strides = array<i32>} : memref<4x128x32xbf16, #tpu.memory_space<vmem>>, vector<1x128x32xbf16>,
    %c0_51 = arith.constant 0 : index
    %c0_52 = arith.constant 0 : index
    %c0_53 = arith.constant 0 : index
    %86 = vector.load %arg19[%c0_51, %c0_52, %c0_53] : memref<4x128x32xbf16, #tpu.memory_space<vmem>>, vector<4x128x32xbf16>
    %c0_54 = arith.constant 0 : index
    %c0_55 = arith.constant 0 : index
    %c0_56 = arith.constant 0 : index
    %87 = vector.load %arg20[%c0_54, %c0_55, %c0_56] : memref<4x128x32xbf16, #tpu.memory_space<vmem>>, vector<4x128x32xbf16>
    %c0_57 = arith.constant 0 : index
    %c0_58 = arith.constant 0 : index
    %c0_59 = arith.constant 0 : index
    %88 = vector.load %arg21[%c0_57, %c0_58, %c0_59] : memref<4x128x32xbf16, #tpu.memory_space<vmem>>, vector<4x128x32xbf16>
    "tpu.trace_start"() <{level = 10 : i32, message = "hqd,hkd->hqk"}> : () -> ()
    %cst_60 = arith.constant dense<0.000000e+00> : vector<4x128x128xf32>
    %89 = tpu.matmul %86, %87, %cst_60 {dimension_numbers = #tpu.dot_dimension_numbers<[2], [2], [1], [1], [0, 0, 0, 1, 1, 1], [0], [0]>} : vector<4x128x32xbf16>, vector<4x128x32xbf16>, vector<4x128x128xf32> -> vector<4x128x128xf32>
    "tpu.trace_stop"() : () -> ()
    %cst_61 = arith.constant dense<0xFF800000> : vector<4x128xf32>
    %90 = vector.multi_reduction <maximumf>, %89, %cst_61 [2] : vector<4x128x128xf32> to vector<4x128xf32>
    %91 = vector.shape_cast %90 : vector<4x128xf32> to vector<4x128x1xf32>
    %92 = vector.broadcast %91 : vector<4x128x1xf32> to vector<4x128x128xf32>
    %93 = arith.subf %89, %92 : vector<4x128x128xf32>
    %94 = math.exp %93 : vector<4x128x128xf32>
    %cst_62 = arith.constant dense<0.000000e+00> : vector<4x128xf32>
    %95 = vector.multi_reduction <add>, %94, %cst_62 [2] : vector<4x128x128xf32> to vector<4x128xf32>
    %96 = vector.shape_cast %95 : vector<4x128xf32> to vector<4x128x1xf32>
    %97 = tpu.reciprocal %96 {approx = true} : vector<4x128x1xf32> -> vector<4x128x1xf32>
    %98 = vector.broadcast %97 : vector<4x128x1xf32> to vector<4x128x128xf32>
    %99 = arith.mulf %94, %98 : vector<4x128x128xf32>
    %100 = arith.truncf %99 : vector<4x128x128xf32> to vector<4x128x128xbf16>
    "tpu.trace_start"() <{level = 10 : i32, message = "hqk,hkd->hqd"}> : () -> ()
    %cst_63 = arith.constant dense<0.000000e+00> : vector<4x128x32xf32>
    %101 = tpu.matmul %100, %88, %cst_63 {dimension_numbers = #tpu.dot_dimension_numbers<[2], [1], [1], [2], [0, 0, 0, 1, 1, 2], [0], [0]>} : vector<4x128x128xbf16>, vector<4x128x32xbf16>, vector<4x128x32xf32> -> vector<4x128x32xf32>
    "tpu.trace_stop"() : () -> ()
    %102 = vector.extract_strided_slice %101 {offsets = [0, 0, 0], sizes = [1, 128, 32], strides = [1, 1, 1]} : vector<4x128x32xf32> to vector<1x128x32xf32>
    %103 = vector.shape_cast %102 : vector<1x128x32xf32> to vector<128x32xf32>
    %104 = arith.truncf %103 : vector<128x32xf32> to vector<128x32xbf16>
    %c0_64 = arith.constant 0 : index
    %c0_65 = arith.constant 0 : index
    %105 = vector.load %arg22[%c0_64, %c0_65] : memref<128x128xbf16, #tpu.memory_space<vmem>>, vector<128x32xbf16>
    tpu.vector_store %arg22[%c0_64, %c0_65], %104 {strides = array<i32>} : memref<128x128xbf16, #tpu.memory_space<vmem>>, vector<128x32xbf16>,
    %106 = vector.extract_strided_slice %101 {offsets = [1, 0, 0], sizes = [1, 128, 32], strides = [1, 1, 1]} : vector<4x128x32xf32> to vector<1x128x32xf32>
    %107 = vector.shape_cast %106 : vector<1x128x32xf32> to vector<128x32xf32>
    %108 = arith.truncf %107 : vector<128x32xf32> to vector<128x32xbf16>
    %c0_66 = arith.constant 0 : index
    %c32 = arith.constant 32 : index
    %109 = vector.load %arg22[%c0_66, %c32] : memref<128x128xbf16, #tpu.memory_space<vmem>>, vector<128x32xbf16>
    tpu.vector_store %arg22[%c0_66, %c32], %108 {strides = array<i32>} : memref<128x128xbf16, #tpu.memory_space<vmem>>, vector<128x32xbf16>,
    %110 = vector.extract_strided_slice %101 {offsets = [2, 0, 0], sizes = [1, 128, 32], strides = [1, 1, 1]} : vector<4x128x32xf32> to vector<1x128x32xf32>
    %111 = vector.shape_cast %110 : vector<1x128x32xf32> to vector<128x32xf32>
    %112 = arith.truncf %111 : vector<128x32xf32> to vector<128x32xbf16>
    %c0_67 = arith.constant 0 : index
    %c64 = arith.constant 64 : index
    %113 = vector.load %arg22[%c0_67, %c64] : memref<128x128xbf16, #tpu.memory_space<vmem>>, vector<128x32xbf16>
    tpu.vector_store %arg22[%c0_67, %c64], %112 {strides = array<i32>} : memref<128x128xbf16, #tpu.memory_space<vmem>>, vector<128x32xbf16>,
    %114 = vector.extract_strided_slice %101 {offsets = [3, 0, 0], sizes = [1, 128, 32], strides = [1, 1, 1]} : vector<4x128x32xf32> to vector<1x128x32xf32>
    %115 = vector.shape_cast %114 : vector<1x128x32xf32> to vector<128x32xf32>
    %116 = arith.truncf %115 : vector<128x32xf32> to vector<128x32xbf16>
    %c0_68 = arith.constant 0 : index
    %c96 = arith.constant 96 : index
    %117 = vector.load %arg22[%c0_68, %c96] : memref<128x128xbf16, #tpu.memory_space<vmem>>, vector<128x32xbf16>
    tpu.vector_store %arg22[%c0_68, %c96], %116 {strides = array<i32>} : memref<128x128xbf16, #tpu.memory_space<vmem>>, vector<128x32xbf16>,
    %c0_69 = arith.constant 0 : index
    %c0_70 = arith.constant 0 : index
    %118 = vector.load %arg22[%c0_69, %c0_70] : memref<128x128xbf16, #tpu.memory_space<vmem>>, vector<128x128xbf16>
    %c0_71 = arith.constant 0 : index
    %c0_72 = arith.constant 0 : index
    %119 = vector.load %arg8[%c0_71, %c0_72] : memref<128x128xbf16, #tpu.memory_space<vmem>>, vector<128x128xbf16>
    %cst_73 = arith.constant dense<0.000000e+00> : vector<128x128xf32>
    %120 = tpu.matmul %118, %119, %cst_73 {dimension_numbers = #tpu.dot_dimension_numbers<[1], [0], [0], [1], [0, 0, 1, 1], [], []>} : vector<128x128xbf16>, vector<128x128xbf16>, vector<128x128xf32> -> vector<128x128xf32>
    %c0_74 = arith.constant 0 : index
    %c0_75 = arith.constant 0 : index
    %121 = vector.load %arg9[%c0_74, %c0_75] : memref<1x128xf32, #tpu.memory_space<vmem>>, vector<1x128xf32>
    %122 = vector.shape_cast %121 : vector<1x128xf32> to vector<128xf32>
    %123 = vector.shape_cast %122 : vector<128xf32> to vector<1x128xf32>
    %124 = vector.broadcast %123 : vector<1x128xf32> to vector<128x128xf32>
    %125 = arith.addf %120, %124 : vector<128x128xf32>
    %126 = arith.addf %1, %125 : vector<128x128xf32>
    %cst_76 = arith.constant dense<0.000000e+00> : vector<128xf32>
    %127 = vector.multi_reduction <add>, %126, %cst_76 [1] : vector<128x128xf32> to vector<128xf32>
    %128 = vector.shape_cast %127 : vector<128xf32> to vector<128x1xf32>
    %cst_77 = arith.constant 1.280000e+02 : f32
    %129 = vector.broadcast %cst_77 : f32 to vector<128x1xf32>
    %130 = arith.divf %128, %129 : vector<128x1xf32>
    %131 = vector.broadcast %130 : vector<128x1xf32> to vector<128x128xf32>
    %132 = arith.subf %126, %131 : vector<128x128xf32>
    %133 = arith.mulf %132, %132 : vector<128x128xf32>
    %cst_78 = arith.constant dense<0.000000e+00> : vector<128xf32>
    %134 = vector.multi_reduction <add>, %133, %cst_78 [1] : vector<128x128xf32> to vector<128xf32>
    %135 = vector.shape_cast %134 : vector<128xf32> to vector<128x1xf32>
    %cst_79 = arith.constant 1.280000e+02 : f32
    %136 = vector.broadcast %cst_79 : f32 to vector<128x1xf32>
    %137 = arith.divf %135, %136 : vector<128x1xf32>
    %138 = vector.broadcast %130 : vector<128x1xf32> to vector<128x128xf32>
    %139 = arith.subf %126, %138 : vector<128x128xf32>
    %cst_80 = arith.constant 9.99999997E-7 : f32
    %140 = vector.broadcast %cst_80 : f32 to vector<128x1xf32>
    %141 = arith.addf %137, %140 : vector<128x1xf32>
    %142 = math.rsqrt %141 : vector<128x1xf32>
    %143 = vector.broadcast %142 : vector<128x1xf32> to vector<128x128xf32>
    %144 = arith.mulf %139, %143 : vector<128x128xf32>
    %c0_81 = arith.constant 0 : index
    %c0_82 = arith.constant 0 : index
    %145 = vector.load %arg10[%c0_81, %c0_82] : memref<1x128xf32, #tpu.memory_space<vmem>>, vector<1x128xf32>
    %146 = vector.shape_cast %145 : vector<1x128xf32> to vector<128xf32>
    %147 = vector.shape_cast %146 : vector<128xf32> to vector<1x128xf32>
    %148 = vector.broadcast %147 : vector<1x128xf32> to vector<128x128xf32>
    %149 = arith.mulf %144, %148 : vector<128x128xf32>
    %c0_83 = arith.constant 0 : index
    %c0_84 = arith.constant 0 : index
    %150 = vector.load %arg11[%c0_83, %c0_84] : memref<1x128xf32, #tpu.memory_space<vmem>>, vector<1x128xf32>
    %151 = vector.shape_cast %150 : vector<1x128xf32> to vector<128xf32>
    %152 = vector.shape_cast %151 : vector<128xf32> to vector<1x128xf32>
    %153 = vector.broadcast %152 : vector<1x128xf32> to vector<128x128xf32>
    %154 = arith.addf %149, %153 : vector<128x128xf32>
    %155 = arith.truncf %154 : vector<128x128xf32> to vector<128x128xbf16>
    %c0_85 = arith.constant 0 : index
    %c0_86 = arith.constant 0 : index
    %156 = vector.load %arg12[%c0_85, %c0_86] : memref<128x256xbf16, #tpu.memory_space<vmem>>, vector<128x256xbf16>
    %cst_87 = arith.constant dense<0.000000e+00> : vector<128x256xf32>
    %157 = tpu.matmul %155, %156, %cst_87 {dimension_numbers = #tpu.dot_dimension_numbers<[1], [0], [0], [1], [0, 0, 1, 1], [], []>} : vector<128x128xbf16>, vector<128x256xbf16>, vector<128x256xf32> -> vector<128x256xf32>
    %c0_88 = arith.constant 0 : index
    %c0_89 = arith.constant 0 : index
    %158 = vector.load %arg13[%c0_88, %c0_89] : memref<1x256xf32, #tpu.memory_space<vmem>>, vector<1x256xf32>
    %159 = vector.shape_cast %158 : vector<1x256xf32> to vector<256xf32>
    %160 = vector.shape_cast %159 : vector<256xf32> to vector<1x256xf32>
    %161 = vector.broadcast %160 : vector<1x256xf32> to vector<128x256xf32>
    %162 = arith.addf %157, %161 : vector<128x256xf32>
    %cst_90 = arith.constant 0.000000e+00 : f32
    %163 = vector.broadcast %cst_90 : f32 to vector<128x256xf32>
    %164 = arith.maximumf %162, %163 : vector<128x256xf32>
    %165 = arith.truncf %164 : vector<128x256xf32> to vector<128x256xbf16>
    %c0_91 = arith.constant 0 : index
    %c0_92 = arith.constant 0 : index
    %166 = vector.load %arg14[%c0_91, %c0_92] : memref<256x128xbf16, #tpu.memory_space<vmem>>, vector<256x128xbf16>
    %cst_93 = arith.constant dense<0.000000e+00> : vector<128x128xf32>
    %167 = tpu.matmul %165, %166, %cst_93 {dimension_numbers = #tpu.dot_dimension_numbers<[1], [0], [0], [1], [0, 0, 1, 1], [], []>} : vector<128x256xbf16>, vector<256x128xbf16>, vector<128x128xf32> -> vector<128x128xf32>
    %c0_94 = arith.constant 0 : index
    %c0_95 = arith.constant 0 : index
    %168 = vector.load %arg15[%c0_94, %c0_95] : memref<1x128xf32, #tpu.memory_space<vmem>>, vector<1x128xf32>
    %169 = vector.shape_cast %168 : vector<1x128xf32> to vector<128xf32>
    %170 = vector.shape_cast %169 : vector<128xf32> to vector<1x128xf32>
    %171 = vector.broadcast %170 : vector<1x128xf32> to vector<128x128xf32>
    %172 = arith.addf %167, %171 : vector<128x128xf32>
    %173 = arith.addf %154, %172 : vector<128x128xf32>
    %cst_96 = arith.constant dense<0.000000e+00> : vector<128xf32>
    %174 = vector.multi_reduction <add>, %173, %cst_96 [1] : vector<128x128xf32> to vector<128xf32>
    %175 = vector.shape_cast %174 : vector<128xf32> to vector<128x1xf32>
    %cst_97 = arith.constant 1.280000e+02 : f32
    %176 = vector.broadcast %cst_97 : f32 to vector<128x1xf32>
    %177 = arith.divf %175, %176 : vector<128x1xf32>
    %178 = vector.broadcast %177 : vector<128x1xf32> to vector<128x128xf32>
    %179 = arith.subf %173, %178 : vector<128x128xf32>
    %180 = arith.mulf %179, %179 : vector<128x128xf32>
    %cst_98 = arith.constant dense<0.000000e+00> : vector<128xf32>
    %181 = vector.multi_reduction <add>, %180, %cst_98 [1] : vector<128x128xf32> to vector<128xf32>
    %182 = vector.shape_cast %181 : vector<128xf32> to vector<128x1xf32>
    %cst_99 = arith.constant 1.280000e+02 : f32
    %183 = vector.broadcast %cst_99 : f32 to vector<128x1xf32>
    %184 = arith.divf %182, %183 : vector<128x1xf32>
    %185 = vector.broadcast %177 : vector<128x1xf32> to vector<128x128xf32>
    %186 = arith.subf %173, %185 : vector<128x128xf32>
    %cst_100 = arith.constant 9.99999997E-7 : f32
    %187 = vector.broadcast %cst_100 : f32 to vector<128x1xf32>
    %188 = arith.addf %184, %187 : vector<128x1xf32>
    %189 = math.rsqrt %188 : vector<128x1xf32>
    %190 = vector.broadcast %189 : vector<128x1xf32> to vector<128x128xf32>
    %191 = arith.mulf %186, %190 : vector<128x128xf32>
    %c0_101 = arith.constant 0 : index
    %c0_102 = arith.constant 0 : index
    %192 = vector.load %arg16[%c0_101, %c0_102] : memref<1x128xf32, #tpu.memory_space<vmem>>, vector<1x128xf32>
    %193 = vector.shape_cast %192 : vector<1x128xf32> to vector<128xf32>
    %194 = vector.shape_cast %193 : vector<128xf32> to vector<1x128xf32>
    %195 = vector.broadcast %194 : vector<1x128xf32> to vector<128x128xf32>
    %196 = arith.mulf %191, %195 : vector<128x128xf32>
    %c0_103 = arith.constant 0 : index
    %c0_104 = arith.constant 0 : index
    %197 = vector.load %arg17[%c0_103, %c0_104] : memref<1x128xf32, #tpu.memory_space<vmem>>, vector<1x128xf32>
    %198 = vector.shape_cast %197 : vector<1x128xf32> to vector<128xf32>
    %199 = vector.shape_cast %198 : vector<128xf32> to vector<1x128xf32>
    %200 = vector.broadcast %199 : vector<1x128xf32> to vector<128x128xf32>
    %201 = arith.addf %196, %200 : vector<128x128xf32>
    %c0_105 = arith.constant 0 : index
    %c0_106 = arith.constant 0 : index
    %c0_107 = arith.constant 0 : index
    %202 = vector.load %arg18[%c0_105, %c0_106, %c0_107] : memref<1x128x128xf32, #tpu.memory_space<vmem>>, vector<1x128x128xf32>
    %203 = vector.shape_cast %202 : vector<1x128x128xf32> to vector<128x128xf32>
    %204 = vector.shape_cast %201 : vector<128x128xf32> to vector<1x128x128xf32>
    tpu.vector_store %arg18[%c0_105, %c0_106, %c0_107], %204 {strides = array<i32>} : memref<1x128x128xf32, #tpu.memory_space<vmem>>, vector<1x128x128xf32>,
    return
  }
  func.func @transform_0(%arg0: i32, %arg1: i32) -> (i32, i32, i32) {
    %c0_i32 = arith.constant 0 : i32
    %c0_i32_0 = arith.constant 0 : i32
    return %arg0, %arg1, %c0_i32 : i32, i32, i32
  }
  func.func @transform_1(%arg0: i32, %arg1: i32) -> (i32, i32, i32) {
    %c0_i32 = arith.constant 0 : i32
    %c0_i32_0 = arith.constant 0 : i32
    %c0_i32_1 = arith.constant 0 : i32
    return %arg0, %c0_i32, %c0_i32_0 : i32, i32, i32
  }
  func.func @transform_2(%arg0: i32, %arg1: i32) -> (i32, i32) {
    %c0_i32 = arith.constant 0 : i32
    %c0_i32_0 = arith.constant 0 : i32
    %c0_i32_1 = arith.constant 0 : i32
    return %c0_i32, %c0_i32_0 : i32, i32
  }
  func.func @transform_3(%arg0: i32, %arg1: i32) -> (i32, i32) {
    %c0_i32 = arith.constant 0 : i32
    %c0_i32_0 = arith.constant 0 : i32
    %c0_i32_1 = arith.constant 0 : i32
    return %c0_i32, %c0_i32_0 : i32, i32
  }
  func.func @transform_4(%arg0: i32, %arg1: i32) -> (i32, i32) {
    %c0_i32 = arith.constant 0 : i32
    %c0_i32_0 = arith.constant 0 : i32
    %c0_i32_1 = arith.constant 0 : i32
    return %c0_i32, %c0_i32_0 : i32, i32
  }
  func.func @transform_5(%arg0: i32, %arg1: i32) -> (i32, i32) {
    %c0_i32 = arith.constant 0 : i32
    %c0_i32_0 = arith.constant 0 : i32
    %c0_i32_1 = arith.constant 0 : i32
    return %c0_i32, %c0_i32_0 : i32, i32
  }
  func.func @transform_6(%arg0: i32, %arg1: i32) -> (i32, i32) {
    %c0_i32 = arith.constant 0 : i32
    %c0_i32_0 = arith.constant 0 : i32
    %c0_i32_1 = arith.constant 0 : i32
    return %c0_i32, %c0_i32_0 : i32, i32
  }
  func.func @transform_7(%arg0: i32, %arg1: i32) -> (i32, i32) {
    %c0_i32 = arith.constant 0 : i32
    %c0_i32_0 = arith.constant 0 : i32
    %c0_i32_1 = arith.constant 0 : i32
    return %c0_i32, %c0_i32_0 : i32, i32
  }
  func.func @transform_8(%arg0: i32, %arg1: i32) -> (i32, i32) {
    %c0_i32 = arith.constant 0 : i32
    %c0_i32_0 = arith.constant 0 : i32
    %c0_i32_1 = arith.constant 0 : i32
    return %c0_i32, %c0_i32_0 : i32, i32
  }
  func.func @transform_9(%arg0: i32, %arg1: i32) -> (i32, i32) {
    %c0_i32 = arith.constant 0 : i32
    %c0_i32_0 = arith.constant 0 : i32
    %c0_i32_1 = arith.constant 0 : i32
    return %c0_i32, %c0_i32_0 : i32, i32
  }
  func.func @transform_10(%arg0: i32, %arg1: i32) -> (i32, i32) {
    %c0_i32 = arith.constant 0 : i32
    %c0_i32_0 = arith.constant 0 : i32
    %c0_i32_1 = arith.constant 0 : i32
    return %c0_i32, %c0_i32_0 : i32, i32
  }
  func.func @transform_11(%arg0: i32, %arg1: i32) -> (i32, i32) {
    %c0_i32 = arith.constant 0 : i32
    %c0_i32_0 = arith.constant 0 : i32
    %c0_i32_1 = arith.constant 0 : i32
    return %c0_i32, %c0_i32_0 : i32, i32
  }
  func.func @transform_12(%arg0: i32, %arg1: i32) -> (i32, i32) {
    %c0_i32 = arith.constant 0 : i32
    %c0_i32_0 = arith.constant 0 : i32
    %c0_i32_1 = arith.constant 0 : i32
    return %c0_i32, %c0_i32_0 : i32, i32
  }
  func.func @transform_13(%arg0: i32, %arg1: i32) -> (i32, i32) {
    %c0_i32 = arith.constant 0 : i32
    %c0_i32_0 = arith.constant 0 : i32
    %c0_i32_1 = arith.constant 0 : i32
    return %c0_i32, %c0_i32_0 : i32, i32
  }
  func.func @transform_14(%arg0: i32, %arg1: i32) -> (i32, i32) {
    %c0_i32 = arith.constant 0 : i32
    %c0_i32_0 = arith.constant 0 : i32
    %c0_i32_1 = arith.constant 0 : i32
    return %c0_i32, %c0_i32_0 : i32, i32
  }
  func.func @transform_15(%arg0: i32, %arg1: i32) -> (i32, i32) {
    %c0_i32 = arith.constant 0 : i32
    %c0_i32_0 = arith.constant 0 : i32
    %c0_i32_1 = arith.constant 0 : i32
    return %c0_i32, %c0_i32_0 : i32, i32
  }
  func.func @transform_16(%arg0: i32, %arg1: i32) -> (i32, i32, i32) {
    %c0_i32 = arith.constant 0 : i32
    %c0_i32_0 = arith.constant 0 : i32
    return %arg0, %arg1, %c0_i32 : i32, i32, i32
  }
}

</mosaic_0001>

<bundles_post_ra>
// kernel: tpu_custom_call.1
= control target key start
LH: loop header
LB: loop body
LE: loop exit
PB: predicated region body
PF: predicated region fallthrough
CT: control target
= control target key end

     0   :  { %s10586_s0 = inlined_call_operand.hbm [shape: f32[2,128,128], index: 0, kind: input, shape index: {}]   ;;  %s10587_s1 = inlined_call_operand.hbm [shape: f32[2,128,128], index: 1, kind: input, shape index: {}]   ;;  %s10588_s2 = inlined_call_operand.hbm [shape: bf16[128,128], index: 2, kind: input, shape index: {}]   ;;  %s10589_s3 = inlined_call_operand.vmem [shape: f32[1,128], index: 3, kind: input, shape index: {}]   ;;  %s10590_s4 = inlined_call_operand.hbm [shape: bf16[128,256], index: 4, kind: input, shape index: {}]   ;;  %s10591_s5 = inlined_call_operand.vmem [shape: f32[1,256], index: 5, kind: input, shape index: {}]   ;;  %s10592_s6 = inlined_call_operand.hbm [shape: bf16[128,128], index: 6, kind: input, shape index: {}]   ;;  %s10593_s7 = inlined_call_operand.vmem [shape: f32[1,128], index: 7, kind: input, shape index: {}]   ;;  %s10594_s8 = inlined_call_operand.vmem [shape: f32[1,128], index: 8, kind: input, shape index: {}]   ;;  %s10595_s9 = inlined_call_operand.vmem [shape: f32[1,128], index: 9, kind: input, shape index: {}]   ;;  %s10596_s10 = inlined_call_operand.hbm [shape: bf16[128,256], index: 10, kind: input, shape index: {}]   ;;  %s10597_s11 = inlined_call_operand.vmem [shape: f32[1,256], index: 11, kind: input, shape index: {}]   ;;  %s10598_s12 = inlined_call_operand.hbm [shape: bf16[256,128], index: 12, kind: input, shape index: {}]   ;;  %s10599_s13 = inlined_call_operand.vmem [shape: f32[1,128], index: 13, kind: input, shape index: {}]   ;;  %s10600_s14 = inlined_call_operand.vmem [shape: f32[1,128], index: 14, kind: input, shape index: {}]   ;;  %s10601_s15 = inlined_call_operand.vmem [shape: f32[1,128], index: 15, kind: input, shape index: {}]   ;;  %s10602_s16 = inlined_call_operand.hbm [shape: f32[2,128,128], index: 16, kind: output, shape index: {}]  }
   0x1   :  { %10674 = sst [smem:[#allocation88_spill]] %s10586_s0 }
   0x2   :  { %10675 = sst [smem:[#allocation89_spill]] %s10588_s2 }
   0x3   :  { %10676 = sst [smem:[#allocation90_spill]] %s10590_s4 }
   0x4   :  { %10677 = sst [smem:[#allocation91_spill]] %s10592_s6 }
   0x5   :  { %10678 = sst [smem:[#allocation92_spill]] %s10596_s10 }
   0x6   :  { %10679 = sst [smem:[#allocation93_spill]] %s10598_s12 }
   0x7   :  { %10680 = sst [smem:[#allocation94_spill]] %s10600_s14 }
   0x8   :  { %10681 = sst [smem:[#allocation95_spill]] %s10601_s15 }
   0x9   :  { %10682 = sst [smem:[#allocation96_spill]] %s10602_s16 }
   0xa   :  { %21 = vsyncpa [#allocation7], 0 }
   0xb   :  { %23 = vsyncpa [#allocation7 + $0x1], 0 }
   0xc   :  { %24 = vsyncpa [#allocation10], 0 }
   0xd   :  { %26 = vsyncpa [#allocation10 + $0x1], 0 }
   0xe   :  { %27 = vsyncpa [#allocation13], 0 }
   0xf   :  { %28 = vsyncpa [#allocation16], 0 }
  0x10   :  { %29 = vsyncpa [#allocation8], 0 }
  0x11   :  { %31 = vsyncpa [#allocation8 + $0x1], 0  ;;  %s8149_s21 = smov 0   ;;  %s8151_s22 = smov 0  }
  0x12   :  { %s8153_s23 = smov 0   ;;  %s8155_s24 = smov 0  }
  0x13   :  { %s8157_s25 = smov 0   ;;  %s8159_s26 = smov 0  }
  0x14 LB: > { %10683 = sst [smem:[#allocation25_spill]] %s8024_s21  ;;  %s8180_s27 = sadd.s32 4294967295, %s8044_s26   ;;  %s8044_s26 = sphi %s8159_s26, %s37_s26   ;;  %s8040_s25 = sphi %s8157_s25, %s10839_s25   ;;  %s8036_s24 = sphi %s8155_s24, %s10838_s24   ;;  %s8032_s23 = sphi %s8153_s23, %s10837_s23   ;;  %s8028_s22 = sphi %s8151_s22, %s10841_s22   ;;  %s8024_s21 = sphi %s8149_s21, %s10840_s21  }
  0x15   : > { %10684 = sst [smem:[#allocation26_spill]] %s8032_s23  ;;  %p6061_p0 = scmp.ge.s32.totalorder %s8044_s26, 1 }
  0x16   : > { %10685 = sst [smem:[#allocation27_spill]] %s8036_s24  ;;  %p10617_p1 = scmp.eq.s32.totalorder %s8180_s27, 0 }
  0x17   : > { %10686 = sst [smem:[#allocation28_spill]] %s8040_s25  ;;  %p430_p2 = scmp.lt.s32.totalorder %s8044_s26, 3 }
  0x18   : > { %s8046_s29 = smov [#allocation11]   ;;  %s8047_s17 = smov [#allocation12]  }
  0x19   : > { %p8185_p3 = pnand %p6061_p0, %p430_p2  ;;  %s442_s30 = sshll.u32 %s8046_s29, 4  ;;  %s443_s30 = int_to_ptr.vmem [resolvable:$true] %s442_s30 }
  0x1a   : > { %s458_s18 = sshll.u32 %s8047_s17, 4  ;;  %s7773_s20 = scalar_lea.vmem %s443_s30, 1024  ;;  %s459_s18 = int_to_ptr.vmem [resolvable:$true] %s458_s18 }
  0x1b   : > { %p7140_p4 = pneg %p8185_p3  ;;  %p7774_p8 = scmp.ne.s32.totalorder %s443_s30, %s7773_s20 }
  0x1c   : > { %p7781_p11 = scmp.lt.s32.totalorder %s443_s30, %s443_s30  ;;  %p7782_p12 = scmp.lt.s32.totalorder %s7773_s20, %s7773_s20 }
  0x1d   : > { %p8194_p6 = pnand %p7140_p4, %p10617_p1 }
  0x1e   : > { %p7783_p13 = por %p7782_p12, %p7781_p11 }
  0x1f   : > { %p8200_p7 = pneg %p8194_p6 }
  0x21   : > { %p7776_p9 = pnand %p7774_p8, %p8200_p7 }
  0x23   : > { %p7777_p10 = pneg %p7776_p9 }
  0x25   : > { %p7784_p0 = pnand %p7783_p13, %p7777_p10 }
  0x27   : > { %7787 = shalt.err (!%p7784_p0)
}
  0x28   : > { %s10604_s29 = smov 64   ;;  %s10606_s17 = smov 4  }
  0x29   : > { %s10690_s2 = sld [smem:[#allocation89_spill]]  ;;  %s7799_s15 = scalar_lea.vmem %s459_s18, 2048 }
  0x2a   : > { %p7800_p2 = scmp.ne.s32.totalorder %s459_s18, %s7799_s15  ;;  %p7807_p9 = scmp.lt.s32.totalorder %s459_s18, %s459_s18 }
  0x2b   : > { %p7808_p10 = scmp.lt.s32.totalorder %s7799_s15, %s7799_s15 }
  0x2c   : > { %p7802_p4 = pnand %p7800_p2, %p8200_p7 }
  0x2d   : > { %p7809_p11 = por %p7808_p10, %p7807_p9 }
  0x2e   : > { %p7803_p8 = pneg %p7802_p4 }
  0x2f   : > { %7143 = dma.hbm_to_vmem [thread:$0]  (!%p8194_p6), %s10690_s2, 1024, %s443_s30, [#allocation10], %s10604_s29, %s10604_s29, %s10606_s17  }
  0x30   : > { %p7810_p12 = pnand %p7809_p11, %p7803_p8 }
  0x32   : > { %7813 = shalt.err (!%p7810_p12)
}
  0x33   : > { %s10608_s20 = smov 128   ;;  %s10610_s14 = smov 8  }
  0x34   : > { %s10691_s4 = sld [smem:[#allocation90_spill]]  ;;  %s8052_s30 = smov [#allocation15]  }
  0x35   : > { %s496_s29 = sshll.u32 %s8052_s30, 4  ;;  %s8053_s17 = smov [#allocation14]   ;;  %s497_s29 = int_to_ptr.vmem [resolvable:$true] %s496_s29 }
  0x36   : > { %s474_s2 = sshll.u32 %s8053_s17, 4  ;;  %s7825_s15 = scalar_lea.vmem %s497_s29, 2048  ;;  %s475_s2 = int_to_ptr.vmem [resolvable:$true] %s474_s2 }
  0x37   : > { %p7826_p13 = scmp.ne.s32.totalorder %s497_s29, %s7825_s15  ;;  %p7833_p4 = scmp.lt.s32.totalorder %s497_s29, %s497_s29 }
  0x38   : > { %p7834_p8 = scmp.lt.s32.totalorder %s7825_s15, %s7825_s15 }
  0x39   : > { %p7828_p0 = pnand %p7826_p13, %p8200_p7 }
  0x3a   : > { %7146 = dma.hbm_to_vmem [thread:$0]  (!%p8194_p6), %s10691_s4, 2048, %s459_s18, [#allocation13], %s10608_s20, %s10608_s20, %s10610_s14  }
  0x3b   : > { %p7829_p2 = pneg %p7828_p0  ;;  %p7835_p9 = por %p7834_p8, %p7833_p4 }
  0x3d   : > { %p7836_p10 = pnand %p7835_p9, %p7829_p2 }
  0x3f   : > { %7839 = shalt.err (!%p7836_p10)
}
  0x40   : > { %s10692_s10 = sld [smem:[#allocation92_spill]]  ;;  %s7851_s17 = scalar_lea.vmem %s475_s2, 1024 }
  0x41   : > { %p7852_p11 = scmp.ne.s32.totalorder %s475_s2, %s7851_s17  ;;  %p7859_p0 = scmp.lt.s32.totalorder %s475_s2, %s475_s2 }
  0x42   : > { %p7860_p5 = scmp.lt.s32.totalorder %s7851_s17, %s7851_s17 }
  0x43   : > { %p7854_p12 = pnand %p7852_p11, %p8200_p7 }
  0x44   : > { %p7861_p4 = por %p7860_p5, %p7859_p0 }
  0x45   : > { %p7855_p13 = pneg %p7854_p12 }
  0x46   : > { %7152 = dma.hbm_to_vmem [thread:$0]  (!%p8194_p6), %s10692_s10, 2048, %s497_s29, [#allocation16], %s10608_s20, %s10608_s20, %s10610_s14  }
  0x47   : > { %p7862_p2 = pnand %p7861_p4, %p7855_p13 }
  0x49   : > { %7865 = shalt.err (!%p7862_p2)
}
  0x4a   : > { %s10693_s24 = smov 4   ;;  %s10694_s30 = smov 64  }
  0x4b   : > { %s10695_s6 = sld [smem:[#allocation91_spill]]  ;;  %s8054_s29 = smov [#allocation17]  }
  0x4c   : > { %s512_s18 = sshll.u32 %s8054_s29, 4  ;;  %s513_s18 = int_to_ptr.vmem [resolvable:$true] %s512_s18 }
  0x4d   : > { %s7877_s16 = scalar_lea.vmem %s513_s18, 2048  ;;  %p7885_p10 = scmp.lt.s32.totalorder %s513_s18, %s513_s18 }
  0x4e   : > { %p7878_p8 = scmp.ne.s32.totalorder %s513_s18, %s7877_s16  ;;  %p7886_p11 = scmp.lt.s32.totalorder %s7877_s16, %s7877_s16 }
  0x50   : > { %p7880_p9 = pnand %p7878_p8, %p8200_p7  ;;  %p7887_p12 = por %p7886_p11, %p7885_p10 }
  0x51   : > { %7149 = dma.hbm_to_vmem [thread:$0]  (!%p8194_p6), %s10695_s6, 1024, %s475_s2, [#allocation13], %s10694_s30, %s10694_s30, %s10693_s24  }
  0x52   : > { %p7881_p5 = pneg %p7880_p9 }
  0x54   : > { %p7888_p13 = pnand %p7887_p12, %p7881_p5 }
  0x56   : > { %7891 = shalt.err (!%p7888_p13)
}
  0x57   : > { %s10696_s12 = sld [smem:[#allocation93_spill]]  ;;  %s6060_s0 = sadd.s32 4294967294, %s8044_s26  }
  0x58   : > { %s49_s19 = sadd.s32 1, %s8040_s25  ;;  %s58_s17 = sadd.s32 1, %s8032_s23 }
  0x59   : > { %p51_p7 = scmp.ge.s32.totalorder %s49_s19, 2  ;;  %p65_p0 = scmp.ne.s32.totalorder %s8032_s23, %s8028_s22 }
  0x5a   : > { %p66_p4 = scmp.eq.s32.totalorder %s8044_s26, 0  ;;  %p71_p2 = scmp.ne.s32.totalorder %s8028_s22, %s8024_s21 }
  0x5b   : > { %s10843_s19 = smov (%p51_p7, %s49_s19), 0  ;;  %p417_p9 = scmp.eq.s32.totalorder %s8180_s27, 1 }
  0x5c   : > { %10697 = sst [smem:[#allocation29_spill]] %s10843_s19  ;;  %p8264_p8 = por %p66_p4, %p65_p0 }
  0x5d   : > { %7155 = dma.hbm_to_vmem [thread:$0]  (!%p8194_p6), %s10696_s12, 2048, %s513_s18, [#allocation16], %s10694_s30, %s10694_s30, %s10693_s24  }
  0x5e   : > { %p8270_p6 = por %p10617_p1, %p71_p2  ;;  %s53_s30 = ssub.s32 %s8040_s25, %s10843_s19 }
  0x5f   : > { %p56_p5 = scmp.eq.s32.totalorder %s53_s30, 0  ;;  %p423_p10 = scmp.eq.s32.totalorder %s6060_s0, 1 }
  0x60   : > { %p8277_p11 = por %p417_p9, %p65_p0  ;;  %p7172_p12 = scmp.lt.s32.totalorder %s8044_s26, 2 }
  0x61   : > { %s8283_s18 = scalar_select %p56_p5, %s8032_s23, %s58_s17  }
  0x62   : > { %p8285_p13 = por %p423_p10, %p71_p2  ;;  %s535_s4 = sand.u32 1, %s8032_s23  }
  0x63   : > { %10701 = sst [smem:[#allocation30_spill]] %s8283_s18  ;;  %s6068_s2 = sshll.u32 %s535_s4, 7 }
  0x64   : > { %s10702_s16 = scalar_select %p8285_p13, 1, 0 }
  0x65   : > { %s6407_s20 = sshll.u32 %s8040_s25, 11  ;;  %s10704_s10 = sld [smem:[#allocation88_spill]] }
  0x66   : > { %10703 = sst [smem:[#allocation31_spill]] %s10702_s16  ;;  %s539_s30 = scalar_lea.vmem [#allocation6], %s6068_s2 }
  0x67   : > { %s548_s0 = sshll.u32 %s539_s30, 4  ;;  %p8296_p7 = pnand %p7172_p12, %p8264_p8  ;;  %s549_s0 = int_to_ptr.vmem [resolvable:$true] %s548_s0 }
  0x68   : > { %s8303_s23 = scalar_lea.hbm %s10587_s1, %s6407_s20  ;;  %s562_s25 = scalar_lea.vmem [#allocation9], %s6068_s2 }
  0x69   : > { %s569_s16 = sshll.u32 %s562_s25, 4  ;;  %s536_s21 = scalar_lea.sflag [#allocation7], %s535_s4  ;;  %s570_s16 = int_to_ptr.vmem [resolvable:$true] %s569_s16 }
  0x6a   : > { %p7894_p0 = pneg %p8296_p7  ;;  %s7905_s6 = scalar_lea.vmem %s549_s0, 2048 }
  0x6b   : > { %s547_s12 = scalar_lea.hbm %s10704_s10, %s6407_s20  ;;  %p7906_p4 = scmp.ne.s32.totalorder %s549_s0, %s7905_s6 }
  0x6c   : > { %s8055_s10 = smov [#allocation6]  }
  0x6d   : > { %p7908_p2 = pnand %p7906_p4, %p7894_p0  ;;  %s7910_s14 = sshll.u32 %s8055_s10, 4  ;;  %s7911_s14 = int_to_ptr.vmem [resolvable:$false] %s7910_s14 }
  0x6e   : > { %s7912_s15 = scalar_lea.vmem %s7911_s14, 4096  ;;  %p7913_p9 = scmp.lt.s32.totalorder %s549_s0, %s7911_s14 }
  0x6f   : > { %p7909_p8 = pneg %p7908_p2  ;;  %p7914_p5 = scmp.lt.s32.totalorder %s7912_s15, %s7905_s6 }
  0x71   : > { %p7915_p10 = por %p7914_p5, %p7913_p9 }
  0x73   : > { %p7916_p12 = pnand %p7915_p10, %p7909_p8 }
  0x75   : > { %7919 = shalt.err (!%p7916_p12)
}
  0x76   : > { %s10706_s25 = smov 8   ;;  %s10707_s20 = smov 128  }
  0x77   : > { %7159 = dma.hbm_to_vmem [thread:$0]  (!%p8296_p7), %s547_s12, 2048, %s549_s0, %s536_s21, %s10707_s20, %s10707_s20, %s10706_s25  }
  0x78   : > { %s558_s18 = sand.u32 1, %s8044_s26   ;;  %s7933_s2 = scalar_lea.vmem %s570_s16, 2048 }
  0x79   : > { %s559_s4 = scalar_lea.sflag [#allocation10], %s558_s18  ;;  %p7934_p4 = scmp.ne.s32.totalorder %s570_s16, %s7933_s2 }
  0x7a   : > { %s8056_s30 = smov [#allocation9]  }
  0x7b   : > { %p7936_p2 = pnand %p7934_p4, %p7894_p0  ;;  %s7938_s17 = sshll.u32 %s8056_s30, 4  ;;  %s7939_s17 = int_to_ptr.vmem [resolvable:$false] %s7938_s17 }
  0x7c   : > { %s7940_s6 = scalar_lea.vmem %s7939_s17, 4096  ;;  %p7941_p8 = scmp.lt.s32.totalorder %s570_s16, %s7939_s17 }
  0x7d   : > { %p7937_p1 = pneg %p7936_p2  ;;  %p7942_p9 = scmp.lt.s32.totalorder %s7940_s6, %s7933_s2 }
  0x7f   : > { %p7943_p5 = por %p7942_p9, %p7941_p8 }
  0x81   : > { %p7944_p10 = pnand %p7943_p5, %p7937_p1 }
  0x83   : > { %7947 = shalt.err (!%p7944_p10)
}
  0x84   : > { %7162 = dma.hbm_to_vmem [thread:$0]  (!%p8296_p7), %s8303_s23, 2048, %s570_s16, %s559_s4, %s10707_s20, %s10707_s20, %s10706_s25  }
  0x85   : > { %581 = sbr.rel (%p8185_p3) target bundleno = 3419 (0xd5b), region = 84 }
  0x8a   : > { %s8328_s12 = sand.u32 1, %s8028_s22  }
  0x8b   : > { %s8331_s21 = sshll.u32 %s8328_s12, 7  ;;  %s584_s0 = scalar_lea.sflag [#allocation7], %s8328_s12 }
  0x8c   : > { %s8335_s10 = scalar_lea.vmem [#allocation6], %s8331_s21 }
  0x8d   : > { %7999 = dma.done.wait (%p8270_p6), %s584_s0, 2048  }
  0x8e   : > { %8001 = vsyncadd (%p8270_p6), %s584_s0, 4294965248  ;;  %s592_s23 = sand.u32 1, %s8180_s27   ;;  %s8343_s19 = scalar_lea.vmem [#allocation9], %s8331_s21 }
  0x8f   : > { %s593_s28 = scalar_lea.sflag [#allocation10], %s592_s23 }
  0x90   : > { %8003 = dma.done.wait (%p8270_p6), %s593_s28, 2048  }
  0x91   : > { %8005 = vsyncadd (%p8270_p6), %s593_s28, 4294965248  ;;  %p10708_p1 = scmp.eq.s32.totalorder %s8180_s27, 0 }
  0x93   : > { %8007 = dma.done.wait (%p10708_p1), [#allocation10], 1024   ;;  %p10709_p3 = pmov %p10708_p1 }
  0x94   : > { %p10710_p7 = pmov %p10708_p1 }
  0x95   : > { %8009 = vsyncadd (%p10709_p3), [#allocation10], 4294966272 }
  0x96   : > { %8011 = dma.done.wait (%p10710_p7), [#allocation13], 3072   ;;  %p10711_p0 = pmov %p10708_p1 }
  0x98   : > { %8013 = vsyncadd (%p10711_p0), [#allocation13], 4294964224  ;;  %p10712_p12 = pmov %p10711_p0 }
  0x99   : > { %p10713_p4 = pmov %p10711_p0 }
  0x9a   : > { %8015 = dma.done.wait (%p10712_p12), [#allocation16], 4096  }
  0x9b   : > { %8017 = vsyncadd (%p10713_p4), [#allocation16], 4294963200  ;;  %v10620_v0 = vmov 0   ;;  %v7242_v1 = vld [vmem:[#allocation12 + $0x74] ss:$8 sps:$4 sm:$0xff]   ;;  %v7253_v8 = vld [vmem:[#allocation11 + $0x28] sm:$0xff]  }
  0x9c   : > { %1029 = vmatprep.mubr.bf16.mxu1 %v10620_v0  ;;  %v7244_v2 = vld [vmem:[#allocation12 + $0x70] ss:$8 sps:$4 sm:$0xff]   ;;  %997 = vmatprep.subr.bf16.mxu1 %v7242_v1  ;;  %v7246_v4 = vld [vmem:[#allocation12 + $0x64] ss:$8 sps:$4 sm:$0xff]   ;;  %v7248_v5 = vld [vmem:[#allocation12 + $0x60] ss:$8 sps:$4 sm:$0xff]  }
  0x9d   : > { %v7245_v3 = vld [vmem:[#allocation11 + $0x38] sm:$0xff]   ;;  %998 = vmatpush1.bf16.msra.mxu1 %v7244_v2  ;;  %v7249_v6 = vld [vmem:[#allocation11 + $0x30] sm:$0xff]   ;;  %v7254_v10 = vld [vmem:[#allocation12 + $0x44] ss:$8 sps:$4 sm:$0xff]   ;;  %vm1190_vm0 = vcmask 257024   ;;  %s8058_s15 = smov 96  }
  0x9e   : > { %6746 = vmatprep.subr.bf16.mxu0 %v7245_v3  ;;  %999 = vmatprep.subr.bf16.mxu1 %v7246_v4  ;;  %v7250_v7 = vld [vmem:[#allocation12 + $0x54] ss:$8 sps:$4 sm:$0xff]   ;;  %v7252_v9 = vld [vmem:[#allocation12 + $0x50] ss:$8 sps:$4 sm:$0xff]   ;;  %v7257_v11 = vld [vmem:[#allocation11 + $0x20] sm:$0xff]   ;;  %s8059_s25 = smov 64  }
  0x9f   : > { %6747 = vmatpush3.bf16.msra.mxu0 %v7245_v3  ;;  %v7256_v12 = vld [vmem:[#allocation12 + $0x40] ss:$8 sps:$4 sm:$0xff]   ;;  %v7258_v13 = vld [vmem:[#allocation12 + $0x34] ss:$8 sps:$4 sm:$0xff]   ;;  %v7260_v15 = vld [vmem:[#allocation12 + $0x30] ss:$8 sps:$4 sm:$0xff]  }
  0xa0   : > { %6748 = vmatprep.subr.bf16.mxu0 %v7249_v6  ;;  %v7261_v14 = vld [vmem:[#allocation11 + $0x18] sm:$0xff]   ;;  %v7262_v16 = vld [vmem:[#allocation12 + $0x24] ss:$8 sps:$4 sm:$0xff]   ;;  %v7265_v17 = vld [vmem:[#allocation11 + $0x10] sm:$0xff]   ;;  %s8060_s20 = smov 32   ;;  %vm2224_vm1 = vcmask 261120  }
  0xa1   : > { %1000 = vmatpush1.bf16.msra.mxu1 %v7248_v5  ;;  %v7264_v18 = vld [vmem:[#allocation12 + $0x20] ss:$8 sps:$4 sm:$0xff]   ;;  %v7266_v21 = vld [vmem:[#allocation12 + $0x14] ss:$8 sps:$4 sm:$0xff]   ;;  %v7268_v24 = vld [vmem:[#allocation12 + $0x10] ss:$8 sps:$4 sm:$0xff]  }
  0xa2   : > { %1001 = vmatprep.subr.bf16.mxu1 %v7250_v7  ;;  %v673_v19 = vld [vmem:[%s8335_s10] sm:$0xff]  ;;  %v674_v20 = vld [vmem:[%s8335_s10 + $0x8] sm:$0xff]  ;;  %v675_v30 = vld [vmem:[%s8335_s10 + $0x10] sm:$0xff]  ;;  %vm4409_vm2 = vcmask 519424   ;;  %vm4522_vm3 = vcmask 781824   ;;  %vm4635_vm4 = vcmask 1044224  }
  0xa3   : > { %6749 = vmatpush3.bf16.msra.mxu0 %v7249_v6  ;;  %v689_v22 = vpack.c.bf16 %v674_v20, %v673_v19  ;;  %v7269_v23 = vld [vmem:[#allocation11 + $0x8] sm:$0xff]   ;;  %v7273_v26 = vld [vmem:[#allocation11] sm:$0xff]   ;;  %v676_v31 = vld [vmem:[%s8335_s10 + $0x18] sm:$0xff]  ;;  %s10829_s24 = sld [smem:[#allocation94_spill]]  ;;  %s5887_s6 = scalar_lea.sflag [#allocation8], %s8328_s12 }
  0xa4   : > { %6750 = vmatprep.subr.bf16.mxu0 %v7253_v8  ;;  %v7270_v25 = vld [vmem:[#allocation12 + $0x4] ss:$8 sps:$4 sm:$0xff]   ;;  %v7272_v27 = vld [vmem:[#allocation12] ss:$8 sps:$4 sm:$0xff]   ;;  %v690_v35 = vpack.c.bf16 %v676_v31, %v675_v30  ;;  %v699_v36 = vld [vmem:[%s8343_s19 + $0x10] sm:$0xff]  ;;  %s10832_s30 = sld [smem:[#allocation96_spill]] }
  0xa5   : > { %1002 = vmatpush1.bf16.msra.mxu1 %v7252_v9  ;;  %6762 = vmatprep.mubr.bf16.mxu0 %v689_v22  ;;  %v697_v28 = vld [vmem:[%s8343_s19] sm:$0xff]  ;;  %v698_v29 = vld [vmem:[%s8343_s19 + $0x8] sm:$0xff]  ;;  %v700_v37 = vld [vmem:[%s8343_s19 + $0x18] sm:$0xff] }
  0xa6   : > { %1003 = vmatprep.subr.bf16.mxu1 %v7254_v10  ;;  %v677_v32 = vld [vmem:[%s8335_s10 + $0x20] sm:$0xff]  ;;  %v678_v33 = vld [vmem:[%s8335_s10 + $0x28] sm:$0xff]  ;;  %v713_v34 = vpack.c.bf16 %v698_v29, %v697_v28  ;;  %v679_v39 = vld [vmem:[%s8335_s10 + $0x30] sm:$0xff]  ;;  %v714_v43 = vpack.c.bf16 %v700_v37, %v699_v36  ;;  %v907_v10 = vlaneseq }
  0xa7   : > { %6751 = vmatpush3.bf16.msra.mxu0 %v7253_v8  ;;  %v691_v38 = vpack.c.bf16 %v678_v33, %v677_v32  ;;  %v680_v40 = vld [vmem:[%s8335_s10 + $0x38] sm:$0xff]  ;;  %v681_v41 = vld [vmem:[%s8335_s10 + $0x40] sm:$0xff]  ;;  %v682_v42 = vld [vmem:[%s8335_s10 + $0x48] sm:$0xff] }
  0xa8   : > { %6752 = vmatprep.subr.bf16.mxu0 %v7257_v11  ;;  %v692_v44 = vpack.c.bf16 %v680_v40, %v679_v39  ;;  %v701_v45 = vld [vmem:[%s8343_s19 + $0x20] sm:$0xff]  ;;  %v702_v46 = vld [vmem:[%s8343_s19 + $0x28] sm:$0xff]  ;;  %v693_v47 = vpack.c.bf16 %v682_v42, %v681_v41  ;;  %v683_v48 = vld [vmem:[%s8335_s10 + $0x50] sm:$0xff] }
  0xa9   : > { %1004 = vmatpush1.bf16.msra.mxu1 %v7256_v12  ;;  %v684_v49 = vld [vmem:[%s8335_s10 + $0x58] sm:$0xff]  ;;  %v685_v50 = vld [vmem:[%s8335_s10 + $0x60] sm:$0xff]  ;;  %v686_v51 = vld [vmem:[%s8335_s10 + $0x68] sm:$0xff]  ;;  %v715_v52 = vpack.c.bf16 %v702_v46, %v701_v45 }
  0xaa   : > { %1005 = vmatprep.subr.bf16.mxu1 %v7258_v13  ;;  %v694_v53 = vpack.c.bf16 %v684_v49, %v683_v48  ;;  %v695_v54 = vpack.c.bf16 %v686_v51, %v685_v50  ;;  %v703_v55 = vld [vmem:[%s8343_s19 + $0x30] sm:$0xff]  ;;  %v704_v56 = vld [vmem:[%s8343_s19 + $0x38] sm:$0xff]  ;;  %v705_v61 = vld [vmem:[%s8343_s19 + $0x40] sm:$0xff] }
  0xab   : > { %6753 = vmatpush3.bf16.msra.mxu0 %v7257_v11  ;;  %v687_v57 = vld [vmem:[%s8335_s10 + $0x70] sm:$0xff]  ;;  %v688_v58 = vld [vmem:[%s8335_s10 + $0x78] sm:$0xff]  ;;  %v716_v59 = vpack.c.bf16 %v704_v56, %v703_v55  ;;  %v706_v62 = vld [vmem:[%s8343_s19 + $0x48] sm:$0xff]  ;;  %v8401_v11 = vshrl.u32 %v907_v10, 7 }
  0xac   : > { %6754 = vmatprep.subr.bf16.mxu0 %v7261_v14  ;;  %v696_v60 = vpack.c.bf16 %v688_v58, %v687_v57  ;;  %v717_v63 = vpack.c.bf16 %v706_v62, %v705_v61  ;;  %v707_v1 = vld [vmem:[%s8343_s19 + $0x50] sm:$0xff]  ;;  %v708_v2 = vld [vmem:[%s8343_s19 + $0x58] sm:$0xff]  ;;  %v709_v4 = vld [vmem:[%s8343_s19 + $0x60] sm:$0xff] }
  0xad   : > { %1006 = vmatpush1.bf16.msra.mxu1 %v7260_v15  ;;  %v718_v3 = vpack.c.bf16 %v708_v2, %v707_v1  ;;  %v710_v5 = vld [vmem:[%s8343_s19 + $0x68] sm:$0xff]  ;;  %v711_v7 = vld [vmem:[%s8343_s19 + $0x70] sm:$0xff]  ;;  %v712_v8 = vld [vmem:[%s8343_s19 + $0x78] sm:$0xff]  ;;  %10714 = vst [vmem:[#allocation32_spill] sm:$0xff] %v8401_v11  ;;  %v10618_v12 = vsub.s32 0, %v8401_v11 }
  0xae   : > { %1007 = vmatprep.subr.bf16.mxu1 %v7262_v16  ;;  %v719_v6 = vpack.c.bf16 %v710_v5, %v709_v4  ;;  %v720_v9 = vpack.c.bf16 %v712_v8, %v711_v7  ;;  %v905_v13 = vld [vmem:[%s10591_s5] sm:$0x3] }
  0xaf   : > { %6755 = vmatpush3.bf16.msra.mxu0 %v7261_v14  ;;  %v10619_v14 = vsub.s32 1, %v8401_v11  ;;  %v8410_v15 = vrot.slane %v905_v13, %v10618_v12 }
  0xb0   : > { %6756 = vmatprep.subr.bf16.mxu0 %v7265_v17 }
  0xb1   : > { %1008 = vmatpush1.bf16.msra.mxu1 %v7264_v18  ;;  %v8414_v16 = vrot.slane %v905_v13, %v10619_v14  ;;  %v8419_v18 = vld [vmem:[%s10589_s3] ss:$0 sm:$0xff] }
  0xb2   : > { %1009 = vmatprep.subr.bf16.mxu1 %v7266_v21 }
  0xb3   : > { %6757 = vmatpush3.bf16.msra.mxu0 %v7265_v17 }
  0xb4   : > { %6758 = vmatprep.subr.bf16.mxu0 %v7269_v23 }
  0xb5   : > { %1010 = vmatpush1.bf16.msra.mxu1 %v7268_v24 }
  0xb6   : > { %1011 = vmatprep.subr.bf16.mxu1 %v7270_v25 }
  0xb7   : > { %6759 = vmatpush3.bf16.msra.mxu0 %v7269_v23 }
  0xb8   : > { %6760 = vmatprep.subr.bf16.mxu0 %v7273_v26 }
  0xb9   : > { %1012 = vmatpush1.bf16.msra.mxu1 %v7272_v27 }
  0xbb   : > { %6761 = vmatpush3.bf16.msra.mxu0 %v7273_v26 }
  0xbc   : > { %1030 = vmatmul.mubr.bf16.vlgmr.msra.gmra.mxu1 %v713_v34 }
  0xbd   : > { %1039 = vmatprep.mubr.bf16.mxu1 %v10620_v0 }
  0xbe   : > { %6763 = vmatmul.mubr.bf16.vlgmr.msra.gmra.mxu0 %v690_v35 }
  0xbf   : > { %6766 = vmatprep.mubr.bf16.mxu0 %v691_v38 }
  0xc4   : > { %1040 = vmatmul.mubr.bf16.gmra.mxu1 %v714_v43 }
  0xc5   : > { %1049 = vmatprep.mubr.bf16.mxu1 %v10620_v0 }
  0xc6   : > { %6767 = vmatmul.mubr.bf16.gmra.mxu0 %v692_v44 }
  0xc7   : > { %6770 = vmatprep.mubr.bf16.mxu0 %v693_v47 }
  0xcc   : > { %1050 = vmatmul.mubr.bf16.gmra.mxu1 %v715_v52 }
  0xcd   : > { %1059 = vmatprep.mubr.bf16.mxu1 %v10620_v0 }
  0xce   : > { %6771 = vmatmul.mubr.bf16.gmra.mxu0 %v694_v53 }
  0xcf   : > { %6774 = vmatprep.mubr.bf16.mxu0 %v695_v54 }
  0xd4   : > { %1060 = vmatmul.mubr.bf16.gmra.mxu1 %v716_v59 }
  0xd5   : > { %1069 = vmatprep.mubr.bf16.mxu1 %v10620_v0 }
  0xd6   : > { %6775 = vmatmul.mubr.bf16.gmra.mxu0 %v696_v60 }
  0xdc   : > { %1070 = vmatmul.mubr.bf16.gmra.mxu1 %v717_v63 }
  0xdd   : > { %1079 = vmatprep.mubr.bf16.mxu1 %v10620_v0 }
  0xe4   : > { %1080 = vmatmul.mubr.bf16.gmra.mxu1 %v718_v3 }
  0xe5   : > { %1089 = vmatprep.mubr.bf16.mxu1 %v10620_v0 }
  0xec   : > { %1090 = vmatmul.mubr.bf16.gmra.mxu1 %v719_v6 }
  0xed   : > { %1099 = vmatprep.mubr.bf16.mxu1 %v10620_v0 }
  0xf4   : > { %1100 = vmatmul.mubr.bf16.gmra.mxu1 %v720_v9 }
 0x17c   : > { %v1031_v17 = vpop.f32.mrf.mxu1 }
 0x17d   : > { %v1032_v19 = vadd.f32 %v1031_v17, %v8410_v15 }
 0x17e   : > { %v1033_v20 = vpop.f32.mrf.mxu1  ;;  %v6764_v21 = vpop.f32.mrf.mxu0 }
 0x17f   : > { %v6425_v22 = vpack.c.bf16 %v1032_v19, %v1032_v19  ;;  %v1034_v23 = vadd.f32 %v1033_v20, %v8414_v16  ;;  %v835_v24 = vadd.f32 %v6764_v21, %v8419_v18 }
 0x180   : > { %v1035_v25 = vpop.f32.mrf.mxu1  ;;  %v826_v26 = vpop.f32.mrf.mxu0 }
 0x181   : > { %1271 = vst.msk [vmem:[#allocation3] sm:$0xf] %vm1190_vm0, %v6425_v22  ;;  %v8425_v27 = vpack.c.bf16 %v1034_v23, %v1034_v23  ;;  %v1112_v28 = vmul.f32 0.17677669, %v835_v24  ;;  %v1036_v29 = vadd.f32 %v1035_v25, %v8410_v15  ;;  %1432 = vrot.lane.b32.xlu0 %v6425_v22, %s8058_s15  ;;  %v827_v30 = vadd.f32 %v8419_v18, %v826_v26 }
 0x182   : > { %v1037_v31 = vpop.f32.mrf.mxu1  ;;  %v6765_v32 = vpop.f32.mrf.mxu0 }
 0x183   : > { %10715 = vst [vmem:[#allocation33_spill] sm:$0xff] %v8425_v27  ;;  %1351 = vst.msk [vmem:[#allocation4] sm:$0xf] %vm1190_vm0, %v8425_v27  ;;  %v8432_v33 = vpack.c.bf16 %v1112_v28, %v1112_v28  ;;  %v6426_v34 = vpack.c.bf16 %v1036_v29, %v1036_v29  ;;  %v1110_v35 = vmul.f32 0.17677669, %v827_v30  ;;  %v1038_v36 = vadd.f32 %v1037_v31, %v8414_v16 }
 0x184   : > { %v838_v37 = vadd.f32 %v6765_v32, %v8419_v18  ;;  %v1041_v38 = vpop.f32.mrf.mxu1  ;;  %v829_v39 = vpop.f32.mrf.mxu0 }
 0x185   : > { %1193 = vst.msk [vmem:[#allocation2 + $0x8] sm:$0xf] %vm1190_vm0, %v8432_v33  ;;  %1272 = vst.msk [vmem:[#allocation3 + $0x4] sm:$0xf] %vm1190_vm0, %v6426_v34  ;;  %v8439_v40 = vpack.c.bf16 %v1110_v35, %v1110_v35  ;;  %v8441_v41 = vpack.c.bf16 %v1038_v36, %v1038_v36  ;;  %v1042_v42 = vadd.f32 %v1041_v38, %v8410_v15  ;;  %1434 = vrot.lane.b32.xlu1 %v6426_v34, %s8058_s15 }
 0x186   : > { %1627 = vrot.lane.b32.xlu0 %v6425_v22, %s8059_s25  ;;  %v1113_v43 = vmul.f32 0.17677669, %v838_v37  ;;  %v830_v44 = vadd.f32 %v8419_v18, %v829_v39  ;;  %v1043_v45 = vpop.f32.mrf.mxu1  ;;  %v6768_v46 = vpop.f32.mrf.mxu0 }
 0x187   : > { %10716 = vst [vmem:[#allocation34_spill] sm:$0xff] %v8441_v41  ;;  %1191 = vst.msk [vmem:[#allocation2] sm:$0xf] %vm1190_vm0, %v8439_v40  ;;  %v8451_v47 = vpack.c.bf16 %v1042_v42, %v1042_v42  ;;  %v1044_v48 = vadd.f32 %v1043_v45, %v8414_v16  ;;  %v851_v49 = vadd.f32 %v6768_v46, %v8419_v18 }
 0x188   : > { %1352 = vst.msk [vmem:[#allocation4 + $0x4] sm:$0xf] %vm1190_vm0, %v8441_v41  ;;  %v8455_v50 = vpack.c.bf16 %v1113_v43, %v1113_v43  ;;  %v1111_v51 = vmul.f32 0.17677669, %v830_v44  ;;  %v1045_v52 = vpop.f32.mrf.mxu1  ;;  %v842_v53 = vpop.f32.mrf.mxu0 }
 0x189   : > { %1273 = vst.msk [vmem:[#allocation3 + $0x8] sm:$0xf] %vm1190_vm0, %v8451_v47  ;;  %v8459_v54 = vpack.c.bf16 %v1044_v48, %v1044_v48  ;;  %v1046_v55 = vadd.f32 %v1045_v52, %v8410_v15  ;;  %1629 = vrot.lane.b32.xlu1 %v6426_v34, %s8059_s25  ;;  %v1116_v56 = vmul.f32 0.17677669, %v851_v49  ;;  %v843_v57 = vadd.f32 %v8419_v18, %v842_v53 }
 0x18a   : > { %1822 = vrot.lane.b32.xlu0 %v6425_v22, %s8060_s20  ;;  %1194 = vst.msk [vmem:[#allocation2 + $0xc] sm:$0xf] %vm1190_vm0, %v8455_v50  ;;  %v8467_v58 = vpack.c.bf16 %v1111_v51, %v1111_v51  ;;  %v1047_v59 = vpop.f32.mrf.mxu1  ;;  %v6769_v60 = vpop.f32.mrf.mxu0 }
 0x18b   : > { %10717 = vst [vmem:[#allocation35_spill] sm:$0xff] %v8459_v54  ;;  %1353 = vst.msk [vmem:[#allocation4 + $0x8] sm:$0xf] %vm1190_vm0, %v8459_v54  ;;  %v8471_v61 = vpack.c.bf16 %v1046_v55, %v1046_v55  ;;  %v1048_v62 = vadd.f32 %v1047_v59, %v8414_v16  ;;  %v8474_v63 = vpack.c.bf16 %v1116_v56, %v1116_v56  ;;  %v1114_v1 = vmul.f32 0.17677669, %v843_v57 }
 0x18c   : > { %1192 = vst.msk [vmem:[#allocation2 + $0x4] sm:$0xf] %vm1190_vm0, %v8467_v58  ;;  %v1051_v2 = vpop.f32.mrf.mxu1  ;;  %v854_v3 = vadd.f32 %v6769_v60, %v8419_v18  ;;  %v845_v4 = vpop.f32.mrf.mxu0 }
 0x18d   : > { %1274 = vst.msk [vmem:[#allocation3 + $0xc] sm:$0xf] %vm1190_vm0, %v8471_v61  ;;  %v8481_v5 = vpack.c.bf16 %v1048_v62, %v1048_v62  ;;  %v1052_v6 = vadd.f32 %v1051_v2, %v8410_v15  ;;  %1824 = vrot.lane.b32.xlu1 %v6426_v34, %s8060_s20  ;;  %1197 = vst.msk [vmem:[#allocation2 + $0x18] sm:$0xf] %vm1190_vm0, %v8474_v63  ;;  %v8489_v7 = vpack.c.bf16 %v1114_v1, %v1114_v1 }
 0x18e   : > { %1371 = vrot.lane.b32.xlu0 %v8432_v33, %s8058_s15  ;;  %v1053_v8 = vpop.f32.mrf.mxu1  ;;  %v1117_v9 = vmul.f32 0.17677669, %v854_v3  ;;  %v846_v10 = vadd.f32 %v8419_v18, %v845_v4  ;;  %v6772_v13 = vpop.f32.mrf.mxu0 }
 0x18f   : > { %10718 = vst [vmem:[#allocation36_spill] sm:$0xff] %v8481_v5  ;;  %1354 = vst.msk [vmem:[#allocation4 + $0xc] sm:$0xf] %vm1190_vm0, %v8481_v5  ;;  %v8494_v17 = vpack.c.bf16 %v1052_v6, %v1052_v6  ;;  %v1054_v19 = vadd.f32 %v1053_v8, %v8414_v16  ;;  %v867_v20 = vadd.f32 %v6772_v13, %v8419_v18 }
 0x190   : > { %1195 = vst.msk [vmem:[#allocation2 + $0x10] sm:$0xf] %vm1190_vm0, %v8489_v7  ;;  %v1055_v21 = vpop.f32.mrf.mxu1  ;;  %v8500_v22 = vpack.c.bf16 %v1117_v9, %v1117_v9  ;;  %v1115_v23 = vmul.f32 0.17677669, %v846_v10  ;;  %v858_v24 = vpop.f32.mrf.mxu0 }
 0x191   : > { %1275 = vst.msk [vmem:[#allocation3 + $0x10] sm:$0xf] %vm1190_vm0, %v8494_v17  ;;  %v8504_v25 = vpack.c.bf16 %v1054_v19, %v1054_v19  ;;  %v1056_v26 = vadd.f32 %v1055_v21, %v8410_v15  ;;  %1373 = vrot.lane.b32.xlu1 %v8455_v50, %s8058_s15  ;;  %v1120_v28 = vmul.f32 0.17677669, %v867_v20  ;;  %v859_v29 = vadd.f32 %v8419_v18, %v858_v24 }
 0x192   : > { %1566 = vrot.lane.b32.xlu0 %v8432_v33, %s8059_s25  ;;  %v1057_v30 = vpop.f32.mrf.mxu1  ;;  %1198 = vst.msk [vmem:[#allocation2 + $0x1c] sm:$0xf] %vm1190_vm0, %v8500_v22  ;;  %v8514_v31 = vpack.c.bf16 %v1115_v23, %v1115_v23  ;;  %v6773_v32 = vpop.f32.mrf.mxu0 }
 0x193   : > { %10719 = vst [vmem:[#allocation37_spill] sm:$0xff] %v8504_v25  ;;  %1355 = vst.msk [vmem:[#allocation4 + $0x10] sm:$0xf] %vm1190_vm0, %v8504_v25  ;;  %v8518_v34 = vpack.c.bf16 %v1056_v26, %v1056_v26  ;;  %v1058_v35 = vadd.f32 %v1057_v30, %v8414_v16  ;;  %v7274_v36 = vld [vmem:[#allocation2] sm:$0xff]   ;;  %v8521_v37 = vpack.c.bf16 %v1120_v28, %v1120_v28  ;;  %v1118_v38 = vmul.f32 0.17677669, %v859_v29 }
 0x194   : > { %v1061_v39 = vpop.f32.mrf.mxu1  ;;  %1196 = vst.msk [vmem:[#allocation2 + $0x14] sm:$0xf] %vm1190_vm0, %v8514_v31  ;;  %v870_v42 = vadd.f32 %v6773_v32, %v8419_v18  ;;  %v861_v43 = vpop.f32.mrf.mxu0  ;;  %6794 = vmatprep.mubr.msk.bf16.mxu0 %vm2224_vm1, %v7274_v36 }
 0x195   : > { %1276 = vst.msk [vmem:[#allocation3 + $0x14] sm:$0xf] %vm1190_vm0, %v8518_v34  ;;  %v8528_v44 = vpack.c.bf16 %v1058_v35, %v1058_v35  ;;  %v1062_v45 = vadd.f32 %v1061_v39, %v8410_v15  ;;  %1568 = vrot.lane.b32.xlu1 %v8455_v50, %s8059_s25  ;;  %1201 = vst.msk [vmem:[#allocation2 + $0x28] sm:$0xf] %vm1190_vm0, %v8521_v37  ;;  %v8537_v46 = vpack.c.bf16 %v1118_v38, %v1118_v38 }
 0x196   : > { %1761 = vrot.lane.b32.xlu0 %v8432_v33, %s8060_s20  ;;  %v1063_v48 = vpop.f32.mrf.mxu1  ;;  %v1121_v49 = vmul.f32 0.17677669, %v870_v42  ;;  %v862_v51 = vadd.f32 %v8419_v18, %v861_v43  ;;  %v6776_v52 = vpop.f32.mrf.mxu0 }
 0x197   : > { %10720 = vst [vmem:[#allocation38_spill] sm:$0xff] %v8528_v44  ;;  %1356 = vst.msk [vmem:[#allocation4 + $0x14] sm:$0xf] %vm1190_vm0, %v8528_v44  ;;  %v8543_v33 = vpack.c.bf16 %v1062_v45, %v1062_v45  ;;  %v1064_v53 = vadd.f32 %v1063_v48, %v8414_v16  ;;  %v883_v55 = vadd.f32 %v6776_v52, %v8419_v18 }
 0x198   : > { %1199 = vst.msk [vmem:[#allocation2 + $0x20] sm:$0xf] %vm1190_vm0, %v8537_v46  ;;  %v1065_v56 = vpop.f32.mrf.mxu1  ;;  %v8549_v57 = vpack.c.bf16 %v1121_v49, %v1121_v49  ;;  %v1119_v59 = vmul.f32 0.17677669, %v862_v51  ;;  %v874_v60 = vpop.f32.mrf.mxu0 }
 0x199   : > { %1277 = vst.msk [vmem:[#allocation3 + $0x18] sm:$0xf] %vm1190_vm0, %v8543_v33  ;;  %v8553_v62 = vpack.c.bf16 %v1064_v53, %v1064_v53  ;;  %v1066_v1 = vadd.f32 %v1065_v56, %v8410_v15  ;;  %1763 = vrot.lane.b32.xlu1 %v8455_v50, %s8060_s20  ;;  %v1124_v2 = vmul.f32 0.17677669, %v883_v55  ;;  %v875_v3 = vadd.f32 %v8419_v18, %v874_v60 }
 0x19a   : > { %1367 = vrot.lane.b32.xlu0 %v8439_v40, %s8058_s15  ;;  %v1067_v4 = vpop.f32.mrf.mxu1  ;;  %1202 = vst.msk [vmem:[#allocation2 + $0x2c] sm:$0xf] %vm1190_vm0, %v8549_v57  ;;  %v8563_v6 = vpack.c.bf16 %v1119_v59, %v1119_v59  ;;  %v6777_v8 = vpop.f32.mrf.mxu0 }
 0x19b   : > { %10721 = vst [vmem:[#allocation39_spill] sm:$0xff] %v8553_v62  ;;  %1357 = vst.msk [vmem:[#allocation4 + $0x18] sm:$0xf] %vm1190_vm0, %v8553_v62  ;;  %v8567_v9 = vpack.c.bf16 %v1066_v1, %v1066_v1  ;;  %v1068_v50 = vadd.f32 %v1067_v4, %v8414_v16  ;;  %v8570_v10 = vpack.c.bf16 %v1124_v2, %v1124_v2  ;;  %v1122_v13 = vmul.f32 0.17677669, %v875_v3 }
 0x19c   : > { %v1071_v19 = vpop.f32.mrf.mxu1  ;;  %1200 = vst.msk [vmem:[#allocation2 + $0x24] sm:$0xf] %vm1190_vm0, %v8563_v6  ;;  %v886_v20 = vadd.f32 %v6777_v8, %v8419_v18  ;;  %v877_v21 = vpop.f32.mrf.mxu0 }
 0x19d   : > { %1278 = vst.msk [vmem:[#allocation3 + $0x1c] sm:$0xf] %vm1190_vm0, %v8567_v9  ;;  %v8577_v23 = vpack.c.bf16 %v1068_v50, %v1068_v50  ;;  %v1072_v24 = vadd.f32 %v1071_v19, %v8410_v15  ;;  %1369 = vrot.lane.b32.xlu1 %v8467_v58, %s8058_s15  ;;  %1205 = vst.msk [vmem:[#allocation2 + $0x38] sm:$0xf] %vm1190_vm0, %v8570_v10  ;;  %v8586_v26 = vpack.c.bf16 %v1122_v13, %v1122_v13 }
 0x19e   : > { %1562 = vrot.lane.b32.xlu0 %v8439_v40, %s8059_s25  ;;  %v1073_v28 = vpop.f32.mrf.mxu1  ;;  %v1125_v29 = vmul.f32 0.17677669, %v886_v20  ;;  %v878_v30 = vadd.f32 %v8419_v18, %v877_v21 }
 0x19f   : > { %10722 = vst [vmem:[#allocation40_spill] sm:$0xff] %v8577_v23  ;;  %1358 = vst.msk [vmem:[#allocation4 + $0x1c] sm:$0xf] %vm1190_vm0, %v8577_v23  ;;  %v8591_v32 = vpack.c.bf16 %v1072_v24, %v1072_v24  ;;  %v1074_v35 = vadd.f32 %v1073_v28, %v8414_v16 }
 0x1a0   : > { %1203 = vst.msk [vmem:[#allocation2 + $0x30] sm:$0xf] %vm1190_vm0, %v8586_v26  ;;  %v1075_v36 = vpop.f32.mrf.mxu1  ;;  %v8596_v38 = vpack.c.bf16 %v1125_v29, %v1125_v29  ;;  %v1123_v39 = vmul.f32 0.17677669, %v878_v30 }
 0x1a1   : > { %1279 = vst.msk [vmem:[#allocation3 + $0x20] sm:$0xf] %vm1190_vm0, %v8591_v32  ;;  %v8600_v42 = vpack.c.bf16 %v1074_v35, %v1074_v35  ;;  %v1076_v18 = vadd.f32 %v1075_v36, %v8410_v15  ;;  %1564 = vrot.lane.b32.xlu1 %v8467_v58, %s8059_s25 }
 0x1a2   : > { %1757 = vrot.lane.b32.xlu0 %v8439_v40, %s8060_s20  ;;  %v1077_v43 = vpop.f32.mrf.mxu1  ;;  %1206 = vst.msk [vmem:[#allocation2 + $0x3c] sm:$0xf] %vm1190_vm0, %v8596_v38  ;;  %v8609_v45 = vpack.c.bf16 %v1123_v39, %v1123_v39 }
 0x1a3   : > { %10723 = vst [vmem:[#allocation41_spill] sm:$0xff] %v8600_v42  ;;  %1359 = vst.msk [vmem:[#allocation4 + $0x20] sm:$0xf] %vm1190_vm0, %v8600_v42  ;;  %v8613_v48 = vpack.c.bf16 %v1076_v18, %v1076_v18  ;;  %v1078_v49 = vadd.f32 %v1077_v43, %v8414_v16 }
 0x1a4   : > { %v1081_v51 = vpop.f32.mrf.mxu1  ;;  %1204 = vst.msk [vmem:[#allocation2 + $0x34] sm:$0xf] %vm1190_vm0, %v8609_v45 }
 0x1a5   : > { %1280 = vst.msk [vmem:[#allocation3 + $0x24] sm:$0xf] %vm1190_vm0, %v8613_v48  ;;  %v8620_v40 = vpack.c.bf16 %v1078_v49, %v1078_v49  ;;  %v1082_v52 = vadd.f32 %v1081_v51, %v8410_v15  ;;  %1759 = vrot.lane.b32.xlu1 %v8467_v58, %s8060_s20 }
 0x1a6   : > { %1436 = vrot.lane.b32.xlu0 %v8451_v47, %s8058_s15  ;;  %v1083_v53 = vpop.f32.mrf.mxu1 }
 0x1a7   : > { %10724 = vst [vmem:[#allocation42_spill] sm:$0xff] %v8620_v40  ;;  %1360 = vst.msk [vmem:[#allocation4 + $0x24] sm:$0xf] %vm1190_vm0, %v8620_v40  ;;  %v8629_v55 = vpack.c.bf16 %v1082_v52, %v1082_v52  ;;  %v1084_v56 = vadd.f32 %v1083_v53, %v8414_v16 }
 0x1a8   : > { %v1085_v59 = vpop.f32.mrf.mxu1 }
 0x1a9   : > { %1281 = vst.msk [vmem:[#allocation3 + $0x28] sm:$0xf] %vm1190_vm0, %v8629_v55  ;;  %v8634_v60 = vpack.c.bf16 %v1084_v56, %v1084_v56  ;;  %v1086_v1 = vadd.f32 %v1085_v59, %v8410_v15  ;;  %1438 = vrot.lane.b32.xlu1 %v8471_v61, %s8058_s15 }
 0x1aa   : > { %1631 = vrot.lane.b32.xlu0 %v8451_v47, %s8059_s25  ;;  %v1087_v58 = vpop.f32.mrf.mxu1 }
 0x1ab   : > { %1361 = vst.msk [vmem:[#allocation4 + $0x28] sm:$0xf] %vm1190_vm0, %v8634_v60  ;;  %v8643_v2 = vpack.c.bf16 %v1086_v1, %v1086_v1  ;;  %v1088_v3 = vadd.f32 %v1087_v58, %v8414_v16 }
 0x1ac   : > { %v1091_v4 = vpop.f32.mrf.mxu1 }
 0x1ad   : > { %1282 = vst.msk [vmem:[#allocation3 + $0x2c] sm:$0xf] %vm1190_vm0, %v8643_v2  ;;  %v8648_v8 = vpack.c.bf16 %v1088_v3, %v1088_v3  ;;  %v1092_v50 = vadd.f32 %v1091_v4, %v8410_v15  ;;  %1633 = vrot.lane.b32.xlu1 %v8471_v61, %s8059_s25  ;;  %v7279_v3 = vld [vmem:[#allocation3 + $0x18] sm:$0xff]   ;;  %v7280_v4 = vld [vmem:[#allocation3 + $0x10] sm:$0xff]  }
 0x1ae   : > { %1826 = vrot.lane.b32.xlu0 %v8451_v47, %s8060_s20  ;;  %v1093_v13 = vpop.f32.mrf.mxu1 }
 0x1af   : > { %1362 = vst.msk [vmem:[#allocation4 + $0x2c] sm:$0xf] %vm1190_vm0, %v8648_v8  ;;  %v8657_v19 = vpack.c.bf16 %v1092_v50, %v1092_v50  ;;  %v1094_v20 = vadd.f32 %v1093_v13, %v8414_v16  ;;  %v7282_v13 = vld [vmem:[#allocation3] sm:$0xff]  }
 0x1b0   : > { %v1095_v21 = vpop.f32.mrf.mxu1 }
 0x1b1   : > { %1283 = vst.msk [vmem:[#allocation3 + $0x30] sm:$0xf] %vm1190_vm0, %v8657_v19  ;;  %v8662_v24 = vpack.c.bf16 %v1094_v20, %v1094_v20  ;;  %v1096_v28 = vadd.f32 %v1095_v21, %v8410_v15  ;;  %1828 = vrot.lane.b32.xlu1 %v8471_v61, %s8060_s20 }
 0x1b2   : > { %1379 = vrot.lane.b32.xlu0 %v8474_v63, %s8058_s15  ;;  %v1097_v47 = vpop.f32.mrf.mxu1 }
 0x1b3   : > { %1363 = vst.msk [vmem:[#allocation4 + $0x30] sm:$0xf] %vm1190_vm0, %v8662_v24  ;;  %v8671_v29 = vpack.c.bf16 %v1096_v28, %v1096_v28  ;;  %v1098_v30 = vadd.f32 %v1097_v47, %v8414_v16  ;;  %v2250_v28 = vsel %vm2224_vm1, %v7282_v13, 0 }
 0x1b4   : > { %v1101_v35 = vpop.f32.mrf.mxu1  ;;  %v7277_v58 = vld [vmem:[#allocation3 + $0x28] sm:$0xff]  }
 0x1b5   : > { %1284 = vst.msk [vmem:[#allocation3 + $0x34] sm:$0xf] %vm1190_vm0, %v8671_v29  ;;  %v8676_v36 = vpack.c.bf16 %v1098_v30, %v1098_v30  ;;  %v1102_v39 = vadd.f32 %v1101_v35, %v8410_v15  ;;  %1381 = vrot.lane.b32.xlu1 %v8500_v22, %s8058_s15 }
 0x1b6   : > { %1574 = vrot.lane.b32.xlu0 %v8474_v63, %s8059_s25  ;;  %v1103_v61 = vpop.f32.mrf.mxu1 }
 0x1b7   : > { %1364 = vst.msk [vmem:[#allocation4 + $0x34] sm:$0xf] %vm1190_vm0, %v8676_v36  ;;  %v8685_v18 = vpack.c.bf16 %v1102_v39, %v1102_v39  ;;  %v1104_v43 = vadd.f32 %v1103_v61, %v8414_v16  ;;  %v7283_v61 = vld [vmem:[#allocation2 + $0x8] sm:$0xff]  }
 0x1b8   : > { %v1105_v49 = vpop.f32.mrf.mxu1 }
 0x1b9   : > { %1285 = vst.msk [vmem:[#allocation3 + $0x38] sm:$0xf] %vm1190_vm0, %v8685_v18  ;;  %v8690_v51 = vpack.c.bf16 %v1104_v43, %v1104_v43  ;;  %v1106_v52 = vadd.f32 %v1105_v49, %v8410_v15  ;;  %1576 = vrot.lane.b32.xlu1 %v8500_v22, %s8059_s25  ;;  %v7284_v43 = vld [vmem:[#allocation2 + $0x10] sm:$0xff]  }
 0x1ba   : > { %1769 = vrot.lane.b32.xlu0 %v8474_v63, %s8060_s20  ;;  %v1107_v15 = vpop.f32.mrf.mxu1 }
 0x1bb   : > { %1365 = vst.msk [vmem:[#allocation4 + $0x38] sm:$0xf] %vm1190_vm0, %v8690_v51  ;;  %v8699_v53 = vpack.c.bf16 %v1106_v52, %v1106_v52  ;;  %v1108_v56 = vadd.f32 %v1107_v15, %v8414_v16  ;;  %v7285_v15 = vld [vmem:[#allocation2 + $0x18] sm:$0xff]  }
 0x1bc   : > { %v7276_v1 = vld [vmem:[#allocation3 + $0x30] sm:$0xff]  }
 0x1bd   : > { %1286 = vst.msk [vmem:[#allocation3 + $0x3c] sm:$0xf] %vm1190_vm0, %v8699_v53  ;;  %1771 = vrot.lane.b32.xlu1 %v8500_v22, %s8060_s20  ;;  %v8708_v59 = vpack.c.bf16 %v1108_v56, %v1108_v56  ;;  %v2268_v22 = vsel %vm2224_vm1, %v7276_v1, 0  ;;  %v7286_v56 = vld [vmem:[#allocation2 + $0x20] sm:$0xff]  }
 0x1be   : > { %1375 = vrot.lane.b32.xlu0 %v8489_v7, %s8058_s15 }
 0x1bf   : > { %1366 = vst.msk [vmem:[#allocation4 + $0x3c] sm:$0xf] %vm1190_vm0, %v8708_v59 }
 0x1c1   : > { %1377 = vrot.lane.b32.xlu1 %v8514_v31, %s8058_s15 }
 0x1c2   : > { %1570 = vrot.lane.b32.xlu0 %v8489_v7, %s8059_s25 }
 0x1c4   : > { %v7275_v63 = vld [vmem:[#allocation3 + $0x38] sm:$0xff]  }
 0x1c5   : > { %1572 = vrot.lane.b32.xlu1 %v8514_v31, %s8059_s25  ;;  %7082 = vmatprep.subr.msk.bf16.mxu0 %vm2224_vm1, %v7275_v63  ;;  %v2271_v16 = vsel %vm2224_vm1, %v7275_v63, 0 }
 0x1c6   : > { %1765 = vrot.lane.b32.xlu0 %v8489_v7, %s8060_s20  ;;  %6779 = vmatpush3.bf16.xpose.msra.mxu0 %v2271_v16  ;;  %v2265_v7 = vsel %vm2224_vm1, %v7277_v58, 0 }
 0x1c7   : > { %7083 = vmatprep.subr.msk.bf16.mxu0 %vm2224_vm1, %v7276_v1 }
 0x1c9   : > { %1767 = vrot.lane.b32.xlu1 %v8514_v31, %s8060_s20  ;;  %v7278_v31 = vld [vmem:[#allocation3 + $0x20] sm:$0xff]  }
 0x1ca   : > { %1440 = vrot.lane.b32.xlu0 %v8494_v17, %s8058_s15 }
 0x1cd   : > { %1505 = vrot.lane.b32.xlu1 %v8504_v25, %s8058_s15 }
 0x1ce   : > { %1635 = vrot.lane.b32.xlu0 %v8494_v17, %s8059_s25  ;;  %6781 = vmatpush3.bf16.xpose.msra.mxu0 %v2268_v22  ;;  %v7288_v22 = vld [vmem:[#allocation2 + $0x30] sm:$0xff]  }
 0x1cf   : > { %7084 = vmatprep.subr.msk.bf16.mxu0 %vm2224_vm1, %v7277_v58 }
 0x1d1   : > { %1442 = vrot.lane.b32.xlu1 %v8518_v34, %s8058_s15 }
 0x1d2   : > { %1830 = vrot.lane.b32.xlu0 %v8494_v17, %s8060_s20  ;;  %v2262_v17 = vsel %vm2224_vm1, %v7278_v31, 0 }
 0x1d5   : > { %1637 = vrot.lane.b32.xlu1 %v8518_v34, %s8059_s25 }
 0x1d6   : > { %1387 = vrot.lane.b32.xlu0 %v8521_v37, %s8058_s15  ;;  %6783 = vmatpush3.bf16.xpose.msra.mxu0 %v2265_v7 }
 0x1d7   : > { %7085 = vmatprep.subr.msk.bf16.mxu0 %vm2224_vm1, %v7278_v31 }
 0x1d9   : > { %1832 = vrot.lane.b32.xlu1 %v8518_v34, %s8060_s20  ;;  %v2259_v34 = vsel %vm2224_vm1, %v7279_v3, 0 }
 0x1da   : > { %1582 = vrot.lane.b32.xlu0 %v8521_v37, %s8059_s25 }
 0x1dd   : > { %1389 = vrot.lane.b32.xlu1 %v8549_v57, %s8058_s15 }
 0x1de   : > { %1777 = vrot.lane.b32.xlu0 %v8521_v37, %s8060_s20  ;;  %6785 = vmatpush3.bf16.xpose.msra.mxu0 %v2262_v17  ;;  %v2256_v37 = vsel %vm2224_vm1, %v7280_v4, 0 }
 0x1df   : > { %7086 = vmatprep.subr.msk.bf16.mxu0 %vm2224_vm1, %v7279_v3 }
 0x1e1   : > { %1584 = vrot.lane.b32.xlu1 %v8549_v57, %s8059_s25 }
 0x1e2   : > { %1383 = vrot.lane.b32.xlu0 %v8537_v46, %s8058_s15 }
 0x1e5   : > { %1779 = vrot.lane.b32.xlu1 %v8549_v57, %s8060_s20  ;;  %v7281_v57 = vld [vmem:[#allocation3 + $0x8] sm:$0xff]  }
 0x1e6   : > { %1578 = vrot.lane.b32.xlu0 %v8537_v46, %s8059_s25  ;;  %6787 = vmatpush3.bf16.xpose.msra.mxu0 %v2259_v34  ;;  %v7290_v34 = vld [vmem:[#allocation2 + $0x38] sm:$0xff]  }
 0x1e7   : > { %7087 = vmatprep.subr.msk.bf16.mxu0 %vm2224_vm1, %v7280_v4 }
 0x1e9   : > { %1385 = vrot.lane.b32.xlu1 %v8563_v6, %s8058_s15 }
 0x1ea   : > { %1773 = vrot.lane.b32.xlu0 %v8537_v46, %s8060_s20  ;;  %v2253_v46 = vsel %vm2224_vm1, %v7281_v57, 0 }
 0x1ed   : > { %1580 = vrot.lane.b32.xlu1 %v8563_v6, %s8059_s25 }
 0x1ee   : > { %1444 = vrot.lane.b32.xlu0 %v8543_v33, %s8058_s15  ;;  %6789 = vmatpush3.bf16.xpose.msra.mxu0 %v2256_v37 }
 0x1ef   : > { %7088 = vmatprep.subr.msk.bf16.mxu0 %vm2224_vm1, %v7281_v57 }
 0x1f1   : > { %1775 = vrot.lane.b32.xlu1 %v8563_v6, %s8060_s20 }
 0x1f2   : > { %1639 = vrot.lane.b32.xlu0 %v8543_v33, %s8059_s25 }
 0x1f3   : > { %v1433_v50 = vpop.permute.xlu0 %1432 }
 0x1f4   : > { %1481 = vst.msk [vmem:[#allocation3 + $0x40] sm:$0xf] %vm1190_vm0, %v1433_v50 }
 0x1f5   : > { %1509 = vrot.lane.b32.xlu1 %v8553_v62, %s8058_s15 }
 0x1f6   : > { %1834 = vrot.lane.b32.xlu0 %v8543_v33, %s8060_s20  ;;  %6791 = vmatpush3.bf16.xpose.msra.mxu0 %v2253_v46 }
 0x1f7   : > { %v1435_v20 = vpop.permute.xlu1 %1434  ;;  %7089 = vmatprep.subr.msk.bf16.mxu0 %vm2224_vm1, %v7282_v13 }
 0x1f8   : > { %v1628_v21 = vpop.permute.xlu0 %1627  ;;  %1482 = vst.msk [vmem:[#allocation3 + $0x44] sm:$0xf] %vm1190_vm0, %v1435_v20 }
 0x1f9   : > { %1676 = vst.msk [vmem:[#allocation3 + $0x80] sm:$0xf] %vm1190_vm0, %v1628_v21  ;;  %1446 = vrot.lane.b32.xlu1 %v8567_v9, %s8058_s15 }
 0x1fa   : > { %1395 = vrot.lane.b32.xlu0 %v8570_v10, %s8058_s15 }
 0x1fb   : > { %v1630_v6 = vpop.permute.xlu1 %1629 }
 0x1fc   : > { %v1823_v33 = vpop.permute.xlu0 %1822  ;;  %1677 = vst.msk [vmem:[#allocation3 + $0x84] sm:$0xf] %vm1190_vm0, %v1630_v6 }
 0x1fd   : > { %1871 = vst.msk [vmem:[#allocation3 + $0xc0] sm:$0xf] %vm1190_vm0, %v1823_v33  ;;  %1641 = vrot.lane.b32.xlu1 %v8567_v9, %s8059_s25 }
 0x1fe   : > { %1590 = vrot.lane.b32.xlu0 %v8570_v10, %s8059_s25  ;;  %6793 = vmatpush3.bf16.xpose.msra.mxu0 %v2250_v28 }
 0x1ff   : > { %v1825_v47 = vpop.permute.xlu1 %1824 }
 0x200   : > { %v1372_v30 = vpop.permute.xlu0 %1371  ;;  %1872 = vst.msk [vmem:[#allocation3 + $0xc4] sm:$0xf] %vm1190_vm0, %v1825_v47 }
 0x201   : > { %1418 = vst.msk [vmem:[#allocation2 + $0x48] sm:$0xf] %vm1190_vm0, %v1372_v30  ;;  %1836 = vrot.lane.b32.xlu1 %v8567_v9, %s8060_s20 }
 0x202   : > { %1785 = vrot.lane.b32.xlu0 %v8570_v10, %s8060_s20 }
 0x203   : > { %v1374_v39 = vpop.permute.xlu1 %1373 }
 0x204   : > { %v1567_v35 = vpop.permute.xlu0 %1566  ;;  %1419 = vst.msk [vmem:[#allocation2 + $0x4c] sm:$0xf] %vm1190_vm0, %v1374_v39 }
 0x205   : > { %1613 = vst.msk [vmem:[#allocation2 + $0x88] sm:$0xf] %vm1190_vm0, %v1567_v35  ;;  %1397 = vrot.lane.b32.xlu1 %v8596_v38, %s8058_s15  ;;  %6795 = vmatmul.mubr.msk.bf16.vlgmr.msra.gmra.mxu0 %vm2224_vm1, %v7283_v61 }
 0x206   : > { %1391 = vrot.lane.b32.xlu0 %v8586_v26, %s8058_s15  ;;  %6798 = vmatprep.mubr.msk.bf16.mxu0 %vm2224_vm1, %v7284_v43 }
 0x207   : > { %v1569_v49 = vpop.permute.xlu1 %1568 }
 0x208   : > { %v1762_v9 = vpop.permute.xlu0 %1761  ;;  %1614 = vst.msk [vmem:[#allocation2 + $0x8c] sm:$0xf] %vm1190_vm0, %v1569_v49 }
 0x209   : > { %1808 = vst.msk [vmem:[#allocation2 + $0xc8] sm:$0xf] %vm1190_vm0, %v1762_v9  ;;  %1592 = vrot.lane.b32.xlu1 %v8596_v38, %s8059_s25 }
 0x20a   : > { %1586 = vrot.lane.b32.xlu0 %v8586_v26, %s8059_s25 }
 0x20b   : > { %v1764_v10 = vpop.permute.xlu1 %1763 }
 0x20c   : > { %v1368_v52 = vpop.permute.xlu0 %1367  ;;  %1809 = vst.msk [vmem:[#allocation2 + $0xcc] sm:$0xf] %vm1190_vm0, %v1764_v10 }
 0x20d   : > { %1416 = vst.msk [vmem:[#allocation2 + $0x40] sm:$0xf] %vm1190_vm0, %v1368_v52  ;;  %1787 = vrot.lane.b32.xlu1 %v8596_v38, %s8060_s20  ;;  %6799 = vmatmul.mubr.msk.bf16.gmra.mxu0 %vm2224_vm1, %v7285_v15 }
 0x20e   : > { %1781 = vrot.lane.b32.xlu0 %v8586_v26, %s8060_s20  ;;  %6802 = vmatprep.mubr.msk.bf16.mxu0 %vm2224_vm1, %v7286_v56  ;;  %v7287_v26 = vld [vmem:[#allocation2 + $0x28] sm:$0xff]  }
 0x20f   : > { %v1370_v63 = vpop.permute.xlu1 %1369 }
 0x210   : > { %v1563_v1 = vpop.permute.xlu0 %1562  ;;  %1417 = vst.msk [vmem:[#allocation2 + $0x44] sm:$0xf] %vm1190_vm0, %v1370_v63 }
 0x211   : > { %1611 = vst.msk [vmem:[#allocation2 + $0x80] sm:$0xf] %vm1190_vm0, %v1563_v1  ;;  %1393 = vrot.lane.b32.xlu1 %v8609_v45, %s8058_s15 }
 0x212   : > { %1511 = vrot.lane.b32.xlu0 %v8577_v23, %s8058_s15 }
 0x213   : > { %v1565_v38 = vpop.permute.xlu1 %1564 }
 0x214   : > { %v1758_v16 = vpop.permute.xlu0 %1757  ;;  %1612 = vst.msk [vmem:[#allocation2 + $0x84] sm:$0xf] %vm1190_vm0, %v1565_v38 }
 0x215   : > { %1806 = vst.msk [vmem:[#allocation2 + $0xc0] sm:$0xf] %vm1190_vm0, %v1758_v16  ;;  %1588 = vrot.lane.b32.xlu1 %v8609_v45, %s8059_s25  ;;  %6803 = vmatmul.mubr.msk.bf16.gmra.mxu0 %vm2224_vm1, %v7287_v26 }
 0x216   : > { %1448 = vrot.lane.b32.xlu0 %v8591_v32, %s8058_s15  ;;  %6806 = vmatprep.mubr.msk.bf16.mxu0 %vm2224_vm1, %v7288_v22 }
 0x217   : > { %v1760_v58 = vpop.permute.xlu1 %1759  ;;  %v7289_v31 = vld [vmem:[#allocation2 + $0x40] sm:$0xff]  }
 0x218   : > { %v1437_v7 = vpop.permute.xlu0 %1436  ;;  %1807 = vst.msk [vmem:[#allocation2 + $0xc4] sm:$0xf] %vm1190_vm0, %v1760_v58  ;;  %6826 = vmatprep.mubr.msk.bf16.mxu1 %vm2224_vm1, %v7289_v31 }
 0x219   : > { %1483 = vst.msk [vmem:[#allocation3 + $0x48] sm:$0xf] %vm1190_vm0, %v1437_v7  ;;  %1783 = vrot.lane.b32.xlu1 %v8609_v45, %s8060_s20 }
 0x21a   : > { %1643 = vrot.lane.b32.xlu0 %v8591_v32, %s8059_s25 }
 0x21b   : > { %v1439_v17 = vpop.permute.xlu1 %1438  ;;  %v7291_v4 = vld [vmem:[#allocation2 + $0x80] sm:$0xff]  }
 0x21c   : > { %v1632_v3 = vpop.permute.xlu0 %1631  ;;  %1484 = vst.msk [vmem:[#allocation3 + $0x4c] sm:$0xf] %vm1190_vm0, %v1439_v17 }
 0x21d   : > { %1678 = vst.msk [vmem:[#allocation3 + $0x88] sm:$0xf] %vm1190_vm0, %v1632_v3  ;;  %1513 = vrot.lane.b32.xlu1 %v8600_v42, %s8058_s15  ;;  %6807 = vmatmul.mubr.msk.bf16.gmra.mxu0 %vm2224_vm1, %v7290_v34 }
 0x21e   : > { %1838 = vrot.lane.b32.xlu0 %v8591_v32, %s8060_s20  ;;  %6858 = vmatprep.mubr.msk.bf16.mxu0 %vm2224_vm1, %v7291_v4 }
 0x21f   : > { %v1634_v45 = vpop.permute.xlu1 %1633 }
 0x220   : > { %v1827_v37 = vpop.permute.xlu0 %1826  ;;  %1679 = vst.msk [vmem:[#allocation3 + $0x8c] sm:$0xf] %vm1190_vm0, %v1634_v45 }
 0x221   : > { %1873 = vst.msk [vmem:[#allocation3 + $0xc8] sm:$0xf] %vm1190_vm0, %v1827_v37  ;;  %1450 = vrot.lane.b32.xlu1 %v8613_v48, %s8058_s15 }
 0x222   : > { %1515 = vrot.lane.b32.xlu0 %v8620_v40, %s8058_s15 }
 0x223   : > { %v1829_v57 = vpop.permute.xlu1 %1828 }
 0x224   : > { %v1380_v50 = vpop.permute.xlu0 %1379  ;;  %1874 = vst.msk [vmem:[#allocation3 + $0xcc] sm:$0xf] %vm1190_vm0, %v1829_v57 }
 0x225   : > { %1422 = vst.msk [vmem:[#allocation2 + $0x58] sm:$0xf] %vm1190_vm0, %v1380_v50  ;;  %1645 = vrot.lane.b32.xlu1 %v8613_v48, %s8059_s25 }
 0x226   : > { %1452 = vrot.lane.b32.xlu0 %v8629_v55, %s8058_s15 }
 0x227   : > { %v1382_v32 = vpop.permute.xlu1 %1381 }
 0x228   : > { %v1575_v46 = vpop.permute.xlu0 %1574  ;;  %1423 = vst.msk [vmem:[#allocation2 + $0x5c] sm:$0xf] %vm1190_vm0, %v1382_v32 }
 0x229   : > { %1617 = vst.msk [vmem:[#allocation2 + $0x98] sm:$0xf] %vm1190_vm0, %v1575_v46  ;;  %1840 = vrot.lane.b32.xlu1 %v8613_v48, %s8060_s20 }
 0x22a   : > { %1647 = vrot.lane.b32.xlu0 %v8629_v55, %s8059_s25 }
 0x22b   : > { %v1577_v13 = vpop.permute.xlu1 %1576 }
 0x22c   : > { %v1770_v20 = vpop.permute.xlu0 %1769  ;;  %1618 = vst.msk [vmem:[#allocation2 + $0x9c] sm:$0xf] %vm1190_vm0, %v1577_v13 }
 0x22d   : > { %1812 = vst.msk [vmem:[#allocation2 + $0xd8] sm:$0xf] %vm1190_vm0, %v1770_v20  ;;  %1517 = vrot.lane.b32.xlu1 %v8634_v60, %s8058_s15 }
 0x22e   : > { %1842 = vrot.lane.b32.xlu0 %v8629_v55, %s8060_s20 }
 0x22f   : > { %v1772_v21 = vpop.permute.xlu1 %1771 }
 0x230   : > { %v1376_v6 = vpop.permute.xlu0 %1375  ;;  %1813 = vst.msk [vmem:[#allocation2 + $0xdc] sm:$0xf] %vm1190_vm0, %v1772_v21 }
 0x231   : > { %1420 = vst.msk [vmem:[#allocation2 + $0x50] sm:$0xf] %vm1190_vm0, %v1376_v6  ;;  %1454 = vrot.lane.b32.xlu1 %v8643_v2, %s8058_s15 }
 0x232   : > { %1519 = vrot.lane.b32.xlu0 %v8648_v8, %s8058_s15 }
 0x233   : > { %v1378_v48 = vpop.permute.xlu1 %1377 }
 0x234   : > { %v1571_v33 = vpop.permute.xlu0 %1570  ;;  %1421 = vst.msk [vmem:[#allocation2 + $0x54] sm:$0xf] %vm1190_vm0, %v1378_v48 }
 0x235   : > { %1615 = vst.msk [vmem:[#allocation2 + $0x90] sm:$0xf] %vm1190_vm0, %v1571_v33  ;;  %1649 = vrot.lane.b32.xlu1 %v8643_v2, %s8059_s25 }
 0x236   : > { %1651 = vrot.lane.b32.xlu0 %v8657_v19, %s8059_s25 }
 0x237   : > { %v1573_v55 = vpop.permute.xlu1 %1572 }
 0x238   : > { %v1766_v28 = vpop.permute.xlu0 %1765  ;;  %1616 = vst.msk [vmem:[#allocation2 + $0x94] sm:$0xf] %vm1190_vm0, %v1573_v55 }
 0x239   : > { %1810 = vst.msk [vmem:[#allocation2 + $0xd0] sm:$0xf] %vm1190_vm0, %v1766_v28  ;;  %1844 = vrot.lane.b32.xlu1 %v8643_v2, %s8060_s20 }
 0x23a   : > { %1846 = vrot.lane.b32.xlu0 %v8657_v19, %s8060_s20 }
 0x23b   : > { %v1768_v47 = vpop.permute.xlu1 %1767 }
 0x23c   : > { %v1441_v30 = vpop.permute.xlu0 %1440  ;;  %1811 = vst.msk [vmem:[#allocation2 + $0xd4] sm:$0xf] %vm1190_vm0, %v1768_v47 }
 0x23d   : > { %1485 = vst.msk [vmem:[#allocation3 + $0x50] sm:$0xf] %vm1190_vm0, %v1441_v30  ;;  %1456 = vrot.lane.b32.xlu1 %v8657_v19, %s8058_s15 }
 0x23e   : > { %1523 = vrot.lane.b32.xlu0 %v8676_v36, %s8058_s15 }
 0x23f   : > { %v1506_v35 = vpop.permute.xlu1 %1505 }
 0x240   : > { %v1636_v39 = vpop.permute.xlu0 %1635  ;;  %1550 = vst.msk [vmem:[#allocation4 + $0x50] sm:$0xf] %vm1190_vm0, %v1506_v35 }
 0x241   : > { %1680 = vst.msk [vmem:[#allocation3 + $0x90] sm:$0xf] %vm1190_vm0, %v1636_v39  ;;  %1521 = vrot.lane.b32.xlu1 %v8662_v24, %s8058_s15 }
 0x242   : > { %1460 = vrot.lane.b32.xlu0 %v8685_v18, %s8058_s15 }
 0x243   : > { %v1443_v2 = vpop.permute.xlu1 %1442 }
 0x244   : > { %v1831_v61 = vpop.permute.xlu0 %1830  ;;  %1486 = vst.msk [vmem:[#allocation3 + $0x54] sm:$0xf] %vm1190_vm0, %v1443_v2 }
 0x245   : > { %1875 = vst.msk [vmem:[#allocation3 + $0xd0] sm:$0xf] %vm1190_vm0, %v1831_v61  ;;  %1458 = vrot.lane.b32.xlu1 %v8671_v29, %s8058_s15 }
 0x246   : > { %1655 = vrot.lane.b32.xlu0 %v8685_v18, %s8059_s25 }
 0x247   : > { %v1638_v19 = vpop.permute.xlu1 %1637 }
 0x248   : > { %v1388_v43 = vpop.permute.xlu0 %1387  ;;  %1681 = vst.msk [vmem:[#allocation3 + $0x94] sm:$0xf] %vm1190_vm0, %v1638_v19 }
 0x249   : > { %1426 = vst.msk [vmem:[#allocation2 + $0x68] sm:$0xf] %vm1190_vm0, %v1388_v43  ;;  %1653 = vrot.lane.b32.xlu1 %v8671_v29, %s8059_s25 }
 0x24a   : > { %1850 = vrot.lane.b32.xlu0 %v8685_v18, %s8060_s20 }
 0x24b   : > { %v1833_v9 = vpop.permute.xlu1 %1832 }
 0x24c   : > { %v1583_v49 = vpop.permute.xlu0 %1582  ;;  %1876 = vst.msk [vmem:[#allocation3 + $0xd4] sm:$0xf] %vm1190_vm0, %v1833_v9 }
 0x24d   : > { %1621 = vst.msk [vmem:[#allocation2 + $0xa8] sm:$0xf] %vm1190_vm0, %v1583_v49  ;;  %1848 = vrot.lane.b32.xlu1 %v8671_v29, %s8060_s20 }
 0x24e   : > { %1462 = vrot.lane.b32.xlu0 %v8699_v53, %s8058_s15 }
 0x24f   : > { %v1390_v10 = vpop.permute.xlu1 %1389 }
 0x250   : > { %v1778_v52 = vpop.permute.xlu0 %1777  ;;  %1427 = vst.msk [vmem:[#allocation2 + $0x6c] sm:$0xf] %vm1190_vm0, %v1390_v10 }
 0x251   : > { %1816 = vst.msk [vmem:[#allocation2 + $0xe8] sm:$0xf] %vm1190_vm0, %v1778_v52  ;;  %1525 = vrot.lane.b32.xlu1 %v8690_v51, %s8058_s15 }
 0x252   : > { %1527 = vrot.lane.b32.xlu0 %v8708_v59, %s8058_s15 }
 0x253   : > { %v1585_v18 = vpop.permute.xlu1 %1584 }
 0x254   : > { %v1384_v15 = vpop.permute.xlu0 %1383  ;;  %1622 = vst.msk [vmem:[#allocation2 + $0xac] sm:$0xf] %vm1190_vm0, %v1585_v18 }
 0x255   : > { %1424 = vst.msk [vmem:[#allocation2 + $0x60] sm:$0xf] %vm1190_vm0, %v1384_v15  ;;  %1657 = vrot.lane.b32.xlu1 %v8699_v53, %s8059_s25 }
 0x256   : > { %1507 = vrot.lane.b32.xlu0 %v8528_v44, %s8058_s15 }
 0x257   : > { %v1780_v29 = vpop.permute.xlu1 %1779 }
 0x258   : > { %v1579_v56 = vpop.permute.xlu0 %1578  ;;  %1817 = vst.msk [vmem:[#allocation2 + $0xec] sm:$0xf] %vm1190_vm0, %v1780_v29 }
 0x259   : > { %1619 = vst.msk [vmem:[#allocation2 + $0xa0] sm:$0xf] %vm1190_vm0, %v1579_v56  ;;  %1852 = vrot.lane.b32.xlu1 %v8699_v53, %s8060_s20 }
 0x25a   : > { %1503 = vrot.lane.b32.xlu0 %v8481_v5, %s8058_s15 }
 0x25b   : > { %v1386_v63 = vpop.permute.xlu1 %1385 }
 0x25c   : > { %v1774_v1 = vpop.permute.xlu0 %1773  ;;  %1425 = vst.msk [vmem:[#allocation2 + $0x64] sm:$0xf] %vm1190_vm0, %v1386_v63 }
 0x25d   : > { %1814 = vst.msk [vmem:[#allocation2 + $0xe0] sm:$0xf] %vm1190_vm0, %v1774_v1  ;;  %1501 = vrot.lane.b32.xlu1 %v8459_v54, %s8058_s15 }
 0x25e   : > { %1499 = vrot.lane.b32.xlu0 %v8441_v41, %s8058_s15 }
 0x25f   : > { %v1581_v38 = vpop.permute.xlu1 %1580 }
 0x260   : > { %v1445_v16 = vpop.permute.xlu0 %1444  ;;  %1620 = vst.msk [vmem:[#allocation2 + $0xa4] sm:$0xf] %vm1190_vm0, %v1581_v38 }
 0x261   : > { %1487 = vst.msk [vmem:[#allocation3 + $0x58] sm:$0xf] %vm1190_vm0, %v1445_v16  ;;  %1497 = vrot.lane.b32.xlu1 %v8425_v27, %s8058_s15 }
 0x262   : > { %1722 = vrot.lane.b32.xlu0 %v8708_v59, %s8059_s25 }
 0x263   : > { %v1776_v53 = vpop.permute.xlu1 %1775 }
 0x264   : > { %v1640_v26 = vpop.permute.xlu0 %1639  ;;  %1815 = vst.msk [vmem:[#allocation2 + $0xe4] sm:$0xf] %vm1190_vm0, %v1776_v53 }
 0x265   : > { %1682 = vst.msk [vmem:[#allocation3 + $0x98] sm:$0xf] %vm1190_vm0, %v1640_v26  ;;  %1720 = vrot.lane.b32.xlu1 %v8690_v51, %s8059_s25 }
 0x267   : > { %v1510_v22 = vpop.permute.xlu1 %1509 }
 0x268   : > { %v1835_v58 = vpop.permute.xlu0 %1834  ;;  %1552 = vst.msk [vmem:[#allocation4 + $0x58] sm:$0xf] %vm1190_vm0, %v1510_v22 }
 0x269   : > { %1877 = vst.msk [vmem:[#allocation3 + $0xd8] sm:$0xf] %vm1190_vm0, %v1835_v58  ;;  %1915 = vrot.lane.b32.xlu1 %v8690_v51, %s8060_s20 }
 0x26b   : > { %v1447_v7 = vpop.permute.xlu1 %1446 }
 0x26c   : > { %v1396_v31 = vpop.permute.xlu0 %1395  ;;  %1488 = vst.msk [vmem:[#allocation3 + $0x5c] sm:$0xf] %vm1190_vm0, %v1447_v7 }
 0x26d   : > { %1430 = vst.msk [vmem:[#allocation2 + $0x78] sm:$0xf] %vm1190_vm0, %v1396_v31  ;;  %1917 = vrot.lane.b32.xlu1 %v8708_v59, %s8060_s20 }
 0x26f   : > { %v1642_v17 = vpop.permute.xlu1 %1641 }
 0x270   : > { %v1591_v3 = vpop.permute.xlu0 %1590  ;;  %1683 = vst.msk [vmem:[#allocation3 + $0x9c] sm:$0xf] %vm1190_vm0, %v1642_v17 }
 0x271   : > { %1625 = vst.msk [vmem:[#allocation2 + $0xb8] sm:$0xf] %vm1190_vm0, %v1591_v3 }
 0x273   : > { %v1837_v34 = vpop.permute.xlu1 %1836 }
 0x274   : > { %v1786_v4 = vpop.permute.xlu0 %1785  ;;  %1878 = vst.msk [vmem:[#allocation3 + $0xdc] sm:$0xf] %vm1190_vm0, %v1837_v34 }
 0x275   : > { %1820 = vst.msk [vmem:[#allocation2 + $0xf8] sm:$0xf] %vm1190_vm0, %v1786_v4 }
 0x277   : > { %v1398_v51 = vpop.permute.xlu1 %1397 }
 0x278   : > { %v1392_v45 = vpop.permute.xlu0 %1391  ;;  %1431 = vst.msk [vmem:[#allocation2 + $0x7c] sm:$0xf] %vm1190_vm0, %v1398_v51 }
 0x279   : > { %1428 = vst.msk [vmem:[#allocation2 + $0x70] sm:$0xf] %vm1190_vm0, %v1392_v45 }
 0x27b   : > { %v1593_v37 = vpop.permute.xlu1 %1592 }
 0x27c   : > { %v1587_v59 = vpop.permute.xlu0 %1586  ;;  %1626 = vst.msk [vmem:[#allocation2 + $0xbc] sm:$0xf] %vm1190_vm0, %v1593_v37 }
 0x27d   : > { %1623 = vst.msk [vmem:[#allocation2 + $0xb0] sm:$0xf] %vm1190_vm0, %v1587_v59 }
 0x27f   : > { %v1788_v57 = vpop.permute.xlu1 %1787 }
 0x280   : > { %v1782_v50 = vpop.permute.xlu0 %1781  ;;  %1821 = vst.msk [vmem:[#allocation2 + $0xfc] sm:$0xf] %vm1190_vm0, %v1788_v57 }
 0x281   : > { %1818 = vst.msk [vmem:[#allocation2 + $0xf0] sm:$0xf] %vm1190_vm0, %v1782_v50 }
 0x283   : > { %v1394_v32 = vpop.permute.xlu1 %1393 }
 0x284   : > { %v1512_v46 = vpop.permute.xlu0 %1511  ;;  %1429 = vst.msk [vmem:[#allocation2 + $0x74] sm:$0xf] %vm1190_vm0, %v1394_v32 }
 0x285   : > { %1553 = vst.msk [vmem:[#allocation4 + $0x5c] sm:$0xf] %vm1190_vm0, %v1512_v46 }
 0x287   : > { %v1589_v13 = vpop.permute.xlu1 %1588 }
 0x288   : > { %v1449_v20 = vpop.permute.xlu0 %1448  ;;  %1624 = vst.msk [vmem:[#allocation2 + $0xb4] sm:$0xf] %vm1190_vm0, %v1589_v13 }
 0x289   : > { %1489 = vst.msk [vmem:[#allocation3 + $0x60] sm:$0xf] %vm1190_vm0, %v1449_v20 }
 0x28b   : > { %v1784_v21 = vpop.permute.xlu1 %1783 }
 0x28c   : > { %v1644_v6 = vpop.permute.xlu0 %1643  ;;  %1819 = vst.msk [vmem:[#allocation2 + $0xf4] sm:$0xf] %vm1190_vm0, %v1784_v21 }
 0x28d   : > { %1684 = vst.msk [vmem:[#allocation3 + $0xa0] sm:$0xf] %vm1190_vm0, %v1644_v6 }
 0x28f   : > { %v1514_v48 = vpop.permute.xlu1 %1513 }
 0x290   : > { %v1839_v33 = vpop.permute.xlu0 %1838  ;;  %1554 = vst.msk [vmem:[#allocation4 + $0x60] sm:$0xf] %vm1190_vm0, %v1514_v48 }
 0x291   : > { %1879 = vst.msk [vmem:[#allocation3 + $0xe0] sm:$0xf] %vm1190_vm0, %v1839_v33 }
 0x293   : > { %v1451_v55 = vpop.permute.xlu1 %1450 }
 0x294   : > { %v1516_v28 = vpop.permute.xlu0 %1515  ;;  %1490 = vst.msk [vmem:[#allocation3 + $0x64] sm:$0xf] %vm1190_vm0, %v1451_v55 }
 0x295   : > { %1555 = vst.msk [vmem:[#allocation4 + $0x64] sm:$0xf] %vm1190_vm0, %v1516_v28 }
 0x297   : > { %v1646_v47 = vpop.permute.xlu1 %1645 }
 0x298   : > { %v1453_v30 = vpop.permute.xlu0 %1452  ;;  %1685 = vst.msk [vmem:[#allocation3 + $0xa4] sm:$0xf] %vm1190_vm0, %v1646_v47 }
 0x299   : > { %1491 = vst.msk [vmem:[#allocation3 + $0x68] sm:$0xf] %vm1190_vm0, %v1453_v30 }
 0x29b   : > { %v1841_v35 = vpop.permute.xlu1 %1840 }
 0x29c   : > { %v1648_v39 = vpop.permute.xlu0 %1647  ;;  %1880 = vst.msk [vmem:[#allocation3 + $0xe4] sm:$0xf] %vm1190_vm0, %v1841_v35 }
 0x29d   : > { %1686 = vst.msk [vmem:[#allocation3 + $0xa8] sm:$0xf] %vm1190_vm0, %v1648_v39 }
 0x29f   : > { %v1518_v2 = vpop.permute.xlu1 %1517 }
 0x2a0   : > { %v1843_v61 = vpop.permute.xlu0 %1842  ;;  %1556 = vst.msk [vmem:[#allocation4 + $0x68] sm:$0xf] %vm1190_vm0, %v1518_v2 }
 0x2a1   : > { %1881 = vst.msk [vmem:[#allocation3 + $0xe8] sm:$0xf] %vm1190_vm0, %v1843_v61 }
 0x2a3   : > { %v1455_v19 = vpop.permute.xlu1 %1454 }
 0x2a4   : > { %v1520_v43 = vpop.permute.xlu0 %1519  ;;  %1492 = vst.msk [vmem:[#allocation3 + $0x6c] sm:$0xf] %vm1190_vm0, %v1455_v19 }
 0x2a5   : > { %1557 = vst.msk [vmem:[#allocation4 + $0x6c] sm:$0xf] %vm1190_vm0, %v1520_v43  ;;  %v7297_v43 = vld [vmem:[#allocation3 + $0x60] sm:$0xff]  }
 0x2a7   : > { %v1650_v9 = vpop.permute.xlu1 %1649 }
 0x2a8   : > { %v1652_v49 = vpop.permute.xlu0 %1651  ;;  %1687 = vst.msk [vmem:[#allocation3 + $0xac] sm:$0xf] %vm1190_vm0, %v1650_v9 }
 0x2a9   : > { %1688 = vst.msk [vmem:[#allocation3 + $0xb0] sm:$0xf] %vm1190_vm0, %v1652_v49 }
 0x2ab   : > { %v1845_v10 = vpop.permute.xlu1 %1844  ;;  %v7295_v48 = vld [vmem:[#allocation3 + $0x68] sm:$0xff]  }
 0x2ac   : > { %v1847_v52 = vpop.permute.xlu0 %1846  ;;  %1882 = vst.msk [vmem:[#allocation3 + $0xec] sm:$0xf] %vm1190_vm0, %v1845_v10  ;;  %v2490_v61 = vsel %vm2224_vm1, %v7295_v48, 0 }
 0x2ad   : > { %1883 = vst.msk [vmem:[#allocation3 + $0xf0] sm:$0xf] %vm1190_vm0, %v1847_v52 }
 0x2af   : > { %v1457_v18 = vpop.permute.xlu1 %1456  ;;  %v7298_v9 = vld [vmem:[#allocation3 + $0xa8] sm:$0xff]  }
 0x2b0   : > { %v1524_v15 = vpop.permute.xlu0 %1523  ;;  %1493 = vst.msk [vmem:[#allocation3 + $0x70] sm:$0xf] %vm1190_vm0, %v1457_v18 }
 0x2b1   : > { %1559 = vst.msk [vmem:[#allocation4 + $0x74] sm:$0xf] %vm1190_vm0, %v1524_v15 }
 0x2b3   : > { %v1522_v29 = vpop.permute.xlu1 %1521 }
 0x2b4   : > { %v1461_v56 = vpop.permute.xlu0 %1460  ;;  %1558 = vst.msk [vmem:[#allocation4 + $0x70] sm:$0xf] %vm1190_vm0, %v1522_v29 }
 0x2b5   : > { %1495 = vst.msk [vmem:[#allocation3 + $0x78] sm:$0xf] %vm1190_vm0, %v1461_v56  ;;  %v2487_v56 = vsel %vm2224_vm1, %v7297_v43, 0 }
 0x2b7   : > { %v1459_v63 = vpop.permute.xlu1 %1458 }
 0x2b8   : > { %v1656_v1 = vpop.permute.xlu0 %1655  ;;  %1494 = vst.msk [vmem:[#allocation3 + $0x74] sm:$0xf] %vm1190_vm0, %v1459_v63  ;;  %v2715_v63 = vsel %vm2224_vm1, %v7298_v9, 0 }
 0x2b9   : > { %1690 = vst.msk [vmem:[#allocation3 + $0xb8] sm:$0xf] %vm1190_vm0, %v1656_v1  ;;  %v7299_v1 = vld [vmem:[#allocation3 + $0x58] sm:$0xff]  }
 0x2bb   : > { %v1654_v38 = vpop.permute.xlu1 %1653 }
 0x2bc   : > { %v1851_v16 = vpop.permute.xlu0 %1850  ;;  %1689 = vst.msk [vmem:[#allocation3 + $0xb4] sm:$0xf] %vm1190_vm0, %v1654_v38  ;;  %v7300_v38 = vld [vmem:[#allocation3 + $0xa0] sm:$0xff]  }
 0x2bd   : > { %1885 = vst.msk [vmem:[#allocation3 + $0xf8] sm:$0xf] %vm1190_vm0, %v1851_v16 }
 0x2bf   : > { %v1849_v53 = vpop.permute.xlu1 %1848  ;;  %v7293_v51 = vld [vmem:[#allocation3 + $0x70] sm:$0xff]  }
 0x2c0   : > { %v1463_v26 = vpop.permute.xlu0 %1462  ;;  %1884 = vst.msk [vmem:[#allocation3 + $0xf4] sm:$0xf] %vm1190_vm0, %v1849_v53  ;;  %v2493_v21 = vsel %vm2224_vm1, %v7293_v51, 0 }
 0x2c1   : > { %1496 = vst.msk [vmem:[#allocation3 + $0x7c] sm:$0xf] %vm1190_vm0, %v1463_v26  ;;  %v2484_v26 = vsel %vm2224_vm1, %v7299_v1, 0 }
 0x2c3   : > { %v1526_v22 = vpop.permute.xlu1 %1525  ;;  %v7296_v33 = vld [vmem:[#allocation3 + $0xb0] sm:$0xff]  }
 0x2c4   : > { %v1528_v58 = vpop.permute.xlu0 %1527  ;;  %1560 = vst.msk [vmem:[#allocation4 + $0x78] sm:$0xf] %vm1190_vm0, %v1526_v22  ;;  %v2718_v19 = vsel %vm2224_vm1, %v7296_v33, 0  ;;  %v2712_v22 = vsel %vm2224_vm1, %v7300_v38, 0 }
 0x2c5   : > { %1561 = vst.msk [vmem:[#allocation4 + $0x7c] sm:$0xf] %vm1190_vm0, %v1528_v58  ;;  %v9012_v7 = vpop.f32.mrf.mxu0  ;;  %v7301_v58 = vld [vmem:[#allocation3 + $0x50] sm:$0xff]  }
 0x2c6   : > { %3049 = vmax.xlane.f32.xlu0 %v9012_v7 }
 0x2c7   : > { %v1658_v31 = vpop.permute.xlu1 %1657  ;;  %v9017_v34 = vpop.f32.mrf.mxu0 }
 0x2c8   : > { %v1508_v17 = vpop.permute.xlu0 %1507  ;;  %v7292_v3 = vld [vmem:[#allocation3 + $0x78] sm:$0xff]   ;;  %1691 = vst.msk [vmem:[#allocation3 + $0xbc] sm:$0xf] %vm1190_vm0, %v1658_v31 }
 0x2c9   : > { %1551 = vst.msk [vmem:[#allocation4 + $0x54] sm:$0xf] %vm1190_vm0, %v1508_v17  ;;  %7090 = vmatprep.subr.msk.bf16.mxu1 %vm2224_vm1, %v7292_v3  ;;  %v2496_v4 = vsel %vm2224_vm1, %v7292_v3, 0  ;;  %v9021_v45 = vpop.f32.mrf.mxu0  ;;  %v7302_v31 = vld [vmem:[#allocation3 + $0x98] sm:$0xff]   ;;  %v2481_v17 = vsel %vm2224_vm1, %v7301_v58, 0 }
 0x2ca   : > { %6811 = vmatpush3.bf16.xpose.msra.mxu1 %v2496_v4  ;;  %3045 = vmax.xlane.f32.xlu0 %v9017_v34  ;;  %v2709_v3 = vsel %vm2224_vm1, %v7302_v31, 0  ;;  %v7303_v4 = vld [vmem:[#allocation3 + $0x48] sm:$0xff]  }
 0x2cb   : > { %v1853_v37 = vpop.permute.xlu1 %1852  ;;  %7091 = vmatprep.subr.msk.bf16.mxu1 %vm2224_vm1, %v7293_v51  ;;  %v9027_v57 = vpop.f32.mrf.mxu0  ;;  %v7304_v51 = vld [vmem:[#allocation3 + $0x90] sm:$0xff]  }
 0x2cc   : > { %v1504_v59 = vpop.permute.xlu0 %1503  ;;  %1886 = vst.msk [vmem:[#allocation3 + $0xfc] sm:$0xf] %vm1190_vm0, %v1853_v37  ;;  %3047 = vmax.xlane.f32.xlu1 %v9027_v57  ;;  %v2478_v37 = vsel %vm2224_vm1, %v7303_v4, 0 }
 0x2cd   : > { %1549 = vst.msk [vmem:[#allocation4 + $0x4c] sm:$0xf] %vm1190_vm0, %v1504_v59  ;;  %v9030_v50 = vpop.f32.mrf.mxu0  ;;  %v2706_v59 = vsel %vm2224_vm1, %v7304_v51, 0 }
 0x2ce   : > { %3051 = vmax.xlane.f32.xlu0 %v9021_v45 }
 0x2cf   : > { %v1502_v32 = vpop.permute.xlu1 %1501  ;;  %v7294_v13 = vld [vmem:[#allocation3 + $0xb8] sm:$0xff]   ;;  %v9035_v20 = vpop.f32.mrf.mxu0 }
 0x2d0   : > { %v1500_v46 = vpop.permute.xlu0 %1499  ;;  %1548 = vst.msk [vmem:[#allocation4 + $0x48] sm:$0xf] %vm1190_vm0, %v1502_v32  ;;  %7098 = vmatprep.subr.msk.bf16.mxu0 %vm2224_vm1, %v7294_v13  ;;  %3057 = vmax.xlane.f32.xlu1 %v9030_v50  ;;  %v2721_v6 = vsel %vm2224_vm1, %v7294_v13, 0  ;;  %v7305_v32 = vld [vmem:[#allocation3 + $0x40] sm:$0xff]  }
 0x2d1   : > { %1547 = vst.msk [vmem:[#allocation4 + $0x44] sm:$0xf] %vm1190_vm0, %v1500_v46  ;;  %v9041_v55 = vpop.f32.mrf.mxu0  ;;  %6843 = vmatpush3.bf16.xpose.msra.mxu0 %v2721_v6  ;;  %v7306_v46 = vld [vmem:[#allocation3 + $0x88] sm:$0xff]   ;;  %v2475_v13 = vsel %vm2224_vm1, %v7305_v32, 0  ;;  %v7307_v6 = vld [vmem:[#allocation3 + $0x80] sm:$0xff]  }
 0x2d2   : > { %6813 = vmatpush3.bf16.xpose.msra.mxu1 %v2493_v21  ;;  %7099 = vmatprep.subr.msk.bf16.mxu0 %vm2224_vm1, %v7296_v33  ;;  %v2703_v21 = vsel %vm2224_vm1, %v7306_v46, 0  ;;  %v7309_v33 = vld [vmem:[#allocation2 + $0x48] sm:$0xff]  }
 0x2d3   : > { %v1498_v28 = vpop.permute.xlu1 %1497  ;;  %7092 = vmatprep.subr.msk.bf16.mxu1 %vm2224_vm1, %v7295_v48  ;;  %3059 = vmax.xlane.f32.xlu0 %v9041_v55  ;;  %v9048_v30 = vpop.f32.mrf.mxu0  ;;  %v7308_v48 = vld [vmem:[#allocation3 + $0xf8] sm:$0xff]  }
 0x2d4   : > { %v1723_v47 = vpop.permute.xlu0 %1722  ;;  %1546 = vst.msk [vmem:[#allocation4 + $0x40] sm:$0xf] %vm1190_vm0, %v1498_v28  ;;  %3053 = vmax.xlane.f32.xlu1 %v9035_v20  ;;  %v7310_v28 = vld [vmem:[#allocation2 + $0x50] sm:$0xff]  }
 0x2d5   : > { %1756 = vst.msk [vmem:[#allocation4 + $0xbc] sm:$0xf] %vm1190_vm0, %v1723_v47  ;;  %v9051_v35 = vpop.f32.mrf.mxu0  ;;  %v2700_v47 = vsel %vm2224_vm1, %v7307_v6, 0 }
 0x2d7   : > { %v1721_v39 = vpop.permute.xlu1 %1720  ;;  %3055 = vmax.xlane.f32.xlu0 %v9048_v30  ;;  %v9055_v2 = vpop.f32.mrf.mxu0 }
 0x2d8   : > { %1755 = vst.msk [vmem:[#allocation4 + $0xb8] sm:$0xf] %vm1190_vm0, %v1721_v39  ;;  %3065 = vmax.xlane.f32.xlu1 %v9051_v35  ;;  %v7312_v39 = vld [vmem:[#allocation4 + $0x38] sm:$0xff]  }
 0x2d9   : > { %v9060_v49 = vpop.f32.mrf.mxu0  ;;  %6845 = vmatpush3.bf16.xpose.msra.mxu0 %v2718_v19  ;;  %v7311_v19 = vld [vmem:[#allocation3 + $0xf0] sm:$0xff]  }
 0x2da   : > { %6815 = vmatpush3.bf16.xpose.msra.mxu1 %v2490_v61  ;;  %7100 = vmatprep.subr.msk.bf16.mxu0 %vm2224_vm1, %v7298_v9  ;;  %v2946_v61 = vsel %vm2224_vm1, %v7308_v48, 0  ;;  %v7314_v9 = vld [vmem:[#allocation2 + $0x88] sm:$0xff]  }
 0x2db   : > { %v1916_v10 = vpop.permute.xlu1 %1915  ;;  %7093 = vmatprep.subr.msk.bf16.mxu1 %vm2224_vm1, %v7297_v43  ;;  %3067 = vmax.xlane.f32.xlu0 %v9060_v49  ;;  %v9066_v52 = vpop.f32.mrf.mxu0  ;;  %v7313_v43 = vld [vmem:[#allocation2 + $0x58] sm:$0xff]  }
 0x2dc   : > { %1950 = vst.msk [vmem:[#allocation4 + $0xf8] sm:$0xf] %vm1190_vm0, %v1916_v10  ;;  %3061 = vmax.xlane.f32.xlu1 %v9055_v2  ;;  %v7315_v10 = vld [vmem:[#allocation2 + $0x60] sm:$0xff]  }
 0x2dd   : > { %v9069_v18 = vpop.f32.mrf.mxu0 }
 0x2df   : > { %v1918_v15 = vpop.permute.xlu1 %1917  ;;  %3063 = vmax.xlane.f32.xlu0 %v9066_v52  ;;  %v9073_v29 = vpop.f32.mrf.mxu0 }
 0x2e0   : > { %1951 = vst.msk [vmem:[#allocation4 + $0xfc] sm:$0xf] %vm1190_vm0, %v1918_v15  ;;  %3073 = vmax.xlane.f32.xlu1 %v9069_v18  ;;  %v7316_v15 = vld [vmem:[#allocation2 + $0x90] sm:$0xff]  }
 0x2e1   : > { %v9078_v16 = vpop.f32.mrf.mxu0  ;;  %6847 = vmatpush3.bf16.xpose.msra.mxu0 %v2715_v63  ;;  %v7317_v63 = vld [vmem:[#allocation3 + $0xe8] sm:$0xff]  }
 0x2e2   : > { %6817 = vmatpush3.bf16.xpose.msra.mxu1 %v2487_v56  ;;  %7101 = vmatprep.subr.msk.bf16.mxu0 %vm2224_vm1, %v7300_v38  ;;  %v2943_v56 = vsel %vm2224_vm1, %v7311_v19, 0  ;;  %v7319_v38 = vld [vmem:[#allocation4 + $0x28] sm:$0xff]  }
 0x2e3   : > { %7094 = vmatprep.subr.msk.bf16.mxu1 %vm2224_vm1, %v7299_v1  ;;  %3075 = vmax.xlane.f32.xlu0 %v9078_v16  ;;  %v9084_v53 = vpop.f32.mrf.mxu0  ;;  %v7318_v1 = vld [vmem:[#allocation4 + $0x30] sm:$0xff]  }
 0x2e4   : > { %3069 = vmax.xlane.f32.xlu1 %v9073_v29 }
 0x2e7   : > { %3071 = vmax.xlane.f32.xlu0 %v9084_v53 }
 0x2e9   : > { %6849 = vmatpush3.bf16.xpose.msra.mxu0 %v2712_v22  ;;  %v7321_v22 = vld [vmem:[#allocation2 + $0x98] sm:$0xff]  }
 0x2ea   : > { %6819 = vmatpush3.bf16.xpose.msra.mxu1 %v2484_v26  ;;  %7102 = vmatprep.subr.msk.bf16.mxu0 %vm2224_vm1, %v7302_v31  ;;  %v7320_v26 = vld [vmem:[#allocation2 + $0x68] sm:$0xff]   ;;  %v7323_v31 = vld [vmem:[#allocation2 + $0xa0] sm:$0xff]  }
 0x2eb   : > { %7095 = vmatprep.subr.msk.bf16.mxu1 %vm2224_vm1, %v7301_v58  ;;  %v7322_v58 = vld [vmem:[#allocation2 + $0x70] sm:$0xff]  }
 0x2f1   : > { %6851 = vmatpush3.bf16.xpose.msra.mxu0 %v2709_v3  ;;  %v7324_v3 = vld [vmem:[#allocation3 + $0xe0] sm:$0xff]  }
 0x2f2   : > { %6821 = vmatpush3.bf16.xpose.msra.mxu1 %v2481_v17  ;;  %7103 = vmatprep.subr.msk.bf16.mxu0 %vm2224_vm1, %v7304_v51  ;;  %v2940_v17 = vsel %vm2224_vm1, %v7317_v63, 0  ;;  %v7326_v51 = vld [vmem:[#allocation4 + $0x18] sm:$0xff]  }
 0x2f3   : > { %7096 = vmatprep.subr.msk.bf16.mxu1 %vm2224_vm1, %v7303_v4  ;;  %v7325_v4 = vld [vmem:[#allocation4 + $0x20] sm:$0xff]  }
 0x2f9   : > { %6853 = vmatpush3.bf16.xpose.msra.mxu0 %v2706_v59  ;;  %v7328_v59 = vld [vmem:[#allocation2 + $0xa8] sm:$0xff]  }
 0x2fa   : > { %6823 = vmatpush3.bf16.xpose.msra.mxu1 %v2478_v37  ;;  %7104 = vmatprep.subr.msk.bf16.mxu0 %vm2224_vm1, %v7306_v46  ;;  %v7327_v37 = vld [vmem:[#allocation2 + $0x78] sm:$0xff]   ;;  %v7330_v46 = vld [vmem:[#allocation2 + $0xc0] sm:$0xff]  }
 0x2fb   : > { %7097 = vmatprep.subr.msk.bf16.mxu1 %vm2224_vm1, %v7305_v32  ;;  %v7329_v32 = vld [vmem:[#allocation2 + $0xb0] sm:$0xff]  }
 0x301   : > { %6855 = vmatpush3.bf16.xpose.msra.mxu0 %v2703_v21  ;;  %v7331_v21 = vld [vmem:[#allocation3 + $0xd8] sm:$0xff]  }
 0x302   : > { %6825 = vmatpush3.bf16.xpose.msra.mxu1 %v2475_v13  ;;  %7105 = vmatprep.subr.msk.bf16.mxu0 %vm2224_vm1, %v7307_v6  ;;  %v2937_v13 = vsel %vm2224_vm1, %v7324_v3, 0  ;;  %v7332_v6 = vld [vmem:[#allocation4 + $0x10] sm:$0xff]  }
 0x303   : > { %7106 = vmatprep.subr.msk.bf16.mxu1 %vm2224_vm1, %v7308_v48  ;;  %v7333_v48 = vld [vmem:[#allocation4 + $0x8] sm:$0xff]  }
 0x309   : > { %6827 = vmatmul.mubr.msk.bf16.vlgmr.msra.gmra.mxu1 %vm2224_vm1, %v7309_v33  ;;  %6857 = vmatpush3.bf16.xpose.msra.mxu0 %v2700_v47  ;;  %v7334_v33 = vld [vmem:[#allocation2 + $0xb8] sm:$0xff]   ;;  %v7335_v47 = vld [vmem:[#allocation3 + $0xd0] sm:$0xff]  }
 0x30a   : > { %6830 = vmatprep.mubr.msk.bf16.mxu1 %vm2224_vm1, %v7310_v28  ;;  %6875 = vmatpush3.bf16.xpose.msra.mxu1 %v2946_v61  ;;  %v2934_v28 = vsel %vm2224_vm1, %v7331_v21, 0  ;;  %v9129_v61 = vld [vmem:[#allocation4 + $0xb8] sm:$0xff]  }
 0x30b   : > { %6906 = vmatprep.subr.bf16.mxu0 %v7312_v39  ;;  %7107 = vmatprep.subr.msk.bf16.mxu1 %vm2224_vm1, %v7311_v19  ;;  %v2931_v19 = vsel %vm2224_vm1, %v7335_v47, 0 }
 0x310   : > { %6859 = vmatmul.mubr.msk.bf16.vlgmr.msra.gmra.mxu0 %vm2224_vm1, %v7314_v9 }
 0x311   : > { %6831 = vmatmul.mubr.msk.bf16.gmra.mxu1 %vm2224_vm1, %v7313_v43  ;;  %6862 = vmatprep.mubr.msk.bf16.mxu0 %vm2224_vm1, %v7316_v15  ;;  %v7338_v43 = vld [vmem:[#allocation3 + $0xc8] sm:$0xff]  }
 0x312   : > { %6834 = vmatprep.mubr.msk.bf16.mxu1 %vm2224_vm1, %v7315_v10  ;;  %6877 = vmatpush3.bf16.xpose.msra.mxu1 %v2943_v56  ;;  %v2928_v9 = vsel %vm2224_vm1, %v7338_v43, 0  ;;  %v7339_v10 = vld [vmem:[#allocation3 + $0xc0] sm:$0xff]   ;;  %v7340_v56 = vld [vmem:[#allocation4 + $0x78] sm:$0xff]  }
 0x313   : > { %6907 = vmatpush3.bf16.msra.mxu0 %v7312_v39  ;;  %7108 = vmatprep.subr.msk.bf16.mxu1 %vm2224_vm1, %v7317_v63  ;;  %v7336_v39 = vld [vmem:[#allocation4] sm:$0xff]   ;;  %v2925_v15 = vsel %vm2224_vm1, %v7339_v10, 0  ;;  %v7341_v63 = vld [vmem:[#allocation2 + $0xc8] sm:$0xff]  }
 0x314   : > { %6908 = vmatprep.subr.bf16.mxu0 %v7318_v1 }
 0x317   : > { %6909 = vmatpush3.bf16.msra.mxu0 %v7318_v1  ;;  %v7342_v1 = vld [vmem:[#allocation2 + $0xd0] sm:$0xff]  }
 0x318   : > { %6910 = vmatprep.subr.bf16.mxu0 %v7319_v38  ;;  %6863 = vmatmul.mubr.msk.bf16.gmra.mxu0 %vm2224_vm1, %v7321_v22  ;;  %v7345_v22 = vld [vmem:[#allocation2 + $0xd8] sm:$0xff]  }
 0x319   : > { %6835 = vmatmul.mubr.msk.bf16.gmra.mxu1 %vm2224_vm1, %v7320_v26  ;;  %6866 = vmatprep.mubr.msk.bf16.mxu0 %vm2224_vm1, %v7323_v31  ;;  %v7344_v26 = vld [vmem:[#allocation4 + $0x68] sm:$0xff]   ;;  %v7347_v31 = vld [vmem:[#allocation4 + $0x60] sm:$0xff]  }
 0x31a   : > { %6838 = vmatprep.mubr.msk.bf16.mxu1 %vm2224_vm1, %v7322_v58  ;;  %6879 = vmatpush3.bf16.xpose.msra.mxu1 %v2940_v17  ;;  %v7346_v58 = vld [vmem:[#allocation2 + $0xe0] sm:$0xff]   ;;  %v7348_v17 = vld [vmem:[#allocation4 + $0x58] sm:$0xff]  }
 0x31b   : > { %6911 = vmatpush3.bf16.msra.mxu0 %v7319_v38  ;;  %7109 = vmatprep.subr.msk.bf16.mxu1 %vm2224_vm1, %v7324_v3  ;;  %v7343_v38 = vld [vmem:[#allocation4 + $0x70] sm:$0xff]   ;;  %v7349_v3 = vld [vmem:[#allocation2 + $0xe8] sm:$0xff]  }
 0x31c   : > { %6912 = vmatprep.subr.bf16.mxu0 %v7325_v4 }
 0x31f   : > { %6913 = vmatpush3.bf16.msra.mxu0 %v7325_v4  ;;  %v7350_v4 = vld [vmem:[#allocation2 + $0xf0] sm:$0xff]  }
 0x320   : > { %6914 = vmatprep.subr.bf16.mxu0 %v7326_v51  ;;  %6867 = vmatmul.mubr.msk.bf16.gmra.mxu0 %vm2224_vm1, %v7328_v59  ;;  %v7353_v59 = vld [vmem:[#allocation2 + $0xf8] sm:$0xff]  }
 0x321   : > { %6839 = vmatmul.mubr.msk.bf16.gmra.mxu1 %vm2224_vm1, %v7327_v37  ;;  %6870 = vmatprep.mubr.msk.bf16.mxu0 %vm2224_vm1, %v7329_v32  ;;  %v7352_v37 = vld [vmem:[#allocation4 + $0x48] sm:$0xff]   ;;  %v7354_v32 = vld [vmem:[#allocation4 + $0x40] sm:$0xff]  }
 0x322   : > { %6890 = vmatprep.mubr.msk.bf16.mxu1 %vm2224_vm1, %v7330_v46  ;;  %6881 = vmatpush3.bf16.xpose.msra.mxu1 %v2937_v13  ;;  %v9144_v46 = vld [vmem:[#allocation4 + $0xf8] sm:$0xff]  }
 0x323   : > { %6915 = vmatpush3.bf16.msra.mxu0 %v7326_v51  ;;  %7110 = vmatprep.subr.msk.bf16.mxu1 %vm2224_vm1, %v7331_v21  ;;  %v7351_v51 = vld [vmem:[#allocation4 + $0x50] sm:$0xff]  }
 0x324   : > { %6916 = vmatprep.subr.bf16.mxu0 %v7332_v6 }
 0x327   : > { %6917 = vmatpush3.bf16.msra.mxu0 %v7332_v6 }
 0x328   : > { %6918 = vmatprep.subr.bf16.mxu0 %v7333_v48  ;;  %6871 = vmatmul.mubr.msk.bf16.gmra.mxu0 %vm2224_vm1, %v7334_v33 }
 0x32a   : > { %6883 = vmatpush3.bf16.xpose.msra.mxu1 %v2934_v28 }
 0x32b   : > { %6919 = vmatpush3.bf16.msra.mxu0 %v7333_v48  ;;  %7111 = vmatprep.subr.msk.bf16.mxu1 %vm2224_vm1, %v7335_v47 }
 0x32c   : > { %6920 = vmatprep.subr.bf16.mxu0 %v7336_v39 }
 0x32f   : > { %6921 = vmatpush3.bf16.msra.mxu0 %v7336_v39 }
 0x330   : > { %6970 = vmatprep.subr.bf16.mxu0 %v9129_v61 }
 0x332   : > { %6885 = vmatpush3.bf16.xpose.msra.mxu1 %v2931_v19 }
 0x333   : > { %7112 = vmatprep.subr.msk.bf16.mxu1 %vm2224_vm1, %v7338_v43 }
 0x33a   : > { %6887 = vmatpush3.bf16.xpose.msra.mxu1 %v2928_v9 }
 0x33b   : > { %7113 = vmatprep.subr.msk.bf16.mxu1 %vm2224_vm1, %v7339_v10 }
 0x342   : > { %6889 = vmatpush3.bf16.xpose.msra.mxu1 %v2925_v15 }
 0x343   : > { %6938 = vmatprep.subr.bf16.mxu1 %v7340_v56 }
 0x349   : > { %6891 = vmatmul.mubr.msk.bf16.vlgmr.msra.gmra.mxu1 %vm2224_vm1, %v7341_v63 }
 0x34a   : > { %6894 = vmatprep.mubr.msk.bf16.mxu1 %vm2224_vm1, %v7342_v1  ;;  %6939 = vmatpush3.bf16.msra.mxu1 %v7340_v56 }
 0x34b   : > { %6940 = vmatprep.subr.bf16.mxu1 %v7343_v38 }
 0x34e   : > { %6941 = vmatpush3.bf16.msra.mxu1 %v7343_v38 }
 0x34f   : > { %6942 = vmatprep.subr.bf16.mxu1 %v7344_v26  ;;  %v3050_v56 = vpop.xlane.xlu0 %3049 }
 0x350   : > { %v3175_v14 = vsub.f32 %v9012_v7, %v3050_v56 }
 0x351   : > { %6895 = vmatmul.mubr.msk.bf16.gmra.mxu1 %vm2224_vm1, %v7345_v22 }
 0x352   : > { %6898 = vmatprep.mubr.msk.bf16.mxu1 %vm2224_vm1, %v7346_v58  ;;  %6943 = vmatpush3.bf16.msra.mxu1 %v7344_v26 }
 0x353   : > { %6944 = vmatprep.subr.bf16.mxu1 %v7347_v31  ;;  %v3046_v22 = vpop.xlane.xlu0 %3045 }
 0x355   : > { %v3048_v58 = vpop.xlane.xlu1 %3047 }
 0x356   : > { %6945 = vmatpush3.bf16.msra.mxu1 %v7347_v31  ;;  %v3174_v56 = vsub.f32 %v9027_v57, %v3048_v58 }
 0x357   : > { %6946 = vmatprep.subr.bf16.mxu1 %v7348_v17 }
 0x359   : > { %6899 = vmatmul.mubr.msk.bf16.gmra.mxu1 %vm2224_vm1, %v7349_v3  ;;  %v3052_v3 = vpop.xlane.xlu0 %3051 }
 0x35a   : > { %6902 = vmatprep.mubr.msk.bf16.mxu1 %vm2224_vm1, %v7350_v4  ;;  %6947 = vmatpush3.bf16.msra.mxu1 %v7348_v17  ;;  %v3176_v27 = vsub.f32 %v9021_v45, %v3052_v3 }
 0x35b   : > { %6948 = vmatprep.subr.bf16.mxu1 %v7351_v51 }
 0x35d   : > { %v3060_v12 = vpop.xlane.xlu0 %3059 }
 0x35e   : > { %6949 = vmatpush3.bf16.msra.mxu1 %v7351_v51  ;;  %v3180_v3 = vsub.f32 %v9041_v55, %v3060_v12 }
 0x35f   : > { %6950 = vmatprep.subr.bf16.mxu1 %v7352_v37 }
 0x361   : > { %6903 = vmatmul.mubr.msk.bf16.gmra.mxu1 %vm2224_vm1, %v7353_v59  ;;  %v3056_v41 = vpop.xlane.xlu0 %3055 }
 0x362   : > { %6951 = vmatpush3.bf16.msra.mxu1 %v7352_v37  ;;  %v3058_v37 = vpop.xlane.xlu1 %3057 }
 0x363   : > { %6952 = vmatprep.subr.bf16.mxu1 %v7354_v32 }
 0x366   : > { %6953 = vmatpush3.bf16.msra.mxu1 %v7354_v32  ;;  %v3054_v0 = vpop.xlane.xlu1 %3053 }
 0x367   : > { %7002 = vmatprep.subr.bf16.mxu1 %v9144_v46 }
 0x3c9   : > { %v9147_v13 = vpop.f32.mrf.mxu1 }
 0x3ca   : > { %3081 = vmax.xlane.f32.xlu1 %v9147_v13 }
 0x3cb   : > { %v9150_v21 = vpop.f32.mrf.mxu1 }
 0x3cd   : > { %v9152_v6 = vpop.f32.mrf.mxu1 }
 0x3ce   : > { %3083 = vmax.xlane.f32.xlu0 %v9152_v6 }
 0x3cf   : > { %v9160_v28 = vpop.f32.mrf.mxu1 }
 0x3d0   : > { %v9155_v48 = vpop.f32.mrf.mxu0 }
 0x3d1   : > { %10725 = vst [vmem:[#allocation43_spill] sm:$0xff] %v9155_v48  ;;  %3113 = vmax.xlane.f32.xlu1 %v9155_v48  ;;  %v9166_v39 = vpop.f32.mrf.mxu1 }
 0x3d2   : > { %v9158_v33 = vpop.f32.mrf.mxu0 }
 0x3d3   : > { %v9172_v43 = vpop.f32.mrf.mxu1 }
 0x3d4   : > { %v9162_v47 = vpop.f32.mrf.mxu0 }
 0x3d5   : > { %10726 = vst [vmem:[#allocation44_spill] sm:$0xff] %v9162_v47  ;;  %3077 = vmax.xlane.f32.xlu1 %v9150_v21  ;;  %3115 = vmax.xlane.f32.xlu0 %v9162_v47  ;;  %v9178_v10 = vpop.f32.mrf.mxu1 }
 0x3d6   : > { %v9168_v19 = vpop.f32.mrf.mxu0 }
 0x3d7   : > { %v9184_v63 = vpop.f32.mrf.mxu1 }
 0x3d8   : > { %v9174_v9 = vpop.f32.mrf.mxu0 }
 0x3d9   : > { %3109 = vmax.xlane.f32.xlu1 %v9158_v33  ;;  %3079 = vmax.xlane.f32.xlu0 %v9160_v28  ;;  %10727 = vst [vmem:[#allocation45_spill] sm:$0xff] %v9174_v9  ;;  %v9190_v38 = vpop.f32.mrf.mxu1 }
 0x3da   : > { %v9180_v15 = vpop.f32.mrf.mxu0 }
 0x3db   : > { %10728 = vst [vmem:[#allocation46_spill] sm:$0xff] %v9180_v15  ;;  %v9196_v31 = vpop.f32.mrf.mxu1 }
 0x3dc   : > { %v9186_v1 = vpop.f32.mrf.mxu0 }
 0x3dd   : > { %3089 = vmax.xlane.f32.xlu1 %v9166_v39  ;;  %3111 = vmax.xlane.f32.xlu0 %v9168_v19  ;;  %10729 = vst [vmem:[#allocation47_spill] sm:$0xff] %v9186_v1  ;;  %v9202_v4 = vpop.f32.mrf.mxu1 }
 0x3de   : > { %v9192_v26 = vpop.f32.mrf.mxu0 }
 0x3df   : > { %10730 = vst [vmem:[#allocation48_spill] sm:$0xff] %v9192_v26  ;;  %v9208_v59 = vpop.f32.mrf.mxu1 }
 0x3e0   : > { %v9198_v17 = vpop.f32.mrf.mxu0 }
 0x3e1   : > { %3091 = vmax.xlane.f32.xlu0 %v9178_v10  ;;  %3121 = vmax.xlane.f32.xlu1 %v9174_v9  ;;  %10731 = vst [vmem:[#allocation49_spill] sm:$0xff] %v9198_v17  ;;  %v9215_v11 = vpop.f32.mrf.mxu1 }
 0x3e2   : > { %v9204_v51 = vpop.f32.mrf.mxu0 }
 0x3e3   : > { %10732 = vst [vmem:[#allocation50_spill] sm:$0xff] %v9204_v51 }
 0x3e4   : > { %v9210_v32 = vpop.f32.mrf.mxu0 }
 0x3e5   : > { %3085 = vmax.xlane.f32.xlu1 %v9172_v43  ;;  %3123 = vmax.xlane.f32.xlu0 %v9186_v1  ;;  %10733 = vst [vmem:[#allocation51_spill] sm:$0xff] %v9210_v32  ;;  %v3241_v1 = vmul.f32 1.442695, %v3175_v14 }
 0x3e6   : > { %v9217_v9 = vpop.f32.mrf.mxu0 }
 0x3e7   : > { %10734 = vst [vmem:[#allocation52_spill] sm:$0xff] %v9217_v9  ;;  %7426 = vpow2.f32 %v3241_v1  ;;  %v3177_v1 = vsub.f32 %v9035_v20, %v3054_v0 }
 0x3e9   : > { %3117 = vmax.xlane.f32.xlu1 %v9180_v15  ;;  %3087 = vmax.xlane.f32.xlu0 %v9184_v63  ;;  %v9223_v15 = vpop.f32.mrf.mxu1 }
 0x3eb   : > { %v9231_v14 = vpop.f32.mrf.mxu1 }
 0x3ed   : > { %3097 = vmax.xlane.f32.xlu1 %v9190_v38  ;;  %3119 = vmax.xlane.f32.xlu0 %v9192_v26  ;;  %v3243_v26 = vmul.f32 1.442695, %v3176_v27 }
 0x3f1   : > { %3099 = vmax.xlane.f32.xlu0 %v9202_v4  ;;  %3129 = vmax.xlane.f32.xlu1 %v9198_v17  ;;  %v3173_v17 = vsub.f32 %v9017_v34, %v3046_v22  ;;  %v3179_v34 = vsub.f32 %v9030_v50, %v3058_v37  ;;  %v3239_v22 = vmul.f32 1.442695, %v3174_v56  ;;  %v3251_v50 = vmul.f32 1.442695, %v3180_v3 }
 0x3f2   : > { %v3178_v37 = vsub.f32 %v9048_v30, %v3056_v41 }
 0x3f3   : > { %v3237_v7 = vmul.f32 1.442695, %v3173_v17  ;;  %v3068_v17 = vpop.xlane.xlu0 %3067  ;;  %v3249_v57 = vmul.f32 1.442695, %v3179_v34 }
 0x3f4   : > { %v3247_v0 = vmul.f32 1.442695, %v3178_v37  ;;  %v3184_v20 = vsub.f32 %v9060_v49, %v3068_v17  ;;  %v9253_v30 = vpop.eup %7426 }
 0x3f5   : > { %3093 = vmax.xlane.f32.xlu1 %v9196_v31  ;;  %3131 = vmax.xlane.f32.xlu0 %v9210_v32  ;;  %v9225_v32 = vpop.f32.mrf.mxu0  ;;  %7428 = vpow2.f32 %v3237_v7  ;;  %v3245_v7 = vmul.f32 1.442695, %v3177_v1 }
 0x3f6   : > { %10735 = vst [vmem:[#allocation53_spill] sm:$0xff] %v9225_v32  ;;  %7430 = vpow2.f32 %v3243_v26  ;;  %v9245_v26 = vpop.f32.mrf.mxu1 }
 0x3f7   : > { %v9233_v45 = vpop.f32.mrf.mxu0  ;;  %7432 = vpow2.f32 %v3239_v22  ;;  %v3064_v55 = vpop.xlane.xlu0 %3063  ;;  %v3259_v22 = vmul.f32 1.442695, %v3184_v20 }
 0x3f8   : > { %10736 = vst [vmem:[#allocation54_spill] sm:$0xff] %v9233_v45  ;;  %7434 = vpow2.f32 %v3249_v57 }
 0x3f9   : > { %3125 = vmax.xlane.f32.xlu1 %v9204_v51  ;;  %3095 = vmax.xlane.f32.xlu0 %v9208_v59  ;;  %v3066_v51 = vpop.xlane.xlu1 %3065  ;;  %v9239_v58 = vpop.f32.mrf.mxu0  ;;  %7436 = vpow2.f32 %v3251_v50 }
 0x3fa   : > { %10737 = vst [vmem:[#allocation55_spill] sm:$0xff] %v9239_v58  ;;  %v3183_v12 = vsub.f32 %v9051_v35, %v3066_v51  ;;  %7438 = vpow2.f32 %v3245_v7 }
 0x3fb   : > { %v9255_v35 = vpop.f32.mrf.mxu0  ;;  %7440 = vpow2.f32 %v3247_v0  ;;  %v9261_v3 = vpop.xlane.xlu0 %3075 }
 0x3fc   : > { %v3257_v34 = vmul.f32 1.442695, %v3183_v12  ;;  %10738 = vst [vmem:[#allocation56_spill] sm:$0xff] %v9255_v35  ;;  %v3188_v47 = vsub.f32 %v9078_v16, %v9261_v3 }
 0x3fd   : > { %3105 = vmax.xlane.f32.xlu1 %v9215_v11  ;;  %3127 = vmax.xlane.f32.xlu0 %v9217_v9  ;;  %v3062_v27 = vpop.xlane.xlu1 %3061 }
 0x3fe   : > { %v3181_v41 = vsub.f32 %v9055_v2, %v3062_v27  ;;  %7442 = vpow2.f32 %v3257_v34  ;;  %v3182_v2 = vsub.f32 %v9066_v52, %v3064_v55 }
 0x3ff   : > { %7444 = vpow2.f32 %v3259_v22  ;;  %v3072_v0 = vpop.xlane.xlu0 %3071 }
 0x400   : > { %v3253_v17 = vmul.f32 1.442695, %v3181_v41  ;;  %v3255_v37 = vmul.f32 1.442695, %v3182_v2  ;;  %v3186_v34 = vsub.f32 %v9084_v53, %v3072_v0 }
 0x401   : > { %3107 = vmax.xlane.f32.xlu0 %v9231_v14  ;;  %3137 = vmax.xlane.f32.xlu1 %v9225_v32  ;;  %v9250_v56 = vpop.xlane.xlu1 %3073 }
 0x402   : > { %v9263_v49 = vpop.eup %7428  ;;  %7446 = vpow2.f32 %v3253_v17  ;;  %v3263_v17 = vmul.f32 1.442695, %v3186_v34 }
 0x403   : > { %v9266_v57 = vpop.eup %7430  ;;  %7448 = vpow2.f32 %v3255_v37 }
 0x404   : > { %v9272_v50 = vpop.eup %7432 }
 0x405   : > { %3101 = vmax.xlane.f32.xlu1 %v9223_v15  ;;  %3139 = vmax.xlane.f32.xlu0 %v9239_v58  ;;  %v3070_v1 = vpop.xlane.xlu1 %3069  ;;  %v9275_v12 = vpop.eup %7434 }
 0x406   : > { %v3185_v7 = vsub.f32 %v9073_v29, %v3070_v1  ;;  %v9281_v55 = vpop.eup %7436 }
 0x407   : > { %v9284_v41 = vpop.eup %7438 }
 0x408   : > { %v3261_v20 = vmul.f32 1.442695, %v3185_v7  ;;  %v9290_v29 = vpop.eup %7440 }
 0x409   : > { %3133 = vmax.xlane.f32.xlu1 %v9233_v45  ;;  %3103 = vmax.xlane.f32.xlu0 %v9245_v26  ;;  %v9257_v51 = vpop.f32.mrf.mxu1 }
 0x40a   : > { %10739 = vst [vmem:[#allocation57_spill] sm:$0xff] %v9257_v51  ;;  %7450 = vpow2.f32 %v3261_v20 }
 0x40b   : > { %v9268_v27 = vpop.f32.mrf.mxu1  ;;  %v9292_v2 = vpop.eup %7442  ;;  %7452 = vpow2.f32 %v3263_v17 }
 0x40c   : > { %10740 = vst [vmem:[#allocation58_spill] sm:$0xff] %v9268_v27  ;;  %v9298_v53 = vpop.eup %7444 }
 0x40d   : > { %3369 = vadd.xlane.f32.xlu1 %v9253_v30  ;;  %3135 = vmax.xlane.f32.xlu0 %v9255_v35  ;;  %v9277_v52 = vpop.f32.mrf.mxu1 }
 0x40e   : > { %10741 = vst [vmem:[#allocation59_spill] sm:$0xff] %v9277_v52 }
 0x40f   : > { %v9286_v22 = vpop.f32.mrf.mxu1  ;;  %v9300_v37 = vpop.eup %7446 }
 0x410   : > { %10742 = vst [vmem:[#allocation60_spill] sm:$0xff] %v9286_v22  ;;  %v9306_v0 = vpop.eup %7448 }
 0x411   : > { %3365 = vadd.xlane.f32.xlu1 %v9263_v49  ;;  %3371 = vadd.xlane.f32.xlu0 %v9266_v57  ;;  %v9294_v1 = vpop.f32.mrf.mxu1 }
 0x412   : > { %10743 = vst [vmem:[#allocation61_spill] sm:$0xff] %v9294_v1 }
 0x413   : > { %v9302_v7 = vpop.f32.mrf.mxu1 }
 0x414   : > { %10744 = vst [vmem:[#allocation62_spill] sm:$0xff] %v9302_v7 }
 0x415   : > { %3377 = vadd.xlane.f32.xlu1 %v9275_v12  ;;  %3367 = vadd.xlane.f32.xlu0 %v9272_v50  ;;  %v9308_v20 = vpop.f32.mrf.mxu1 }
 0x416   : > { %10745 = vst [vmem:[#allocation63_spill] sm:$0xff] %v9308_v20 }
 0x417   : > { %v9312_v34 = vpop.eup %7450  ;;  %v9314_v58 = vpop.f32.mrf.mxu1 }
 0x418   : > { %10746 = vst [vmem:[#allocation64_spill] sm:$0xff] %v9314_v58  ;;  %v9318_v17 = vpop.eup %7452 }
 0x419   : > { %3373 = vadd.xlane.f32.xlu1 %v9284_v41  ;;  %3379 = vadd.xlane.f32.xlu0 %v9281_v55  ;;  %v9320_v35 = vpop.f32.mrf.mxu1 }
 0x41a   : > { %10747 = vst [vmem:[#allocation65_spill] sm:$0xff] %v9320_v35 }
 0x41b   : > { %v9324_v32 = vpop.f32.mrf.mxu1 }
 0x41c   : > { %10748 = vst [vmem:[#allocation66_spill] sm:$0xff] %v9324_v32 }
 0x41d   : > { %3385 = vadd.xlane.f32.xlu1 %v9292_v2  ;;  %3375 = vadd.xlane.f32.xlu0 %v9290_v29  ;;  %v9328_v45 = vpop.f32.mrf.mxu1 }
 0x41e   : > { %10749 = vst [vmem:[#allocation67_spill] sm:$0xff] %v9328_v45 }
 0x41f   : > { %v9332_v9 = vpop.f32.mrf.mxu1 }
 0x420   : > { %10750 = vst [vmem:[#allocation68_spill] sm:$0xff] %v9332_v9 }
 0x421   : > { %3381 = vadd.xlane.f32.xlu1 %v9300_v37  ;;  %3387 = vadd.xlane.f32.xlu0 %v9298_v53  ;;  %v9336_v54 = vpop.f32.mrf.mxu1 }
 0x422   : > { %10751 = vst [vmem:[#allocation69_spill] sm:$0xff] %v9336_v54 }
 0x425   : > { %3145 = vmax.xlane.f32.xlu1 %v9257_v51  ;;  %3383 = vadd.xlane.f32.xlu0 %v9306_v0 }
 0x429   : > { %3141 = vmax.xlane.f32.xlu1 %v9268_v27  ;;  %3389 = vadd.xlane.f32.xlu0 %v9312_v34 }
 0x42d   : > { %3391 = vadd.xlane.f32.xlu1 %v9318_v17  ;;  %3147 = vmax.xlane.f32.xlu0 %v9277_v52 }
 0x431   : > { %3153 = vmax.xlane.f32.xlu1 %v9294_v1  ;;  %3143 = vmax.xlane.f32.xlu0 %v9286_v22  ;;  %v9340_v1 = vpop.f32.mrf.mxu1 }
 0x432   : > { %10752 = vst [vmem:[#allocation70_spill] sm:$0xff] %v9340_v1 }
 0x435   : > { %3149 = vmax.xlane.f32.xlu1 %v9302_v7  ;;  %3155 = vmax.xlane.f32.xlu0 %v9308_v20  ;;  %v9344_v7 = vpop.f32.mrf.mxu1 }
 0x436   : > { %10753 = vst [vmem:[#allocation71_spill] sm:$0xff] %v9344_v7 }
 0x439   : > { %3161 = vmax.xlane.f32.xlu1 %v9320_v35  ;;  %3151 = vmax.xlane.f32.xlu0 %v9314_v58  ;;  %v9348_v35 = vpop.f32.mrf.mxu1 }
 0x43a   : > { %10754 = vst [vmem:[#allocation72_spill] sm:$0xff] %v9348_v35 }
 0x43d   : > { %3157 = vmax.xlane.f32.xlu1 %v9324_v32  ;;  %3163 = vmax.xlane.f32.xlu0 %v9328_v45 }
 0x441   : > { %3169 = vmax.xlane.f32.xlu1 %v9336_v54  ;;  %3159 = vmax.xlane.f32.xlu0 %v9332_v9 }
 0x445   : > { %3165 = vmax.xlane.f32.xlu1 %v9340_v1  ;;  %3171 = vmax.xlane.f32.xlu0 %v9344_v7 }
 0x449   : > { %3167 = vmax.xlane.f32.xlu0 %v9348_v35 }
 0x453   : > { %v3082_v20 = vpop.xlane.xlu1 %3081 }
 0x454   : > { %v3191_v32 = vsub.f32 %v9147_v13, %v3082_v20 }
 0x456   : > { %v3273_v45 = vmul.f32 1.442695, %v3191_v32 }
 0x457   : > { %v3084_v58 = vpop.xlane.xlu0 %3083 }
 0x458   : > { %7454 = vpow2.f32 %v3273_v45  ;;  %v3192_v54 = vsub.f32 %v9152_v6, %v3084_v58 }
 0x45a   : > { %v3275_v25 = vmul.f32 1.442695, %v3192_v54  ;;  %v9353_v9 = vpop.xlane.xlu1 %3113 }
 0x45b   : > { %10755 = vst [vmem:[#allocation73_spill] sm:$0xff] %v9353_v9 }
 0x45c   : > { %7456 = vpow2.f32 %v3275_v25 }
 0x45e   : > { %v3078_v5 = vpop.xlane.xlu1 %3077  ;;  %v9355_v1 = vpop.xlane.xlu0 %3115 }
 0x45f   : > { %10756 = vst [vmem:[#allocation74_spill] sm:$0xff] %v9355_v1  ;;  %v3189_v7 = vsub.f32 %v9150_v21, %v3078_v5 }
 0x461   : > { %v3269_v44 = vmul.f32 1.442695, %v3189_v7 }
 0x462   : > { %v9358_v23 = vpop.xlane.xlu1 %3109  ;;  %v3080_v35 = vpop.xlane.xlu0 %3079 }
 0x463   : > { %7458 = vpow2.f32 %v3269_v44  ;;  %v3190_v13 = vsub.f32 %v9160_v28, %v3080_v35 }
 0x465   : > { %v9361_v32 = vpop.eup %7454  ;;  %v3271_v45 = vmul.f32 1.442695, %v3190_v13 }
 0x466   : > { %3401 = vadd.xlane.f32.xlu1 %v9361_v32  ;;  %v3090_v54 = vpop.xlane.xlu1 %3089  ;;  %v9364_v6 = vpop.xlane.xlu0 %3111 }
 0x467   : > { %v3195_v25 = vsub.f32 %v9166_v39, %v3090_v54  ;;  %7460 = vpow2.f32 %v3271_v45 }
 0x469   : > { %v9367_v58 = vpop.eup %7456  ;;  %v3281_v5 = vmul.f32 1.442695, %v3195_v25 }
 0x46a   : > { %3403 = vadd.xlane.f32.xlu0 %v9367_v58  ;;  %v3092_v21 = vpop.xlane.xlu0 %3091  ;;  %v9370_v44 = vpop.xlane.xlu1 %3121 }
 0x46b   : > { %10757 = vst [vmem:[#allocation75_spill] sm:$0xff] %v9370_v44  ;;  %7462 = vpow2.f32 %v3281_v5  ;;  %v3196_v28 = vsub.f32 %v9178_v10, %v3092_v21 }
 0x46d   : > { %v3283_v35 = vmul.f32 1.442695, %v3196_v28 }
 0x46e   : > { %v3086_v7 = vpop.xlane.xlu1 %3085  ;;  %v9373_v20 = vpop.xlane.xlu0 %3123 }
 0x46f   : > { %10758 = vst [vmem:[#allocation76_spill] sm:$0xff] %v9373_v20  ;;  %7464 = vpow2.f32 %v3283_v35  ;;  %v3193_v13 = vsub.f32 %v9172_v43, %v3086_v7 }
 0x470   : > { %v9376_v39 = vpop.eup %7458 }
 0x471   : > { %v3277_v54 = vmul.f32 1.442695, %v3193_v13  ;;  %3397 = vadd.xlane.f32.xlu1 %v9376_v39 }
 0x472   : > { %v9379_v45 = vpop.xlane.xlu1 %3117  ;;  %v3088_v25 = vpop.xlane.xlu0 %3087 }
 0x473   : > { %10759 = vst [vmem:[#allocation77_spill] sm:$0xff] %v9379_v45  ;;  %7466 = vpow2.f32 %v3277_v54  ;;  %v3194_v5 = vsub.f32 %v9184_v63, %v3088_v25 }
 0x474   : > { %v9382_v44 = vpop.eup %7460 }
 0x475   : > { %v3279_v10 = vmul.f32 1.442695, %v3194_v5  ;;  %3399 = vadd.xlane.f32.xlu0 %v9382_v44 }
 0x476   : > { %v3098_v21 = vpop.xlane.xlu1 %3097  ;;  %v9385_v28 = vpop.xlane.xlu0 %3119 }
 0x477   : > { %10760 = vst [vmem:[#allocation78_spill] sm:$0xff] %v9385_v28  ;;  %v3199_v43 = vsub.f32 %v9190_v38, %v3098_v21  ;;  %7468 = vpow2.f32 %v3279_v10 }
 0x478   : > { %v9388_v35 = vpop.eup %7462 }
 0x479   : > { %v3289_v7 = vmul.f32 1.442695, %v3199_v43  ;;  %3409 = vadd.xlane.f32.xlu1 %v9388_v35 }
 0x47a   : > { %v3100_v13 = vpop.xlane.xlu0 %3099  ;;  %v9391_v54 = vpop.xlane.xlu1 %3129 }
 0x47b   : > { %10761 = vst [vmem:[#allocation79_spill] sm:$0xff] %v9391_v54  ;;  %7470 = vpow2.f32 %v3289_v7  ;;  %v3200_v63 = vsub.f32 %v9202_v4, %v3100_v13 }
 0x47c   : > { %v9394_v25 = vpop.eup %7464 }
 0x47d   : > { %v3291_v5 = vmul.f32 1.442695, %v3200_v63  ;;  %3411 = vadd.xlane.f32.xlu0 %v9394_v25 }
 0x47e   : > { %v3094_v20 = vpop.xlane.xlu1 %3093  ;;  %v9397_v45 = vpop.xlane.xlu0 %3131 }
 0x47f   : > { %10762 = vst [vmem:[#allocation80_spill] sm:$0xff] %v9397_v45  ;;  %7472 = vpow2.f32 %v3291_v5  ;;  %v3197_v38 = vsub.f32 %v9196_v31, %v3094_v20 }
 0x480   : > { %v9400_v10 = vpop.eup %7466 }
 0x481   : > { %v3285_v21 = vmul.f32 1.442695, %v3197_v38  ;;  %3405 = vadd.xlane.f32.xlu1 %v9400_v10 }
 0x482   : > { %v9403_v43 = vpop.xlane.xlu1 %3125  ;;  %v3096_v7 = vpop.xlane.xlu0 %3095 }
 0x483   : > { %10763 = vst [vmem:[#allocation81_spill] sm:$0xff] %v9403_v43  ;;  %7474 = vpow2.f32 %v3285_v21  ;;  %v3198_v4 = vsub.f32 %v9208_v59, %v3096_v7 }
 0x484   : > { %v9406_v13 = vpop.eup %7468 }
 0x485   : > { %v3287_v63 = vmul.f32 1.442695, %v3198_v4  ;;  %3407 = vadd.xlane.f32.xlu0 %v9406_v13 }
 0x486   : > { %v9409_v45 = vpop.xlane.xlu1 %3105  ;;  %v9411_v5 = vpop.xlane.xlu0 %3127 }
 0x487   : > { %10764 = vst [vmem:[#allocation82_spill] sm:$0xff] %v9411_v5  ;;  %7476 = vpow2.f32 %v3287_v63 }
 0x488   : > { %v9413_v31 = vpop.eup %7470 }
 0x489   : > { %3417 = vadd.xlane.f32.xlu1 %v9413_v31 }
 0x48a   : > { %v9416_v20 = vpop.xlane.xlu0 %3107  ;;  %v9418_v38 = vpop.xlane.xlu1 %3137 }
 0x48b   : > { %10765 = vst [vmem:[#allocation83_spill] sm:$0xff] %v9418_v38 }
 0x48c   : > { %v9420_v21 = vpop.eup %7472 }
 0x48d   : > { %3419 = vadd.xlane.f32.xlu0 %v9420_v21 }
 0x48e   : > { %v9423_v59 = vpop.xlane.xlu1 %3101  ;;  %v9425_v7 = vpop.xlane.xlu0 %3139 }
 0x48f   : > { %10766 = vst [vmem:[#allocation84_spill] sm:$0xff] %v9425_v7 }
 0x490   : > { %v9427_v4 = vpop.eup %7474 }
 0x491   : > { %3413 = vadd.xlane.f32.xlu1 %v9427_v4 }
 0x492   : > { %v9430_v5 = vpop.xlane.xlu1 %3133  ;;  %v9432_v63 = vpop.xlane.xlu0 %3103 }
 0x493   : > { %10767 = vst [vmem:[#allocation85_spill] sm:$0xff] %v9430_v5 }
 0x494   : > { %v9434_v54 = vpop.eup %7476 }
 0x495   : > { %3415 = vadd.xlane.f32.xlu0 %v9434_v54 }
 0x496   : > { %v3370_v38 = vpop.xlane.xlu1 %3369  ;;  %v9437_v43 = vpop.xlane.xlu0 %3135 }
 0x497   : > { %10768 = vst [vmem:[#allocation86_spill] sm:$0xff] %v9437_v43 }
 0x49a   : > { %v3366_v28 = vpop.xlane.xlu1 %3365  ;;  %v3372_v62 = vpop.xlane.xlu0 %3371 }
 0x49b   : > { %7478 = vrcp.f32 %v3372_v62 }
 0x49c   : > { %7480 = vrcp.f32 %v3366_v28 }
 0x49d   : > { %7482 = vrcp.f32 %v3370_v38 }
 0x49e   : > { %v3378_v7 = vpop.xlane.xlu1 %3377  ;;  %v3368_v52 = vpop.xlane.xlu0 %3367 }
 0x49f   : > { %7484 = vrcp.f32 %v3368_v52 }
 0x4a2   : > { %1718 = vrot.lane.b32.xlu1 %v8676_v36, %s8059_s25  ;;  %v3374_v5 = vpop.xlane.xlu1 %3373  ;;  %v3380_v51 = vpop.xlane.xlu0 %3379 }
 0x4a3   : > { %7486 = vrcp.f32 %v3380_v51 }
 0x4a4   : > { %7488 = vrcp.f32 %v3374_v5 }
 0x4a5   : > { %7490 = vrcp.f32 %v3378_v7 }
 0x4a6   : > { %v3386_v22 = vpop.xlane.xlu1 %3385  ;;  %v3376_v27 = vpop.xlane.xlu0 %3375 }
 0x4a7   : > { %7492 = vrcp.f32 %v3376_v27 }
 0x4a8   : > { %v7479_v43 = vpop.eup %7478 }
 0x4a9   : > { %v7481_v62 = vpop.eup %7480  ;;  %v3560_v38 = vmul.f32 %v7479_v43, %v9266_v57 }
 0x4aa   : > { %v3382_v48 = vpop.xlane.xlu1 %3381  ;;  %v3388_v9 = vpop.xlane.xlu0 %3387  ;;  %v3557_v7 = vmul.f32 %v7481_v62, %v9263_v49  ;;  %v3187_v49 = vsub.f32 %v9069_v18, %v9250_v56  ;;  %v3201_v62 = vsub.f32 %v9223_v15, %v9423_v59 }
 0x4ab   : > { %v7483_v28 = vpop.eup %7482  ;;  %7494 = vrcp.f32 %v3382_v48  ;;  %1716 = vrot.lane.b32.xlu0 %v8662_v24, %s8059_s25 }
 0x4ac   : > { %v7485_v52 = vpop.eup %7484  ;;  %7496 = vrcp.f32 %v3388_v9  ;;  %v3559_v48 = vmul.f32 %v7483_v28, %v9253_v30 }
 0x4ad   : > { %7498 = vrcp.f32 %v3386_v22  ;;  %v3558_v27 = vmul.f32 %v7485_v52, %v9272_v50  ;;  %v3267_v22 = vmul.f32 1.442695, %v3188_v47 }
 0x4ae   : > { %v9444_v51 = vpop.xlane.xlu1 %3145  ;;  %v3384_v5 = vpop.xlane.xlu0 %3383  ;;  %v3622_v42 = vpack.c.bf16 %v3560_v38, %v3559_v48 }
 0x4af   : > { %10769 = vst [vmem:[#allocation87_spill] sm:$0xff] %v9444_v51  ;;  %7500 = vrcp.f32 %v3384_v5  ;;  %v3621_v1 = vpack.c.bf16 %v3558_v27, %v3557_v7 }
 0x4b0   : > { %v7487_v40 = vpop.eup %7486 }
 0x4b1   : > { %6922 = vmatprep.mubr.bf16.mxu0 %v3621_v1  ;;  %v7489_v57 = vpop.eup %7488  ;;  %v3564_v3 = vmul.f32 %v7487_v40, %v9281_v55 }
 0x4b2   : > { %v9451_v9 = vpop.xlane.xlu1 %3141  ;;  %6923 = vmatmul.mubr.bf16.vlgmr.msra.gmra.mxu0 %v3622_v42  ;;  %v3390_v43 = vpop.xlane.xlu0 %3389  ;;  %v3561_v50 = vmul.f32 %v7489_v57, %v9284_v41  ;;  %v3265_v42 = vmul.f32 1.442695, %v3187_v49  ;;  %v3293_v41 = vmul.f32 1.442695, %v3201_v62  ;;  %v3204_v62 = vsub.f32 %v9231_v14, %v9416_v20 }
 0x4b3   : > { %v7491_v51 = vpop.eup %7490  ;;  %6971 = vmatpush3.bf16.msra.mxu0 %v9129_v61  ;;  %7502 = vrcp.f32 %v3390_v43 }
 0x4b4   : > { %v7493_v16 = vpop.eup %7492  ;;  %7504 = vpow2.f32 %v3267_v22  ;;  %v3563_v47 = vmul.f32 %v7491_v51, %v9275_v12 }
 0x4b5   : > { %v3562_v1 = vmul.f32 %v7493_v16, %v9290_v29  ;;  %v3202_v29 = vsub.f32 %v9245_v26, %v9432_v63 }
 0x4b6   : > { %v3392_v30 = vpop.xlane.xlu1 %3391  ;;  %v3624_v61 = vpack.c.bf16 %v3564_v3, %v3563_v47 }
 0x4b7   : > { %7506 = vrcp.f32 %v3392_v30  ;;  %v3623_v18 = vpack.c.bf16 %v3562_v1, %v3561_v50  ;;  %v3295_v51 = vmul.f32 1.442695, %v3202_v29  ;;  %v3203_v30 = vsub.f32 %v9215_v11, %v9409_v45 }
 0x4b8   : > { %v7495_v56 = vpop.eup %7494  ;;  %7508 = vpow2.f32 %v3265_v42 }
 0x4b9   : > { %v7497_v28 = vpop.eup %7496  ;;  %6926 = vmatprep.mubr.bf16.mxu0 %v3623_v18  ;;  %v3565_v12 = vmul.f32 %v7495_v56, %v9300_v37  ;;  %7510 = vpow2.f32 %v3293_v41  ;;  %v3297_v1 = vmul.f32 1.442695, %v3203_v30  ;;  %v3299_v56 = vmul.f32 1.442695, %v3204_v62 }
 0x4ba   : > { %v7499_v40 = vpop.eup %7498  ;;  %6927 = vmatmul.mubr.bf16.gmra.mxu0 %v3624_v61  ;;  %v3568_v15 = vmul.f32 %v7497_v28, %v9298_v53  ;;  %7512 = vpow2.f32 %v3295_v51 }
 0x4bb   : > { %v3567_v38 = vmul.f32 %v7499_v40, %v9292_v2  ;;  %v9476_v2 = vpop.xlane.xlu0 %3147  ;;  %7514 = vpow2.f32 %v3297_v1 }
 0x4bc   : > { %v7501_v55 = vpop.eup %7500  ;;  %7516 = vpow2.f32 %v3299_v56 }
 0x4bd   : > { %v3566_v52 = vmul.f32 %v7501_v55, %v9306_v0  ;;  %v3626_v5 = vpack.c.bf16 %v3568_v15, %v3567_v38 }
 0x4bf   : > { %v3625_v59 = vpack.c.bf16 %v3566_v52, %v3565_v12  ;;  %v9483_v22 = vpop.xlane.xlu0 %3143 }
 0x4c0   : > { %v7503_v7 = vpop.eup %7502 }
 0x4c1   : > { %6930 = vmatprep.mubr.bf16.mxu0 %v3625_v59  ;;  %v9468_v27 = vpop.eup %7504  ;;  %v3569_v26 = vmul.f32 %v7503_v7, %v9312_v34  ;;  %v9486_v34 = vpop.xlane.xlu1 %3153 }
 0x4c2   : > { %6931 = vmatmul.mubr.bf16.gmra.mxu0 %v3626_v5 }
 0x4c4   : > { %v7507_v48 = vpop.eup %7506 }
 0x4c5   : > { %v3570_v37 = vmul.f32 %v7507_v48, %v9318_v17  ;;  %v9473_v0 = vpop.eup %7508  ;;  %v9490_v17 = vpop.xlane.xlu0 %3155 }
 0x4c6   : > { %3395 = vadd.xlane.f32.xlu1 %v9468_v27  ;;  %v9478_v63 = vpop.eup %7510  ;;  %v9492_v43 = vpop.xlane.xlu1 %3149 }
 0x4c7   : > { %v3627_v53 = vpack.c.bf16 %v3570_v37, %v3569_v26  ;;  %v9481_v57 = vpop.eup %7512 }
 0x4c8   : > { %v9518_v61 = vpop.eup %7514 }
 0x4c9   : > { %6934 = vmatprep.mubr.bf16.mxu0 %v3627_v53  ;;  %v9494_v49 = vpop.xlane.xlu0 %3151  ;;  %v9521_v55 = vpop.eup %7516 }
 0x4ca   : > { %3393 = vadd.xlane.f32.xlu0 %v9473_v0  ;;  %v9496_v16 = vpop.xlane.xlu1 %3161 }
 0x4cd   : > { %v9498_v3 = vpop.xlane.xlu0 %3163 }
 0x4ce   : > { %3421 = vadd.xlane.f32.xlu0 %v9478_v63  ;;  %v9502_v50 = vpop.xlane.xlu1 %3157 }
 0x4d2   : > { %3423 = vadd.xlane.f32.xlu0 %v9481_v57  ;;  %v9508_v47 = vpop.xlane.xlu1 %3169 }
 0x4d6   : > { %v9514_v18 = vpop.xlane.xlu1 %3165 }
 0x4d7   : > { %1911 = vrot.lane.b32.xlu1 %v8662_v24, %s8060_s20  ;;  %v9506_v24 = vpop.xlane.xlu0 %3159 }
 0x4db   : > { %v9510_v42 = vpop.xlane.xlu0 %3171 }
 0x4df   : > { %v9516_v11 = vpop.xlane.xlu0 %3167 }
 0x4e8   : > { %1913 = vrot.lane.b32.xlu0 %v8676_v36, %s8060_s20 }
 0x4ef   : > { %v3402_v45 = vpop.xlane.xlu1 %3401 }
 0x4f3   : > { %v3404_v36 = vpop.xlane.xlu0 %3403 }
 0x4f4   : > { %7518 = vrcp.f32 %v3404_v36 }
 0x4fa   : > { %v3398_v28 = vpop.xlane.xlu1 %3397 }
 0x4fb   : > { %3425 = vadd.xlane.f32.xlu1 %v9518_v61  ;;  %7520 = vrcp.f32 %v3398_v28 }
 0x4fc   : > { %7522 = vrcp.f32 %v3402_v45 }
 0x4fe   : > { %v3400_v40 = vpop.xlane.xlu0 %3399 }
 0x4ff   : > { %7524 = vrcp.f32 %v3400_v40 }
 0x501   : > { %v7519_v20 = vpop.eup %7518 }
 0x502   : > { %v3410_v14 = vpop.xlane.xlu1 %3409  ;;  %v3576_v59 = vmul.f32 %v7519_v20, %v9367_v58 }
 0x506   : > { %v3412_v41 = vpop.xlane.xlu0 %3411 }
 0x507   : > { %3427 = vadd.xlane.f32.xlu0 %v9521_v55  ;;  %7526 = vrcp.f32 %v3412_v41 }
 0x508   : > { %v7521_v29 = vpop.eup %7520 }
 0x509   : > { %v7523_v52 = vpop.eup %7522  ;;  %v3573_v38 = vmul.f32 %v7521_v29, %v9376_v39 }
 0x50a   : > { %v3406_v12 = vpop.xlane.xlu1 %3405  ;;  %v3575_v7 = vmul.f32 %v7523_v52, %v9361_v32 }
 0x50b   : > { %7528 = vrcp.f32 %v3406_v12 }
 0x50c   : > { %1712 = vrot.lane.b32.xlu1 %v8634_v60, %s8059_s25  ;;  %v7525_v15 = vpop.eup %7524  ;;  %7530 = vrcp.f32 %v3410_v14  ;;  %v3630_v26 = vpack.c.bf16 %v3576_v59, %v3575_v7 }
 0x50d   : > { %v3574_v51 = vmul.f32 %v7525_v15, %v9382_v44 }
 0x50e   : > { %v3408_v5 = vpop.xlane.xlu0 %3407 }
 0x50f   : > { %7532 = vrcp.f32 %v3408_v5  ;;  %v3629_v48 = vpack.c.bf16 %v3574_v51, %v3573_v38  ;;  %v10772_v51 = vld [vmem:[#allocation74_spill] sm:$0xff]  ;;  %v10773_v5 = vld [vmem:[#allocation44_spill] sm:$0xff] }
 0x510   : > { %1907 = vrot.lane.b32.xlu1 %v8634_v60, %s8060_s20  ;;  %v3208_v7 = vsub.f32 %v10773_v5, %v10772_v51 }
 0x511   : > { %6954 = vmatprep.mubr.bf16.mxu1 %v3629_v48 }
 0x512   : > { %6955 = vmatmul.mubr.bf16.vlgmr.msra.gmra.mxu1 %v3630_v26  ;;  %v3418_v58 = vpop.xlane.xlu1 %3417  ;;  %v3307_v26 = vmul.f32 1.442695, %v3208_v7 }
 0x513   : > { %7003 = vmatpush3.bf16.msra.mxu1 %v9144_v46 }
 0x514   : > { %1909 = vrot.lane.b32.xlu1 %v8648_v8, %s8060_s20  ;;  %v7527_v39 = vpop.eup %7526 }
 0x515   : > { %v3580_v1 = vmul.f32 %v7527_v39, %v9394_v25  ;;  %v3206_v25 = vsub.f32 %v9168_v19, %v9364_v6  ;;  %v10775_v39 = vld [vmem:[#allocation43_spill] sm:$0xff] }
 0x516   : > { %v3420_v44 = vpop.xlane.xlu0 %3419 }
 0x517   : > { %7534 = vrcp.f32 %v3420_v44 }
 0x518   : > { %v7529_v53 = vpop.eup %7528 }
 0x519   : > { %v7531_v30 = vpop.eup %7530  ;;  %v3577_v46 = vmul.f32 %v7529_v53, %v9400_v10  ;;  %v3303_v10 = vmul.f32 1.442695, %v3206_v25 }
 0x51a   : > { %v3414_v37 = vpop.xlane.xlu1 %3413  ;;  %v3579_v45 = vmul.f32 %v7531_v30, %v9388_v35 }
 0x51b   : > { %7536 = vrcp.f32 %v3414_v37 }
 0x51c   : > { %v7533_v32 = vpop.eup %7532  ;;  %7538 = vrcp.f32 %v3418_v58  ;;  %v3632_v28 = vpack.c.bf16 %v3580_v1, %v3579_v45  ;;  %v10774_v58 = vld [vmem:[#allocation73_spill] sm:$0xff] }
 0x51d   : > { %1714 = vrot.lane.b32.xlu0 %v8648_v8, %s8059_s25  ;;  %v3578_v62 = vmul.f32 %v7533_v32, %v9406_v13  ;;  %v3205_v13 = vsub.f32 %v9158_v33, %v9358_v23  ;;  %v3207_v44 = vsub.f32 %v10775_v39, %v10774_v58  ;;  %v10776_v32 = vld [vmem:[#allocation58_spill] sm:$0xff] }
 0x51e   : > { %v1719_v60 = vpop.permute.xlu1 %1718  ;;  %v3416_v56 = vpop.xlane.xlu0 %3415  ;;  %v3221_v1 = vsub.f32 %v10776_v32, %v9451_v9 }
 0x51f   : > { %1754 = vst.msk [vmem:[#allocation4 + $0xb4] sm:$0xf] %vm1190_vm0, %v1719_v60  ;;  %7540 = vrcp.f32 %v3416_v56  ;;  %v3631_v36 = vpack.c.bf16 %v3578_v62, %v3577_v46  ;;  %v3301_v20 = vmul.f32 1.442695, %v3205_v13  ;;  %v3305_v30 = vmul.f32 1.442695, %v3207_v44 }
 0x520   : > { %7542 = vpow2.f32 %v3303_v10  ;;  %v3333_v45 = vmul.f32 1.442695, %v3221_v1  ;;  %v10778_v1 = vld [vmem:[#allocation87_spill] sm:$0xff] }
 0x521   : > { %6958 = vmatprep.mubr.bf16.mxu1 %v3631_v36  ;;  %7544 = vpow2.f32 %v3301_v20  ;;  %v10777_v36 = vld [vmem:[#allocation60_spill] sm:$0xff] }
 0x522   : > { %6959 = vmatmul.mubr.bf16.gmra.mxu1 %v3632_v28  ;;  %v1717_v8 = vpop.permute.xlu0 %1716  ;;  %v3222_v28 = vsub.f32 %v10777_v36, %v9483_v22 }
 0x523   : > { %1753 = vst.msk [vmem:[#allocation4 + $0xb0] sm:$0xf] %vm1190_vm0, %v1717_v8 }
 0x524   : > { %v7535_v40 = vpop.eup %7534  ;;  %v3335_v10 = vmul.f32 1.442695, %v3222_v28 }
 0x525   : > { %v3584_v12 = vmul.f32 %v7535_v40, %v9420_v21  ;;  %v10770_v21 = vld [vmem:[#allocation42_spill] sm:$0xff] }
 0x528   : > { %v7537_v14 = vpop.eup %7536 }
 0x529   : > { %v7539_v41 = vpop.eup %7538  ;;  %v3581_v19 = vmul.f32 %v7537_v14, %v9427_v4 }
 0x52a   : > { %v7356_v35 = vld [vmem:[#allocation4 + $0xb0] sm:$0xff]   ;;  %v3583_v52 = vmul.f32 %v7539_v41, %v9413_v31 }
 0x52b   : > { %6972 = vmatprep.subr.bf16.mxu0 %v7356_v35 }
 0x52c   : > { %v7541_v29 = vpop.eup %7540  ;;  %6973 = vmatpush3.bf16.msra.mxu0 %v7356_v35  ;;  %v3634_v23 = vpack.c.bf16 %v3584_v12, %v3583_v52 }
 0x52d   : > { %v3582_v6 = vmul.f32 %v7541_v29, %v9434_v54  ;;  %v9551_v33 = vpop.eup %7542  ;;  %v10771_v54 = vld [vmem:[#allocation41_spill] sm:$0xff] }
 0x52e   : > { %v9554_v59 = vpop.eup %7544 }
 0x52f   : > { %v3633_v15 = vpack.c.bf16 %v3582_v6, %v3581_v19 }
 0x531   : > { %6962 = vmatprep.mubr.bf16.mxu1 %v3633_v15 }
 0x532   : > { %6963 = vmatmul.mubr.bf16.gmra.mxu1 %v3634_v23 }
 0x538   : > { %3431 = vadd.xlane.f32.xlu1 %v9551_v33 }
 0x53c   : > { %3429 = vadd.xlane.f32.xlu0 %v9554_v59 }
 0x549   : > { %1710 = vrot.lane.b32.xlu1 %v10770_v21, %s8059_s25 }
 0x54f   : > { %v3396_v4 = vpop.xlane.xlu1 %3395 }
 0x550   : > { %7546 = vrcp.f32 %v3396_v4 }
 0x552   : > { %1708 = vrot.lane.b32.xlu0 %v10771_v54, %s8059_s25 }
 0x553   : > { %v1912_v31 = vpop.permute.xlu1 %1911  ;;  %v3394_v38 = vpop.xlane.xlu0 %3393 }
 0x554   : > { %1948 = vst.msk [vmem:[#allocation4 + $0xf0] sm:$0xf] %vm1190_vm0, %v1912_v31  ;;  %7548 = vrcp.f32 %v3394_v38 }
 0x557   : > { %v3422_v48 = vpop.xlane.xlu0 %3421 }
 0x558   : > { %7550 = vrcp.f32 %v3422_v48 }
 0x55b   : > { %v3424_v37 = vpop.xlane.xlu0 %3423 }
 0x55c   : > { %7552 = vrcp.f32 %v3424_v37 }
 0x55d   : > { %7554 = vpow2.f32 %v3307_v26  ;;  %v7547_v53 = vpop.eup %7546 }
 0x55e   : > { %v3572_v56 = vmul.f32 %v7547_v53, %v9468_v27  ;;  %7556 = vpow2.f32 %v3305_v30 }
 0x55f   : > { %v1914_v60 = vpop.permute.xlu0 %1913  ;;  %7558 = vpow2.f32 %v3333_v45 }
 0x560   : > { %1949 = vst.msk [vmem:[#allocation4 + $0xf4] sm:$0xf] %vm1190_vm0, %v1914_v60  ;;  %7560 = vpow2.f32 %v3335_v10  ;;  %v10779_v60 = vld [vmem:[#allocation57_spill] sm:$0xff] }
 0x561   : > { %v7549_v46 = vpop.eup %7548 }
 0x562   : > { %v3571_v62 = vmul.f32 %v7549_v46, %v9473_v0  ;;  %v3223_v46 = vsub.f32 %v10779_v60, %v10778_v1 }
 0x564   : > { %v3628_v25 = vpack.c.bf16 %v3572_v56, %v3571_v62  ;;  %v3337_v56 = vmul.f32 1.442695, %v3223_v46  ;;  %v10791_v46 = vld [vmem:[#allocation34_spill] sm:$0xff] }
 0x565   : > { %v7551_v8 = vpop.eup %7550 }
 0x566   : > { %6935 = vmatmul.mubr.bf16.gmra.mxu0 %v3628_v25  ;;  %v3585_v40 = vmul.f32 %v7551_v8, %v9478_v63  ;;  %v10780_v8 = vld [vmem:[#allocation59_spill] sm:$0xff] }
 0x567   : > { %v7357_v13 = vld [vmem:[#allocation4 + $0xf0] sm:$0xff]   ;;  %v3224_v10 = vsub.f32 %v10780_v8, %v9476_v2 }
 0x568   : > { %7004 = vmatprep.subr.bf16.mxu1 %v7357_v13 }
 0x569   : > { %v7553_v9 = vpop.eup %7552  ;;  %7005 = vmatpush3.bf16.msra.mxu1 %v7357_v13 }
 0x56a   : > { %v3586_v0 = vmul.f32 %v7553_v9, %v9481_v57  ;;  %v9575_v14 = vpop.eup %7554  ;;  %v3339_v9 = vmul.f32 1.442695, %v3224_v10 }
 0x56b   : > { %v9578_v22 = vpop.eup %7556 }
 0x56c   : > { %v3635_v27 = vpack.c.bf16 %v3586_v0, %v3585_v40  ;;  %v9581_v41 = vpop.eup %7558 }
 0x56d   : > { %3435 = vadd.xlane.f32.xlu1 %v9575_v14  ;;  %v9586_v19 = vpop.eup %7560 }
 0x56e   : > { %6966 = vmatprep.mubr.bf16.mxu1 %v3635_v27 }
 0x571   : > { %3433 = vadd.xlane.f32.xlu0 %v9578_v22 }
 0x572   : > { %v6924_v20 = vpop.f32.mrf.mxu0 }
 0x573   : > { %v6459_v35 = vpack.c.bf16 %v6924_v20, %v6924_v20 }
 0x574   : > { %v3735_v29 = vpop.f32.mrf.mxu0 }
 0x575   : > { %4299 = vst.msk [vmem:[#allocation5 + $0x8] sm:$0xf] %vm1190_vm0, %v6459_v35  ;;  %v6457_v63 = vpack.c.bf16 %v3735_v29, %v3735_v29  ;;  %3461 = vadd.xlane.f32.xlu0 %v9581_v41  ;;  %v10781_v29 = vld [vmem:[#allocation39_spill] sm:$0xff] }
 0x576   : > { %v6925_v57 = vpop.f32.mrf.mxu0 }
 0x577   : > { %4297 = vst.msk [vmem:[#allocation5] sm:$0xf] %vm1190_vm0, %v6457_v63  ;;  %v6460_v12 = vpack.c.bf16 %v6925_v57, %v6925_v57 }
 0x578   : > { %v3738_v6 = vpop.f32.mrf.mxu0 }
 0x579   : > { %4300 = vst.msk [vmem:[#allocation5 + $0xc] sm:$0xf] %vm1190_vm0, %v6460_v12  ;;  %v6458_v52 = vpack.c.bf16 %v3738_v6, %v3738_v6  ;;  %3463 = vadd.xlane.f32.xlu0 %v9586_v19  ;;  %v10784_v6 = vld [vmem:[#allocation36_spill] sm:$0xff] }
 0x57a   : > { %v6928_v15 = vpop.f32.mrf.mxu0 }
 0x57b   : > { %4298 = vst.msk [vmem:[#allocation5 + $0x4] sm:$0xf] %vm1190_vm0, %v6458_v52  ;;  %v6463_v23 = vpack.c.bf16 %v6928_v15, %v6928_v15  ;;  %v10785_v52 = vld [vmem:[#allocation37_spill] sm:$0xff] }
 0x57c   : > { %v3751_v4 = vpop.f32.mrf.mxu0 }
 0x57d   : > { %4303 = vst.msk [vmem:[#allocation5 + $0x18] sm:$0xf] %vm1190_vm0, %v6463_v23  ;;  %v6461_v31 = vpack.c.bf16 %v3751_v4, %v3751_v4  ;;  %v10786_v23 = vld [vmem:[#allocation35_spill] sm:$0xff] }
 0x57e   : > { %1903 = vrot.lane.b32.xlu1 %v10771_v54, %s8060_s20  ;;  %v6929_v38 = vpop.f32.mrf.mxu0 }
 0x57f   : > { %4301 = vst.msk [vmem:[#allocation5 + $0x10] sm:$0xf] %vm1190_vm0, %v6461_v31  ;;  %v6464_v51 = vpack.c.bf16 %v6929_v38, %v6929_v38 }
 0x580   : > { %v3754_v5 = vpop.f32.mrf.mxu0 }
 0x581   : > { %4304 = vst.msk [vmem:[#allocation5 + $0x1c] sm:$0xf] %vm1190_vm0, %v6464_v51  ;;  %v6462_v7 = vpack.c.bf16 %v3754_v5, %v3754_v5 }
 0x582   : > { %v6932_v48 = vpop.f32.mrf.mxu0 }
 0x583   : > { %4302 = vst.msk [vmem:[#allocation5 + $0x14] sm:$0xf] %vm1190_vm0, %v6462_v7  ;;  %v6467_v26 = vpack.c.bf16 %v6932_v48, %v6932_v48  ;;  %v10787_v48 = vld [vmem:[#allocation78_spill] sm:$0xff] }
 0x584   : > { %v3426_v58 = vpop.xlane.xlu1 %3425  ;;  %v3767_v39 = vpop.f32.mrf.mxu0 }
 0x585   : > { %4307 = vst.msk [vmem:[#allocation5 + $0x28] sm:$0xf] %vm1190_vm0, %v6467_v26  ;;  %v6465_v44 = vpack.c.bf16 %v3767_v39, %v3767_v39  ;;  %7562 = vrcp.f32 %v3426_v58  ;;  %v10788_v26 = vld [vmem:[#allocation48_spill] sm:$0xff] }
 0x586   : > { %v6933_v37 = vpop.f32.mrf.mxu0  ;;  %v3210_v58 = vsub.f32 %v10788_v26, %v10787_v48 }
 0x587   : > { %4305 = vst.msk [vmem:[#allocation5 + $0x20] sm:$0xf] %vm1190_vm0, %v6465_v44  ;;  %v6468_v54 = vpack.c.bf16 %v6933_v37, %v6933_v37  ;;  %v10789_v44 = vld [vmem:[#allocation77_spill] sm:$0xff]  ;;  %v10790_v37 = vld [vmem:[#allocation46_spill] sm:$0xff] }
 0x588   : > { %v1713_v53 = vpop.permute.xlu1 %1712  ;;  %v3770_v30 = vpop.f32.mrf.mxu0  ;;  %v3311_v39 = vmul.f32 1.442695, %v3210_v58 }
 0x589   : > { %1751 = vst.msk [vmem:[#allocation4 + $0xa8] sm:$0xf] %vm1190_vm0, %v1713_v53  ;;  %4308 = vst.msk [vmem:[#allocation5 + $0x2c] sm:$0xf] %vm1190_vm0, %v6468_v54  ;;  %v6466_v32 = vpack.c.bf16 %v3770_v30, %v3770_v30  ;;  %v3209_v54 = vsub.f32 %v10790_v37, %v10789_v44 }
 0x58b   : > { %4306 = vst.msk [vmem:[#allocation5 + $0x24] sm:$0xf] %vm1190_vm0, %v6466_v32  ;;  %v3309_v53 = vmul.f32 1.442695, %v3209_v54 }
 0x58c   : > { %v1908_v62 = vpop.permute.xlu1 %1907 }
 0x58d   : > { %1946 = vst.msk [vmem:[#allocation4 + $0xe8] sm:$0xf] %vm1190_vm0, %v1908_v62 }
 0x58f   : > { %1905 = vrot.lane.b32.xlu0 %v10770_v21, %s8060_s20 }
 0x590   : > { %v1910_v45 = vpop.permute.xlu1 %1909  ;;  %v3428_v36 = vpop.xlane.xlu0 %3427 }
 0x591   : > { %1947 = vst.msk [vmem:[#allocation4 + $0xec] sm:$0xf] %vm1190_vm0, %v1910_v45  ;;  %7564 = vrcp.f32 %v3428_v36  ;;  %v10792_v45 = vld [vmem:[#allocation33_spill] sm:$0xff]  ;;  %v10793_v36 = vld [vmem:[#allocation76_spill] sm:$0xff] }
 0x592   : > { %7566 = vpow2.f32 %v3337_v56  ;;  %v7563_v13 = vpop.eup %7562 }
 0x593   : > { %v3587_v21 = vmul.f32 %v7563_v13, %v9518_v61  ;;  %7568 = vpow2.f32 %v3339_v9  ;;  %v10782_v61 = vld [vmem:[#allocation40_spill] sm:$0xff] }
 0x594   : > { %v1715_v28 = vpop.permute.xlu0 %1714 }
 0x595   : > { %1752 = vst.msk [vmem:[#allocation4 + $0xac] sm:$0xf] %vm1190_vm0, %v1715_v28  ;;  %v10794_v28 = vld [vmem:[#allocation47_spill] sm:$0xff] }
 0x598   : > { %v7358_v25 = vld [vmem:[#allocation4 + $0xe8] sm:$0xff]  }
 0x599   : > { %7006 = vmatprep.subr.bf16.mxu1 %v7358_v25 }
 0x59a   : > { %7007 = vmatpush3.bf16.msra.mxu1 %v7358_v25  ;;  %v3212_v25 = vsub.f32 %v10794_v28, %v10793_v36 }
 0x59c   : > { %v7359_v40 = vld [vmem:[#allocation4 + $0xa8] sm:$0xff]   ;;  %v3315_v9 = vmul.f32 1.442695, %v3212_v25 }
 0x59d   : > { %6974 = vmatprep.subr.bf16.mxu0 %v7359_v40  ;;  %v10800_v25 = vld [vmem:[#allocation81_spill] sm:$0xff] }
 0x59e   : > { %v7565_v0 = vpop.eup %7564  ;;  %6975 = vmatpush3.bf16.msra.mxu0 %v7359_v40 }
 0x59f   : > { %v3588_v27 = vmul.f32 %v7565_v0, %v9521_v55  ;;  %v9613_v20 = vpop.eup %7566  ;;  %v10783_v55 = vld [vmem:[#allocation38_spill] sm:$0xff] }
 0x5a0   : > { %v9616_v2 = vpop.eup %7568 }
 0x5a1   : > { %v3636_v35 = vpack.c.bf16 %v3588_v27, %v3587_v21  ;;  %v10795_v21 = vld [vmem:[#allocation75_spill] sm:$0xff]  ;;  %v10796_v27 = vld [vmem:[#allocation45_spill] sm:$0xff] }
 0x5a2   : > { %3465 = vadd.xlane.f32.xlu1 %v9613_v20 }
 0x5a3   : > { %6967 = vmatmul.mubr.bf16.gmra.mxu1 %v3636_v35  ;;  %v3211_v35 = vsub.f32 %v10796_v27, %v10795_v21  ;;  %v10803_v21 = vld [vmem:[#allocation49_spill] sm:$0xff] }
 0x5ae   : > { %3467 = vadd.xlane.f32.xlu0 %v9616_v2 }
 0x5b3   : > { %1704 = vrot.lane.b32.xlu1 %v10781_v29, %s8059_s25 }
 0x5b7   : > { %1899 = vrot.lane.b32.xlu1 %v10781_v29, %s8060_s20 }
 0x5bb   : > { %1901 = vrot.lane.b32.xlu1 %v10782_v61, %s8060_s20 }
 0x5bf   : > { %1702 = vrot.lane.b32.xlu1 %v10783_v55, %s8059_s25 }
 0x5c1   : > { %v3432_v63 = vpop.xlane.xlu1 %3431 }
 0x5c2   : > { %7570 = vrcp.f32 %v3432_v63 }
 0x5c3   : > { %1897 = vrot.lane.b32.xlu1 %v10783_v55, %s8060_s20  ;;  %v10797_v55 = vld [vmem:[#allocation62_spill] sm:$0xff] }
 0x5c4   : > { %1706 = vrot.lane.b32.xlu0 %v10782_v61, %s8059_s25  ;;  %v3313_v61 = vmul.f32 1.442695, %v3211_v35  ;;  %v3225_v63 = vsub.f32 %v10797_v55, %v9492_v43  ;;  %v10804_v55 = vld [vmem:[#allocation66_spill] sm:$0xff] }
 0x5c5   : > { %v1711_v57 = vpop.permute.xlu1 %1710  ;;  %v3430_v12 = vpop.xlane.xlu0 %3429 }
 0x5c6   : > { %1750 = vst.msk [vmem:[#allocation4 + $0xa4] sm:$0xf] %vm1190_vm0, %v1711_v57  ;;  %7572 = vrcp.f32 %v3430_v12  ;;  %v3341_v57 = vmul.f32 1.442695, %v3225_v63  ;;  %v10798_v12 = vld [vmem:[#allocation64_spill] sm:$0xff]  ;;  %v3229_v63 = vsub.f32 %v10804_v55, %v9502_v50  ;;  %v10810_v50 = vld [vmem:[#allocation54_spill] sm:$0xff] }
 0x5c7   : > { %1698 = vrot.lane.b32.xlu1 %v10784_v6, %s8059_s25  ;;  %7574 = vpow2.f32 %v3311_v39 }
 0x5c8   : > { %1700 = vrot.lane.b32.xlu0 %v10785_v52, %s8059_s25  ;;  %7576 = vpow2.f32 %v3309_v53 }
 0x5c9   : > { %v1709_v15 = vpop.permute.xlu0 %1708 }
 0x5ca   : > { %1749 = vst.msk [vmem:[#allocation4 + $0xa0] sm:$0xf] %vm1190_vm0, %v1709_v15 }
 0x5cb   : > { %1893 = vrot.lane.b32.xlu1 %v10784_v6, %s8060_s20  ;;  %v3226_v6 = vsub.f32 %v10798_v12, %v9494_v49 }
 0x5cc   : > { %1895 = vrot.lane.b32.xlu0 %v10785_v52, %s8060_s20 }
 0x5cd   : > { %v3343_v52 = vmul.f32 1.442695, %v3226_v6 }
 0x5cf   : > { %v7571_v4 = vpop.eup %7570 }
 0x5d0   : > { %1696 = vrot.lane.b32.xlu0 %v10786_v23, %s8059_s25  ;;  %v3590_v5 = vmul.f32 %v7571_v4, %v9551_v33 }
 0x5d1   : > { %v7360_v31 = vld [vmem:[#allocation4 + $0xa0] sm:$0xff]  }
 0x5d2   : > { %6976 = vmatprep.subr.bf16.mxu0 %v7360_v31 }
 0x5d3   : > { %v7573_v38 = vpop.eup %7572  ;;  %6977 = vmatpush3.bf16.msra.mxu0 %v7360_v31 }
 0x5d4   : > { %1891 = vrot.lane.b32.xlu0 %v10786_v23, %s8060_s20  ;;  %v3589_v51 = vmul.f32 %v7573_v38, %v9554_v59  ;;  %v9651_v30 = vpop.eup %7574 }
 0x5d5   : > { %v9654_v32 = vpop.eup %7576 }
 0x5d6   : > { %v3637_v7 = vpack.c.bf16 %v3590_v5, %v3589_v51 }
 0x5d8   : > { %6986 = vmatprep.mubr.bf16.mxu0 %v3637_v7 }
 0x5ef   : > { %3439 = vadd.xlane.f32.xlu1 %v9651_v30 }
 0x5f3   : > { %3437 = vadd.xlane.f32.xlu0 %v9654_v32 }
 0x5f6   : > { %v9657_v33 = vpop.xlane.xlu1 %3435 }
 0x5fa   : > { %v1904_v59 = vpop.permute.xlu1 %1903  ;;  %v9660_v1 = vpop.xlane.xlu0 %3433 }
 0x5fb   : > { %1944 = vst.msk [vmem:[#allocation4 + $0xe0] sm:$0xf] %vm1190_vm0, %v1904_v59 }
 0x5fe   : > { %v3462_v60 = vpop.xlane.xlu0 %3461 }
 0x5ff   : > { %7578 = vrcp.f32 %v3462_v60 }
 0x600   : > { %1694 = vrot.lane.b32.xlu1 %v10791_v46, %s8059_s25 }
 0x602   : > { %v3464_v62 = vpop.xlane.xlu0 %3463 }
 0x603   : > { %7580 = vrcp.f32 %v3464_v62  ;;  %v10799_v62 = vld [vmem:[#allocation61_spill] sm:$0xff] }
 0x604   : > { %7582 = vpow2.f32 %v3315_v9 }
 0x605   : > { %7584 = vpow2.f32 %v3313_v61 }
 0x606   : > { %v1906_v56 = vpop.permute.xlu0 %1905  ;;  %7586 = vpow2.f32 %v3341_v57  ;;  %v10805_v57 = vld [vmem:[#allocation63_spill] sm:$0xff] }
 0x607   : > { %1945 = vst.msk [vmem:[#allocation4 + $0xe4] sm:$0xf] %vm1190_vm0, %v1906_v56  ;;  %7588 = vpow2.f32 %v3343_v52  ;;  %v3227_v56 = vsub.f32 %v10799_v62, %v9486_v34  ;;  %v3228_v12 = vsub.f32 %v10805_v57, %v9490_v17  ;;  %v10806_v52 = vld [vmem:[#allocation65_spill] sm:$0xff] }
 0x609   : > { %1692 = vrot.lane.b32.xlu0 %v10792_v45, %s8059_s25 }
 0x60c   : > { %v7579_v8 = vpop.eup %7578 }
 0x60d   : > { %v3605_v40 = vmul.f32 %v7579_v8, %v9581_v41  ;;  %v10801_v8 = vld [vmem:[#allocation50_spill] sm:$0xff] }
 0x60e   : > { %v7361_v10 = vld [vmem:[#allocation4 + $0xe0] sm:$0xff]  }
 0x60f   : > { %7008 = vmatprep.subr.bf16.mxu1 %v7361_v10 }
 0x610   : > { %v7581_v13 = vpop.eup %7580  ;;  %7009 = vmatpush3.bf16.msra.mxu1 %v7361_v10  ;;  %v3213_v10 = vsub.f32 %v10801_v8, %v10800_v25  ;;  %v10816_v8 = vld [vmem:[#allocation70_spill] sm:$0xff] }
 0x611   : > { %v3606_v0 = vmul.f32 %v7581_v13, %v9586_v19  ;;  %v9677_v41 = vpop.eup %7582  ;;  %v3345_v13 = vmul.f32 1.442695, %v3227_v56 }
 0x612   : > { %v9680_v15 = vpop.eup %7584  ;;  %v3317_v35 = vmul.f32 1.442695, %v3213_v10  ;;  %v3233_v10 = vsub.f32 %v10816_v8, %v9514_v18 }
 0x613   : > { %v3645_v29 = vpack.c.bf16 %v3606_v0, %v3605_v40  ;;  %v9686_v49 = vpop.eup %7586  ;;  %v10802_v0 = vld [vmem:[#allocation79_spill] sm:$0xff]  ;;  %7590 = vpow2.f32 %v3345_v13 }
 0x614   : > { %v9691_v26 = vpop.eup %7588  ;;  %v3215_v27 = vsub.f32 %v10803_v21, %v10802_v0  ;;  %7592 = vpow2.f32 %v3317_v35  ;;  %v10818_v0 = vld [vmem:[#allocation69_spill] sm:$0xff]  ;;  %v3357_v21 = vmul.f32 1.442695, %v3233_v10  ;;  %v10819_v35 = vld [vmem:[#allocation86_spill] sm:$0xff] }
 0x615   : > { %7018 = vmatprep.mubr.bf16.mxu1 %v3645_v29 }
 0x620   : > { %v9729_v17 = vpop.eup %7590 }
 0x621   : > { %v9736_v56 = vpop.eup %7592 }
 0x624   : > { %3443 = vadd.xlane.f32.xlu1 %v9677_v41 }
 0x626   : > { %v6936_v19 = vpop.f32.mrf.mxu0 }
 0x627   : > { %v6471_v23 = vpack.c.bf16 %v6936_v19, %v6936_v19  ;;  %v3231_v19 = vsub.f32 %v10806_v52, %v9496_v16 }
 0x628   : > { %3441 = vadd.xlane.f32.xlu0 %v9680_v15  ;;  %v3783_v4 = vpop.f32.mrf.mxu0 }
 0x629   : > { %4311 = vst.msk [vmem:[#allocation5 + $0x38] sm:$0xf] %vm1190_vm0, %v6471_v23  ;;  %v6469_v43 = vpack.c.bf16 %v3783_v4, %v3783_v4  ;;  %v3349_v23 = vmul.f32 1.442695, %v3229_v63  ;;  %v10807_v4 = vld [vmem:[#allocation82_spill] sm:$0xff]  ;;  %v10821_v63 = vld [vmem:[#allocation84_spill] sm:$0xff] }
 0x62a   : > { %v6937_v31 = vpop.f32.mrf.mxu0 }
 0x62b   : > { %v9684_v38 = vpop.xlane.xlu1 %3465  ;;  %4309 = vst.msk [vmem:[#allocation5 + $0x30] sm:$0xf] %vm1190_vm0, %v6469_v43  ;;  %v6472_v51 = vpack.c.bf16 %v6937_v31, %v6937_v31  ;;  %v10808_v43 = vld [vmem:[#allocation52_spill] sm:$0xff] }
 0x62c   : > { %3469 = vadd.xlane.f32.xlu0 %v9686_v49  ;;  %v3786_v5 = vpop.f32.mrf.mxu0  ;;  %v3214_v31 = vsub.f32 %v10808_v43, %v10807_v4 }
 0x62d   : > { %4312 = vst.msk [vmem:[#allocation5 + $0x3c] sm:$0xf] %vm1190_vm0, %v6472_v51  ;;  %v6470_v7 = vpack.c.bf16 %v3786_v5, %v3786_v5  ;;  %v3347_v51 = vmul.f32 1.442695, %v3228_v12 }
 0x62e   : > { %v3319_v16 = vmul.f32 1.442695, %v3214_v31 }
 0x62f   : > { %v1705_v48 = vpop.permute.xlu1 %1704  ;;  %4310 = vst.msk [vmem:[#allocation5 + $0x34] sm:$0xf] %vm1190_vm0, %v6470_v7  ;;  %v10809_v7 = vld [vmem:[#allocation85_spill] sm:$0xff] }
 0x630   : > { %1747 = vst.msk [vmem:[#allocation4 + $0x98] sm:$0xf] %vm1190_vm0, %v1705_v48  ;;  %3471 = vadd.xlane.f32.xlu0 %v9691_v26  ;;  %v3217_v48 = vsub.f32 %v10810_v50, %v10809_v7 }
 0x632   : > { %v3325_v62 = vmul.f32 1.442695, %v3217_v48 }
 0x633   : > { %v1900_v58 = vpop.permute.xlu1 %1899 }
 0x634   : > { %1942 = vst.msk [vmem:[#allocation4 + $0xd8] sm:$0xf] %vm1190_vm0, %v1900_v58  ;;  %v3353_v58 = vmul.f32 1.442695, %v3231_v19 }
 0x635   : > { %1887 = vrot.lane.b32.xlu1 %v10792_v45, %s8060_s20 }
 0x637   : > { %v1902_v39 = vpop.permute.xlu1 %1901  ;;  %v9700_v44 = vpop.xlane.xlu0 %3467 }
 0x638   : > { %1943 = vst.msk [vmem:[#allocation4 + $0xdc] sm:$0xf] %vm1190_vm0, %v1902_v39  ;;  %v10811_v39 = vld [vmem:[#allocation80_spill] sm:$0xff] }
 0x63b   : > { %v1703_v37 = vpop.permute.xlu1 %1702  ;;  %v1707_v54 = vpop.permute.xlu0 %1706 }
 0x63c   : > { %1746 = vst.msk [vmem:[#allocation4 + $0x94] sm:$0xf] %vm1190_vm0, %v1703_v37  ;;  %1748 = vst.msk [vmem:[#allocation4 + $0x9c] sm:$0xf] %vm1190_vm0, %v1707_v54  ;;  %v10812_v37 = vld [vmem:[#allocation51_spill] sm:$0xff] }
 0x63d   : > { %v3216_v54 = vsub.f32 %v10812_v37, %v10811_v39 }
 0x63f   : > { %v1898_v53 = vpop.permute.xlu1 %1897  ;;  %v7362_v59 = vld [vmem:[#allocation4 + $0xd8] sm:$0xff]   ;;  %v1701_v60 = vpop.permute.xlu0 %1700 }
 0x640   : > { %1941 = vst.msk [vmem:[#allocation4 + $0xd4] sm:$0xf] %vm1190_vm0, %v1898_v53  ;;  %1745 = vst.msk [vmem:[#allocation4 + $0x90] sm:$0xf] %vm1190_vm0, %v1701_v60  ;;  %7010 = vmatprep.subr.bf16.mxu1 %v7362_v59  ;;  %v10813_v53 = vld [vmem:[#allocation83_spill] sm:$0xff] }
 0x641   : > { %7011 = vmatpush3.bf16.msra.mxu1 %v7362_v59  ;;  %v10814_v59 = vld [vmem:[#allocation53_spill] sm:$0xff] }
 0x642   : > { %v3219_v60 = vsub.f32 %v10814_v59, %v10813_v53 }
 0x643   : > { %v1699_v45 = vpop.permute.xlu1 %1698  ;;  %v1896_v36 = vpop.permute.xlu0 %1895  ;;  %v7363_v28 = vld [vmem:[#allocation4 + $0x98] sm:$0xff]  }
 0x644   : > { %1744 = vst.msk [vmem:[#allocation4 + $0x8c] sm:$0xf] %vm1190_vm0, %v1699_v45  ;;  %1940 = vst.msk [vmem:[#allocation4 + $0xd0] sm:$0xf] %vm1190_vm0, %v1896_v36  ;;  %6978 = vmatprep.subr.bf16.mxu0 %v7363_v28  ;;  %v3323_v45 = vmul.f32 1.442695, %v3216_v54 }
 0x645   : > { %6979 = vmatpush3.bf16.msra.mxu0 %v7363_v28  ;;  %v10815_v36 = vld [vmem:[#allocation68_spill] sm:$0xff]  ;;  %v3329_v25 = vmul.f32 1.442695, %v3219_v60  ;;  %v6956_v60 = vpop.f32.mrf.mxu1 }
 0x646   : > { %1889 = vrot.lane.b32.xlu0 %v10791_v46, %s8060_s20  ;;  %v3321_v46 = vmul.f32 1.442695, %v3215_v27  ;;  %v3230_v28 = vsub.f32 %v10815_v36, %v9506_v24  ;;  %v3235_v24 = vsub.f32 %v10818_v0, %v9508_v47  ;;  %v10822_v47 = vld [vmem:[#allocation55_spill] sm:$0xff] }
 0x647   : > { %v1894_v9 = vpop.permute.xlu1 %1893  ;;  %v1697_v34 = vpop.permute.xlu0 %1696  ;;  %v7364_v40 = vld [vmem:[#allocation4 + $0x90] sm:$0xff]   ;;  %v3220_v57 = vsub.f32 %v10822_v47, %v10821_v63 }
 0x648   : > { %1939 = vst.msk [vmem:[#allocation4 + $0xcc] sm:$0xf] %vm1190_vm0, %v1894_v9  ;;  %1743 = vst.msk [vmem:[#allocation4 + $0x88] sm:$0xf] %vm1190_vm0, %v1697_v34  ;;  %6980 = vmatprep.subr.bf16.mxu0 %v7364_v40  ;;  %7594 = vpow2.f32 %v3321_v46  ;;  %v10817_v9 = vld [vmem:[#allocation67_spill] sm:$0xff] }
 0x649   : > { %6981 = vmatpush3.bf16.msra.mxu0 %v7364_v40  ;;  %7596 = vpow2.f32 %v3349_v23  ;;  %v3232_v34 = vsub.f32 %v10817_v9, %v9498_v3  ;;  %v3351_v40 = vmul.f32 1.442695, %v3230_v28  ;;  %v3361_v3 = vmul.f32 1.442695, %v3235_v24  ;;  %v10823_v23 = vld [vmem:[#allocation72_spill] sm:$0xff] }
 0x64a   : > { %7598 = vpow2.f32 %v3347_v51  ;;  %v3331_v19 = vmul.f32 1.442695, %v3220_v57  ;;  %v3234_v4 = vsub.f32 %v10823_v23, %v9516_v11  ;;  %v10824_v51 = vld [vmem:[#allocation71_spill] sm:$0xff] }
 0x64b   : > { %v1892_v29 = vpop.permute.xlu0 %1891  ;;  %v7365_v61 = vld [vmem:[#allocation4 + $0xd0] sm:$0xff]   ;;  %7600 = vpow2.f32 %v3353_v58  ;;  %v3355_v18 = vmul.f32 1.442695, %v3232_v34 }
 0x64c   : > { %1938 = vst.msk [vmem:[#allocation4 + $0xc8] sm:$0xf] %vm1190_vm0, %v1892_v29  ;;  %7012 = vmatprep.subr.bf16.mxu1 %v7365_v61  ;;  %7602 = vpow2.f32 %v3319_v16  ;;  %v10820_v29 = vld [vmem:[#allocation56_spill] sm:$0xff]  ;;  %v3359_v7 = vmul.f32 1.442695, %v3234_v4 }
 0x64d   : > { %7013 = vmatpush3.bf16.msra.mxu1 %v7365_v61  ;;  %7604 = vpow2.f32 %v3325_v62  ;;  %v3218_v61 = vsub.f32 %v10820_v29, %v10819_v35 }
 0x64e   : > { %7606 = vpow2.f32 %v3323_v45 }
 0x64f   : > { %v7366_v6 = vld [vmem:[#allocation4 + $0x88] sm:$0xff]   ;;  %7608 = vpow2.f32 %v3329_v25  ;;  %v3327_v12 = vmul.f32 1.442695, %v3218_v61 }
 0x650   : > { %6982 = vmatprep.subr.bf16.mxu0 %v7366_v6  ;;  %7610 = vpow2.f32 %v3351_v40  ;;  %v6475_v40 = vpack.c.bf16 %v6956_v60, %v6956_v60 }
 0x651   : > { %6983 = vmatpush3.bf16.msra.mxu0 %v7366_v6  ;;  %7612 = vpow2.f32 %v3357_v21 }
 0x652   : > { %7614 = vpow2.f32 %v3355_v18 }
 0x653   : > { %v7367_v5 = vld [vmem:[#allocation4 + $0xc8] sm:$0xff]   ;;  %7616 = vpow2.f32 %v3361_v3 }
 0x654   : > { %7014 = vmatprep.subr.bf16.mxu1 %v7367_v5  ;;  %7618 = vpow2.f32 %v3327_v12 }
 0x655   : > { %7015 = vmatpush3.bf16.msra.mxu1 %v7367_v5  ;;  %v9743_v13 = vpop.eup %7594  ;;  %7620 = vpow2.f32 %v3331_v19  ;;  %v3236_v5 = vsub.f32 %v10824_v51, %v9510_v42 }
 0x656   : > { %v9750_v27 = vpop.eup %7596  ;;  %7622 = vpow2.f32 %v3359_v7 }
 0x657   : > { %v9754_v46 = vpop.eup %7598  ;;  %v3363_v48 = vmul.f32 1.442695, %v3236_v5 }
 0x658   : > { %v9758_v55 = vpop.eup %7600 }
 0x659   : > { %3473 = vadd.xlane.f32.xlu1 %v9729_v17  ;;  %v9762_v6 = vpop.eup %7602  ;;  %7624 = vpow2.f32 %v3363_v48 }
 0x65a   : > { %v9766_v52 = vpop.eup %7604  ;;  %7626 = vrcp.f32 %v9660_v1 }
 0x65b   : > { %v9770_v43 = vpop.eup %7606  ;;  %7628 = vrcp.f32 %v9657_v33  ;;  %v3880_v33 = vpop.f32.mrf.mxu1 }
 0x65c   : > { %v9774_v31 = vpop.eup %7608  ;;  %v6473_v28 = vpack.c.bf16 %v3880_v33, %v3880_v33 }
 0x65d   : > { %3445 = vadd.xlane.f32.xlu1 %v9736_v56  ;;  %v9778_v50 = vpop.eup %7610  ;;  %v6957_v21 = vpop.f32.mrf.mxu1 }
 0x65e   : > { %v9782_v11 = vpop.eup %7612  ;;  %v6476_v61 = vpack.c.bf16 %v6957_v21, %v6957_v21 }
 0x65f   : > { %v9784_v58 = vpop.eup %7614 }
 0x660   : > { %v9788_v39 = vpop.eup %7616 }
 0x661   : > { %3449 = vadd.xlane.f32.xlu1 %v9743_v13  ;;  %v9790_v37 = vpop.eup %7618 }
 0x662   : > { %v9796_v16 = vpop.eup %7620 }
 0x663   : > { %v9800_v59 = vpop.eup %7622 }
 0x665   : > { %3477 = vadd.xlane.f32.xlu1 %v9750_v27  ;;  %3475 = vadd.xlane.f32.xlu0 %v9754_v46 }
 0x666   : > { %v9804_v62 = vpop.eup %7624 }
 0x667   : > { %v7627_v45 = vpop.eup %7626 }
 0x668   : > { %v7629_v36 = vpop.eup %7628  ;;  %v3591_v10 = vmul.f32 %v7627_v45, %v9578_v22  ;;  %v3883_v22 = vpop.f32.mrf.mxu1 }
 0x669   : > { %3481 = vadd.xlane.f32.xlu1 %v9758_v55  ;;  %3447 = vadd.xlane.f32.xlu0 %v9762_v6  ;;  %v3592_v34 = vmul.f32 %v7629_v36, %v9575_v14  ;;  %v6474_v18 = vpack.c.bf16 %v3883_v22, %v3883_v22 }
 0x66b   : > { %v3638_v35 = vpack.c.bf16 %v3592_v34, %v3591_v10 }
 0x66d   : > { %3453 = vadd.xlane.f32.xlu1 %v9766_v52  ;;  %3451 = vadd.xlane.f32.xlu0 %v9770_v43 }
 0x671   : > { %3457 = vadd.xlane.f32.xlu1 %v9774_v31  ;;  %3479 = vadd.xlane.f32.xlu0 %v9778_v50 }
 0x675   : > { %3485 = vadd.xlane.f32.xlu1 %v9782_v11  ;;  %3483 = vadd.xlane.f32.xlu0 %v9784_v58 }
 0x678   : > { %v3440_v42 = vpop.xlane.xlu1 %3439 }
 0x679   : > { %3489 = vadd.xlane.f32.xlu1 %v9788_v39  ;;  %3455 = vadd.xlane.f32.xlu0 %v9790_v37  ;;  %7630 = vrcp.f32 %v3440_v42 }
 0x67c   : > { %v1695_v54 = vpop.permute.xlu1 %1694  ;;  %v3438_v53 = vpop.xlane.xlu0 %3437 }
 0x67d   : > { %1742 = vst.msk [vmem:[#allocation4 + $0x84] sm:$0xf] %vm1190_vm0, %v1695_v54  ;;  %7632 = vrcp.f32 %v3438_v53  ;;  %3459 = vadd.xlane.f32.xlu0 %v9796_v16 }
 0x680   : > { %v1693_v1 = vpop.permute.xlu0 %1692 }
 0x681   : > { %1741 = vst.msk [vmem:[#allocation4 + $0x80] sm:$0xf] %vm1190_vm0, %v1693_v1  ;;  %3487 = vadd.xlane.f32.xlu0 %v9800_v59 }
 0x685   : > { %3491 = vadd.xlane.f32.xlu0 %v9804_v62 }
 0x686   : > { %v7631_v25 = vpop.eup %7630 }
 0x687   : > { %v3594_v24 = vmul.f32 %v7631_v25, %v9651_v30 }
 0x688   : > { %v7368_v8 = vld [vmem:[#allocation4 + $0x80] sm:$0xff]  }
 0x689   : > { %6984 = vmatprep.subr.bf16.mxu0 %v7368_v8 }
 0x68a   : > { %4361 = vrot.lane.b32.xlu1 %v6473_v28, %s8060_s20  ;;  %v7633_v9 = vpop.eup %7632  ;;  %6985 = vmatpush3.bf16.msra.mxu0 %v7368_v8 }
 0x68b   : > { %v3593_v0 = vmul.f32 %v7633_v9, %v9654_v32 }
 0x68d   : > { %v3639_v29 = vpack.c.bf16 %v3594_v24, %v3593_v0  ;;  %6987 = vmatmul.mubr.bf16.vlgmr.msra.gmra.mxu0 %v3638_v35 }
 0x68e   : > { %4365 = vrot.lane.b32.xlu1 %v6475_v40, %s8060_s20 }
 0x68f   : > { %6990 = vmatprep.mubr.bf16.mxu0 %v3639_v29 }
 0x692   : > { %4367 = vrot.lane.b32.xlu1 %v6476_v61, %s8060_s20 }
 0x69b   : > { %4363 = vrot.lane.b32.xlu0 %v6474_v18, %s8060_s20 }
 0x6ad   : > { %v3444_v14 = vpop.xlane.xlu1 %3443 }
 0x6ae   : > { %7634 = vrcp.f32 %v3444_v14 }
 0x6b1   : > { %v1888_v3 = vpop.permute.xlu1 %1887  ;;  %v3442_v30 = vpop.xlane.xlu0 %3441 }
 0x6b2   : > { %1936 = vst.msk [vmem:[#allocation4 + $0xc0] sm:$0xf] %vm1190_vm0, %v1888_v3  ;;  %7636 = vrcp.f32 %v3442_v30 }
 0x6b3   : > { %7638 = vrcp.f32 %v9700_v44 }
 0x6b4   : > { %7640 = vrcp.f32 %v9684_v38 }
 0x6b5   : > { %v3470_v32 = vpop.xlane.xlu0 %3469 }
 0x6b6   : > { %7642 = vrcp.f32 %v3470_v32 }
 0x6b9   : > { %v3472_v63 = vpop.xlane.xlu0 %3471 }
 0x6ba   : > { %7644 = vrcp.f32 %v3472_v63 }
 0x6bb   : > { %v7635_v47 = vpop.eup %7634 }
 0x6bc   : > { %v3596_v23 = vmul.f32 %v7635_v47, %v9677_v41 }
 0x6bd   : > { %v1890_v57 = vpop.permute.xlu0 %1889 }
 0x6be   : > { %1937 = vst.msk [vmem:[#allocation4 + $0xc4] sm:$0xf] %vm1190_vm0, %v1890_v57 }
 0x6bf   : > { %v7637_v12 = vpop.eup %7636 }
 0x6c0   : > { %v3595_v19 = vmul.f32 %v7637_v12, %v9680_v15  ;;  %v7639_v4 = vpop.eup %7638 }
 0x6c1   : > { %v7641_v5 = vpop.eup %7640  ;;  %v3608_v38 = vmul.f32 %v7639_v4, %v9616_v2 }
 0x6c2   : > { %v3640_v51 = vpack.c.bf16 %v3596_v23, %v3595_v19  ;;  %v3607_v42 = vmul.f32 %v7641_v5, %v9613_v20 }
 0x6c3   : > { %v7643_v44 = vpop.eup %7642 }
 0x6c4   : > { %6991 = vmatmul.mubr.bf16.gmra.mxu0 %v3640_v51  ;;  %v3609_v54 = vmul.f32 %v7643_v44, %v9686_v49  ;;  %v3646_v15 = vpack.c.bf16 %v3608_v38, %v3607_v42 }
 0x6c5   : > { %v7369_v7 = vld [vmem:[#allocation4 + $0xc0] sm:$0xff]  }
 0x6c6   : > { %7016 = vmatprep.subr.bf16.mxu1 %v7369_v7 }
 0x6c7   : > { %v7645_v48 = vpop.eup %7644  ;;  %7017 = vmatpush3.bf16.msra.mxu1 %v7369_v7 }
 0x6c8   : > { %v3610_v53 = vmul.f32 %v7645_v48, %v9691_v26 }
 0x6ca   : > { %v3647_v60 = vpack.c.bf16 %v3610_v53, %v3609_v54  ;;  %7019 = vmatmul.mubr.bf16.vlgmr.msra.gmra.mxu1 %v3646_v15 }
 0x6cc   : > { %7022 = vmatprep.mubr.bf16.mxu1 %v3647_v60 }
 0x6e2   : > { %v3474_v41 = vpop.xlane.xlu1 %3473 }
 0x6e3   : > { %7646 = vrcp.f32 %v3474_v41 }
 0x6e6   : > { %v3446_v1 = vpop.xlane.xlu1 %3445 }
 0x6ea   : > { %v3450_v33 = vpop.xlane.xlu1 %3449 }
 0x6ee   : > { %v3478_v45 = vpop.xlane.xlu1 %3477  ;;  %v3476_v36 = vpop.xlane.xlu0 %3475 }
 0x6ef   : > { %7648 = vrcp.f32 %v3476_v36 }
 0x6f0   : > { %7650 = vrcp.f32 %v3446_v1  ;;  %v7647_v25 = vpop.eup %7646 }
 0x6f1   : > { %v3611_v34 = vmul.f32 %v7647_v25, %v9729_v17 }
 0x6f2   : > { %v3482_v2 = vpop.xlane.xlu1 %3481  ;;  %v3448_v28 = vpop.xlane.xlu0 %3447 }
 0x6f3   : > { %7652 = vrcp.f32 %v3448_v28 }
 0x6f4   : > { %7654 = vrcp.f32 %v3450_v33 }
 0x6f6   : > { %v3454_v20 = vpop.xlane.xlu1 %3453  ;;  %v3452_v49 = vpop.xlane.xlu0 %3451 }
 0x6f7   : > { %7656 = vrcp.f32 %v3452_v49 }
 0x6f8   : > { %7658 = vrcp.f32 %v3478_v45 }
 0x6fa   : > { %v3458_v26 = vpop.xlane.xlu1 %3457  ;;  %v3480_v8 = vpop.xlane.xlu0 %3479 }
 0x6fb   : > { %7660 = vrcp.f32 %v3480_v8 }
 0x6fc   : > { %v7649_v10 = vpop.eup %7648  ;;  %7662 = vrcp.f32 %v3482_v2 }
 0x6fd   : > { %v3612_v40 = vmul.f32 %v7649_v10, %v9754_v46  ;;  %v7651_v0 = vpop.eup %7650 }
 0x6fe   : > { %v3486_v9 = vpop.xlane.xlu1 %3485  ;;  %v3484_v24 = vpop.xlane.xlu0 %3483  ;;  %v3597_v61 = vmul.f32 %v7651_v0, %v9736_v56 }
 0x6ff   : > { %7664 = vrcp.f32 %v3484_v24  ;;  %v3648_v21 = vpack.c.bf16 %v3612_v40, %v3611_v34  ;;  %v7370_v24 = vld [vmem:[#allocation14 + $0x38] sm:$0xff]  }
 0x700   : > { %v7653_v35 = vpop.eup %7652  ;;  %7666 = vrcp.f32 %v3454_v20  ;;  %7034 = vmatprep.subr.bf16.mxu0 %v7370_v24 }
 0x701   : > { %7023 = vmatmul.mubr.bf16.gmra.mxu1 %v3648_v21  ;;  %v3598_v22 = vmul.f32 %v7653_v35, %v9762_v6  ;;  %v7655_v18 = vpop.eup %7654  ;;  %7035 = vmatpush3.bf16.msra.mxu0 %v7370_v24  ;;  %v7371_v35 = vld [vmem:[#allocation14 + $0x30] sm:$0xff]  }
 0x702   : > { %v3490_v29 = vpop.xlane.xlu1 %3489  ;;  %v3456_v14 = vpop.xlane.xlu0 %3455  ;;  %v3599_v30 = vmul.f32 %v7655_v18, %v9743_v13  ;;  %7036 = vmatprep.subr.bf16.mxu0 %v7371_v35 }
 0x703   : > { %7668 = vrcp.f32 %v3456_v14  ;;  %v3641_v3 = vpack.c.bf16 %v3598_v22, %v3597_v61  ;;  %v7372_v61 = vld [vmem:[#allocation14 + $0x28] sm:$0xff]   ;;  %v7373_v14 = vld [vmem:[#allocation14 + $0x20] sm:$0xff]  }
 0x704   : > { %v7657_v17 = vpop.eup %7656  ;;  %7670 = vrcp.f32 %v3458_v26 }
 0x705   : > { %6994 = vmatprep.mubr.bf16.mxu0 %v3641_v3  ;;  %v3600_v32 = vmul.f32 %v7657_v17, %v9770_v43  ;;  %v7659_v63 = vpop.eup %7658  ;;  %7037 = vmatpush3.bf16.msra.mxu0 %v7371_v35  ;;  %v7374_v17 = vld [vmem:[#allocation14 + $0x18] sm:$0xff]  }
 0x706   : > { %v4362_v46 = vpop.permute.xlu1 %4361  ;;  %v3460_v47 = vpop.xlane.xlu0 %3459  ;;  %v3613_v12 = vmul.f32 %v7659_v63, %v9750_v27  ;;  %7038 = vmatprep.subr.bf16.mxu0 %v7372_v61 }
 0x707   : > { %4410 = vst.msk [vmem:[#allocation5] sm:$0xf] %vm4409_vm2, %v4362_v46  ;;  %7672 = vrcp.f32 %v3460_v47  ;;  %v3642_v56 = vpack.c.bf16 %v3600_v32, %v3599_v30  ;;  %v7375_v30 = vld [vmem:[#allocation14 + $0x10] sm:$0xff]   ;;  %v7376_v47 = vld [vmem:[#allocation14 + $0x8] sm:$0xff]  }
 0x708   : > { %v7661_v6 = vpop.eup %7660  ;;  %7674 = vrcp.f32 %v3486_v9 }
 0x709   : > { %6995 = vmatmul.mubr.bf16.gmra.mxu0 %v3642_v56  ;;  %v3614_v19 = vmul.f32 %v7661_v6, %v9778_v50  ;;  %v7663_v23 = vpop.eup %7662 }
 0x70a   : > { %v4366_v57 = vpop.permute.xlu1 %4365  ;;  %v3488_v13 = vpop.xlane.xlu0 %3487  ;;  %v3615_v5 = vmul.f32 %v7663_v23, %v9758_v55  ;;  %7039 = vmatpush3.bf16.msra.mxu0 %v7372_v61 }
 0x70b   : > { %4412 = vst.msk [vmem:[#allocation5 + $0x8] sm:$0xf] %vm4409_vm2, %v4366_v57  ;;  %7676 = vrcp.f32 %v3488_v13  ;;  %v3649_v43 = vpack.c.bf16 %v3614_v19, %v3613_v12  ;;  %7040 = vmatprep.subr.bf16.mxu0 %v7373_v14  ;;  %v7377_v12 = vld [vmem:[#allocation14] sm:$0xff]  }
 0x70c   : > { %v7665_v4 = vpop.eup %7664  ;;  %7678 = vrcp.f32 %v3490_v29 }
 0x70d   : > { %7026 = vmatprep.mubr.bf16.mxu1 %v3649_v43  ;;  %v3616_v44 = vmul.f32 %v7665_v4, %v9784_v58  ;;  %v7667_v7 = vpop.eup %7666 }
 0x70e   : > { %v4368_v51 = vpop.permute.xlu1 %4367  ;;  %v3492_v27 = vpop.xlane.xlu0 %3491  ;;  %v3601_v48 = vmul.f32 %v7667_v7, %v9766_v52  ;;  %7041 = vmatpush3.bf16.msra.mxu0 %v7373_v14 }
 0x70f   : > { %4413 = vst.msk [vmem:[#allocation5 + $0xc] sm:$0xf] %vm4409_vm2, %v4368_v51  ;;  %7680 = vrcp.f32 %v3492_v27  ;;  %v3650_v50 = vpack.c.bf16 %v3616_v44, %v3615_v5  ;;  %7042 = vmatprep.subr.bf16.mxu0 %v7374_v17 }
 0x710   : > { %v7669_v38 = vpop.eup %7668 }
 0x711   : > { %7027 = vmatmul.mubr.bf16.gmra.mxu1 %v3650_v50  ;;  %v3602_v42 = vmul.f32 %v7669_v38, %v9790_v37  ;;  %v7671_v54 = vpop.eup %7670 }
 0x712   : > { %v4364_v53 = vpop.permute.xlu0 %4363  ;;  %v3603_v58 = vmul.f32 %v7671_v54, %v9774_v31  ;;  %v10825_v31 = vmov 0   ;;  %7043 = vmatpush3.bf16.msra.mxu0 %v7374_v17 }
 0x713   : > { %4411 = vst.msk [vmem:[#allocation5 + $0x4] sm:$0xf] %vm4409_vm2, %v4364_v53  ;;  %v3643_v15 = vpack.c.bf16 %v3602_v42, %v3601_v48  ;;  %7044 = vmatprep.subr.bf16.mxu0 %v7375_v30 }
 0x714   : > { %v7673_v55 = vpop.eup %7672 }
 0x715   : > { %6998 = vmatprep.mubr.bf16.mxu0 %v3643_v15  ;;  %v3604_v60 = vmul.f32 %v7673_v55, %v9796_v16  ;;  %v7675_v41 = vpop.eup %7674 }
 0x716   : > { %v3617_v45 = vmul.f32 %v7675_v41, %v9782_v11  ;;  %7045 = vmatpush3.bf16.msra.mxu0 %v7375_v30 }
 0x717   : > { %v3644_v1 = vpack.c.bf16 %v3604_v60, %v3603_v58  ;;  %7046 = vmatprep.subr.bf16.mxu0 %v7376_v47 }
 0x718   : > { %v7677_v33 = vpop.eup %7676 }
 0x719   : > { %6999 = vmatmul.mubr.bf16.gmra.mxu0 %v3644_v1  ;;  %v3618_v52 = vmul.f32 %v7677_v33, %v9800_v59  ;;  %v7679_v37 = vpop.eup %7678 }
 0x71a   : > { %v3619_v28 = vmul.f32 %v7679_v37, %v9788_v39  ;;  %7047 = vmatpush3.bf16.msra.mxu0 %v7376_v47 }
 0x71b   : > { %v3651_v36 = vpack.c.bf16 %v3618_v52, %v3617_v45  ;;  %7048 = vmatprep.subr.bf16.mxu0 %v7377_v12 }
 0x71c   : > { %v7681_v2 = vpop.eup %7680 }
 0x71d   : > { %7030 = vmatprep.mubr.bf16.mxu1 %v3651_v36  ;;  %v3620_v20 = vmul.f32 %v7681_v2, %v9804_v62  ;;  %v6960_v62 = vpop.f32.mrf.mxu1 }
 0x71e   : > { %7049 = vmatpush3.bf16.msra.mxu0 %v7377_v12  ;;  %v6479_v44 = vpack.c.bf16 %v6960_v62, %v6960_v62 }
 0x71f   : > { %v3652_v49 = vpack.c.bf16 %v3620_v20, %v3619_v28  ;;  %v3896_v9 = vpop.f32.mrf.mxu1 }
 0x720   : > { %v6477_v4 = vpack.c.bf16 %v3896_v9, %v3896_v9 }
 0x721   : > { %7031 = vmatmul.mubr.bf16.gmra.mxu1 %v3652_v49  ;;  %v6961_v34 = vpop.f32.mrf.mxu1 }
 0x722   : > { %5271 = vmatprep.mubr.bf16.mxu1 %v10825_v31  ;;  %v6480_v50 = vpack.c.bf16 %v6961_v34, %v6961_v34 }
 0x723   : > { %v3899_v40 = vpop.f32.mrf.mxu1 }
 0x724   : > { %v6478_v7 = vpack.c.bf16 %v3899_v40, %v3899_v40 }
 0x725   : > { %v9852_v0 = vpop.f32.mrf.mxu1 }
 0x727   : > { %v9854_v21 = vpop.f32.mrf.mxu1 }
 0x728   : > { %v6481_v2 = vpack.c.bf16 %v9854_v21, %v9854_v21 }
 0x729   : > { %v9856_v29 = vpop.f32.mrf.mxu1 }
 0x72b   : > { %v9858_v22 = vpop.f32.mrf.mxu1 }
 0x72d   : > { %v9860_v18 = vpop.f32.mrf.mxu1 }
 0x72e   : > { %v6487_v17 = vpack.c.bf16 %v9860_v18, %v9860_v18 }
 0x72f   : > { %v9862_v3 = vpop.f32.mrf.mxu1 }
 0x730   : > { %v6485_v61 = vpack.c.bf16 %v9862_v3, %v9862_v3 }
 0x731   : > { %v9864_v46 = vpop.f32.mrf.mxu1 }
 0x732   : > { %v6488_v3 = vpack.c.bf16 %v9864_v46, %v9864_v46 }
 0x733   : > { %v9866_v32 = vpop.f32.mrf.mxu1 }
 0x734   : > { %v6486_v30 = vpack.c.bf16 %v9866_v32, %v9866_v32 }
 0x74d   : > { %v6988_v16 = vpop.f32.mrf.mxu0 }
 0x74e   : > { %v6491_v59 = vpack.c.bf16 %v6988_v16, %v6988_v16  ;;  %v6483_v16 = vpack.c.bf16 %v9852_v0, %v9852_v0 }
 0x74f   : > { %v4025_v26 = vpop.f32.mrf.mxu0 }
 0x750   : > { %v6489_v25 = vpack.c.bf16 %v4025_v26, %v4025_v26  ;;  %v6482_v26 = vpack.c.bf16 %v9858_v22, %v9858_v22 }
 0x751   : > { %v6989_v8 = vpop.f32.mrf.mxu0 }
 0x752   : > { %4474 = vrot.lane.b32.xlu0 %v6489_v25, %s8059_s25  ;;  %v6492_v39 = vpack.c.bf16 %v6989_v8, %v6989_v8 }
 0x753   : > { %v4028_v11 = vpop.f32.mrf.mxu0 }
 0x754   : > { %v6490_v10 = vpack.c.bf16 %v4028_v11, %v4028_v11  ;;  %v6484_v11 = vpack.c.bf16 %v9856_v29, %v9856_v29 }
 0x756   : > { %4478 = vrot.lane.b32.xlu0 %v6491_v59, %s8059_s25  ;;  %4476 = vrot.lane.b32.xlu1 %v6490_v10, %s8059_s25 }
 0x75a   : > { %4480 = vrot.lane.b32.xlu1 %v6492_v39, %s8059_s25 }
 0x784   : > { %v6992_v43 = vpop.f32.mrf.mxu0 }
 0x785   : > { %v6495_v42 = vpack.c.bf16 %v6992_v43, %v6992_v43 }
 0x786   : > { %v4041_v5 = vpop.f32.mrf.mxu0 }
 0x787   : > { %v6493_v38 = vpack.c.bf16 %v4041_v5, %v4041_v5 }
 0x788   : > { %v6993_v27 = vpop.f32.mrf.mxu0 }
 0x789   : > { %v6496_v53 = vpack.c.bf16 %v6993_v27, %v6993_v27 }
 0x78a   : > { %v7020_v63 = vpop.f32.mrf.mxu1  ;;  %v4044_v48 = vpop.f32.mrf.mxu0 }
 0x78b   : > { %v6507_v23 = vpack.c.bf16 %v7020_v63, %v7020_v63  ;;  %v6494_v54 = vpack.c.bf16 %v4044_v48, %v4044_v48 }
 0x78c   : > { %v4170_v56 = vpop.f32.mrf.mxu1 }
 0x78d   : > { %v6505_v6 = vpack.c.bf16 %v4170_v56, %v4170_v56 }
 0x78e   : > { %v7021_v57 = vpop.f32.mrf.mxu1 }
 0x78f   : > { %4587 = vrot.lane.b32.xlu0 %v6505_v6, %s8058_s15  ;;  %v6508_v51 = vpack.c.bf16 %v7021_v57, %v7021_v57 }
 0x790   : > { %v4173_v19 = vpop.f32.mrf.mxu1 }
 0x791   : > { %v6506_v13 = vpack.c.bf16 %v4173_v19, %v4173_v19 }
 0x793   : > { %4591 = vrot.lane.b32.xlu0 %v6507_v23, %s8058_s15  ;;  %4589 = vrot.lane.b32.xlu1 %v6506_v13, %s8058_s15 }
 0x797   : > { %4369 = vrot.lane.b32.xlu0 %v6477_v4, %s8060_s20  ;;  %4593 = vrot.lane.b32.xlu1 %v6508_v51, %s8058_s15 }
 0x79b   : > { %4373 = vrot.lane.b32.xlu0 %v6479_v44, %s8060_s20  ;;  %4371 = vrot.lane.b32.xlu1 %v6478_v7, %s8060_s20 }
 0x79f   : > { %4482 = vrot.lane.b32.xlu0 %v6493_v38, %s8059_s25  ;;  %4375 = vrot.lane.b32.xlu1 %v6480_v50, %s8060_s20 }
 0x7a3   : > { %4486 = vrot.lane.b32.xlu0 %v6495_v42, %s8059_s25  ;;  %4484 = vrot.lane.b32.xlu1 %v6494_v54, %s8059_s25 }
 0x7a7   : > { %4488 = vrot.lane.b32.xlu1 %v6496_v53, %s8059_s25 }
 0x7c1   : > { %v7024_v15 = vpop.f32.mrf.mxu1 }
 0x7c2   : > { %v6511_v33 = vpack.c.bf16 %v7024_v15, %v7024_v15 }
 0x7c3   : > { %v4186_v55 = vpop.f32.mrf.mxu1 }
 0x7c4   : > { %v6509_v58 = vpack.c.bf16 %v4186_v55, %v4186_v55  ;;  %v4475_v41 = vpop.permute.xlu0 %4474 }
 0x7c5   : > { %v7025_v60 = vpop.f32.mrf.mxu1  ;;  %4523 = vst.msk [vmem:[#allocation5] sm:$0xf] %vm4522_vm3, %v4475_v41 }
 0x7c6   : > { %4595 = vrot.lane.b32.xlu0 %v6509_v58, %s8058_s15  ;;  %v6512_v28 = vpack.c.bf16 %v7025_v60, %v7025_v60 }
 0x7c7   : > { %v4189_v1 = vpop.f32.mrf.mxu1 }
 0x7c8   : > { %v6510_v45 = vpack.c.bf16 %v4189_v1, %v4189_v1  ;;  %v4477_v37 = vpop.permute.xlu1 %4476  ;;  %v4479_v36 = vpop.permute.xlu0 %4478 }
 0x7c9   : > { %v6996_v52 = vpop.f32.mrf.mxu0  ;;  %4524 = vst.msk [vmem:[#allocation5 + $0x4] sm:$0xf] %vm4522_vm3, %v4477_v37  ;;  %4525 = vst.msk [vmem:[#allocation5 + $0x8] sm:$0xf] %vm4522_vm3, %v4479_v36 }
 0x7ca   : > { %4599 = vrot.lane.b32.xlu0 %v6511_v33, %s8058_s15  ;;  %4597 = vrot.lane.b32.xlu1 %v6510_v45, %s8058_s15  ;;  %v6499_v62 = vpack.c.bf16 %v6996_v52, %v6996_v52 }
 0x7cb   : > { %v4057_v20 = vpop.f32.mrf.mxu0 }
 0x7cc   : > { %v4481_v49 = vpop.permute.xlu1 %4480  ;;  %v6497_v59 = vpack.c.bf16 %v4057_v20, %v4057_v20 }
 0x7cd   : > { %4526 = vst.msk [vmem:[#allocation5 + $0xc] sm:$0xf] %vm4522_vm3, %v4481_v49  ;;  %v6997_v25 = vpop.f32.mrf.mxu0 }
 0x7ce   : > { %4377 = vrot.lane.b32.xlu0 %v6481_v2, %s8060_s20  ;;  %4601 = vrot.lane.b32.xlu1 %v6512_v28, %s8058_s15  ;;  %v6500_v40 = vpack.c.bf16 %v6997_v25, %v6997_v25 }
 0x7cf   : > { %v4060_v10 = vpop.f32.mrf.mxu0 }
 0x7d0   : > { %v6498_v9 = vpack.c.bf16 %v4060_v10, %v4060_v10 }
 0x7d1   : > { %v7028_v8 = vpop.f32.mrf.mxu1 }
 0x7d2   : > { %4381 = vrot.lane.b32.xlu0 %v6483_v16, %s8060_s20  ;;  %4379 = vrot.lane.b32.xlu1 %v6482_v26, %s8060_s20  ;;  %v6515_v21 = vpack.c.bf16 %v7028_v8, %v7028_v8 }
 0x7d3   : > { %v4202_v39 = vpop.f32.mrf.mxu1 }
 0x7d4   : > { %v6513_v0 = vpack.c.bf16 %v4202_v39, %v4202_v39 }
 0x7d5   : > { %v7029_v34 = vpop.f32.mrf.mxu1 }
 0x7d6   : > { %4383 = vrot.lane.b32.xlu1 %v6484_v11, %s8060_s20  ;;  %4490 = vrot.lane.b32.xlu0 %v6497_v59, %s8059_s25  ;;  %v6516_v22 = vpack.c.bf16 %v7029_v34, %v7029_v34 }
 0x7d7   : > { %v4205_v24 = vpop.f32.mrf.mxu1 }
 0x7d8   : > { %v6514_v35 = vpack.c.bf16 %v4205_v24, %v4205_v24 }
 0x7d9   : > { %v7000_v29 = vpop.f32.mrf.mxu0 }
 0x7da   : > { %4494 = vrot.lane.b32.xlu0 %v6499_v62, %s8059_s25  ;;  %4492 = vrot.lane.b32.xlu1 %v6498_v9, %s8059_s25  ;;  %v6503_v18 = vpack.c.bf16 %v7000_v29, %v7000_v29 }
 0x7db   : > { %v4073_v14 = vpop.f32.mrf.mxu0 }
 0x7dc   : > { %v6501_v56 = vpack.c.bf16 %v4073_v14, %v4073_v14 }
 0x7dd   : > { %v7001_v63 = vpop.f32.mrf.mxu0 }
 0x7de   : > { %4496 = vrot.lane.b32.xlu1 %v6500_v40, %s8059_s25  ;;  %4603 = vrot.lane.b32.xlu0 %v6513_v0, %s8058_s15  ;;  %v6504_v32 = vpack.c.bf16 %v7001_v63, %v7001_v63 }
 0x7df   : > { %v4076_v6 = vpop.f32.mrf.mxu0 }
 0x7e0   : > { %v6502_v12 = vpack.c.bf16 %v4076_v6, %v4076_v6 }
 0x7e1   : > { %v7032_v47 = vpop.f32.mrf.mxu1 }
 0x7e2   : > { %4607 = vrot.lane.b32.xlu0 %v6515_v21, %s8058_s15  ;;  %4605 = vrot.lane.b32.xlu1 %v6514_v35, %s8058_s15  ;;  %v6519_v46 = vpack.c.bf16 %v7032_v47, %v7032_v47  ;;  %v9971_v47 = vld [vmem:[%s10593_s7] ss:$0 sm:$0xff] }
 0x7e3   : > { %v4218_v57 = vpop.f32.mrf.mxu1 }
 0x7e4   : > { %v6517_v23 = vpack.c.bf16 %v4218_v57, %v4218_v57 }
 0x7e5   : > { %v7033_v19 = vpop.f32.mrf.mxu1 }
 0x7e6   : > { %4385 = vrot.lane.b32.xlu0 %v6485_v61, %s8060_s20  ;;  %4609 = vrot.lane.b32.xlu1 %v6516_v22, %s8058_s15  ;;  %v6520_v4 = vpack.c.bf16 %v7033_v19, %v7033_v19 }
 0x7e7   : > { %v4221_v13 = vpop.f32.mrf.mxu1 }
 0x7e8   : > { %v6518_v43 = vpack.c.bf16 %v4221_v13, %v4221_v13 }
 0x7ea   : > { %4389 = vrot.lane.b32.xlu0 %v6487_v17, %s8060_s20  ;;  %4387 = vrot.lane.b32.xlu1 %v6486_v30, %s8060_s20 }
 0x7ee   : > { %4391 = vrot.lane.b32.xlu1 %v6488_v3, %s8060_s20  ;;  %4498 = vrot.lane.b32.xlu0 %v6501_v56, %s8059_s25 }
 0x7f2   : > { %4502 = vrot.lane.b32.xlu0 %v6503_v18, %s8059_s25  ;;  %4500 = vrot.lane.b32.xlu1 %v6502_v12, %s8059_s25  ;;  %v7746_v18 = vld [vmem:[%s8335_s10] sm:$0xff] }
 0x7f6   : > { %4504 = vrot.lane.b32.xlu1 %v6504_v32, %s8059_s25  ;;  %4611 = vrot.lane.b32.xlu0 %v6517_v23, %s8058_s15  ;;  %v7747_v23 = vld [vmem:[%s8335_s10 + $0x10] sm:$0xff]  ;;  %s10469_s25 = scalar_lea.vmem [#allocation18], %s8331_s21  ;;  %s10831_s21 = sld [smem:[#allocation27_spill]] }
 0x7f7   : > { %s5902_s18 = sshll.u32 %s10469_s25, 4  ;;  %s10536_s18 = int_to_ptr.vmem [resolvable:$true] %s5902_s18 }
 0x7f8   : > { %s7948_s0 = scalar_lea.vmem %s10536_s18, 2048 }
 0x7f9   : > { %p7949_p6 = scmp.ne.s32.totalorder %s10536_s18, %s7948_s0 }
 0x7fa   : > { %4615 = vrot.lane.b32.xlu0 %v6519_v46, %s8058_s15  ;;  %4613 = vrot.lane.b32.xlu1 %v6518_v43, %s8058_s15  ;;  %v7748_v43 = vld [vmem:[%s8335_s10 + $0x8] sm:$0xff] }
 0x7fb   : > { %p7950_p2 = pnand %p7949_p6, %p8277_p11 }
 0x7fc   : > { %s6521_s20 = sshll.u32 %s10831_s21, 11 }
 0x7fd   : > { %s10534_s17 = scalar_lea.hbm %s10832_s30, %s6521_s20  ;;  %p7951_p8 = pneg %p7950_p2 }
 0x7fe   : > { %4617 = vrot.lane.b32.xlu1 %v6520_v4, %s8058_s15  ;;  %s10830_s15 = sld [smem:[#allocation95_spill]] }
 0x801   : > { %v4588_v51 = vpop.permute.xlu0 %4587 }
 0x802   : > { %4636 = vst.msk [vmem:[#allocation5] sm:$0xf] %vm4635_vm4, %v4588_v51  ;;  %v7749_v51 = vld [vmem:[%s8335_s10 + $0x18] sm:$0xff] }
 0x805   : > { %v4590_v5 = vpop.permute.xlu1 %4589  ;;  %v4592_v44 = vpop.permute.xlu0 %4591 }
 0x806   : > { %4637 = vst.msk [vmem:[#allocation5 + $0x4] sm:$0xf] %vm4635_vm4, %v4590_v5  ;;  %4638 = vst.msk [vmem:[#allocation5 + $0x8] sm:$0xf] %vm4635_vm4, %v4592_v44 }
 0x809   : > { %v4594_v7 = vpop.permute.xlu1 %4593  ;;  %v4370_v27 = vpop.permute.xlu0 %4369 }
 0x80a   : > { %4639 = vst.msk [vmem:[#allocation5 + $0xc] sm:$0xf] %vm4635_vm4, %v4594_v7 }
 0x80b   : > { %4414 = vst.msk [vmem:[#allocation5 + $0x10] sm:$0xf] %vm4409_vm2, %v4370_v27 }
 0x80d   : > { %v4372_v50 = vpop.permute.xlu1 %4371  ;;  %v4374_v38 = vpop.permute.xlu0 %4373  ;;  %v7378_v48 = vld [vmem:[#allocation5] sm:$0xff]  }
 0x80e   : > { %4415 = vst.msk [vmem:[#allocation5 + $0x14] sm:$0xf] %vm4409_vm2, %v4372_v50  ;;  %4416 = vst.msk [vmem:[#allocation5 + $0x18] sm:$0xf] %vm4409_vm2, %v4374_v38  ;;  %7050 = vmatprep.mubr.bf16.mxu0 %v7378_v48  ;;  %v7750_v48 = vld [vmem:[%s8335_s10 + $0x20] sm:$0xff] }
 0x811   : > { %v4376_v42 = vpop.permute.xlu1 %4375  ;;  %v4483_v54 = vpop.permute.xlu0 %4482  ;;  %v7379_v53 = vld [vmem:[#allocation5 + $0x8] sm:$0xff]  }
 0x812   : > { %4417 = vst.msk [vmem:[#allocation5 + $0x1c] sm:$0xf] %vm4409_vm2, %v4376_v42  ;;  %7051 = vmatmul.mubr.bf16.vlgmr.msra.gmra.mxu0 %v7379_v53 }
 0x813   : > { %4527 = vst.msk [vmem:[#allocation5 + $0x10] sm:$0xf] %vm4522_vm3, %v4483_v54 }
 0x815   : > { %v4485_v15 = vpop.permute.xlu1 %4484  ;;  %v4487_v55 = vpop.permute.xlu0 %4486 }
 0x816   : > { %4528 = vst.msk [vmem:[#allocation5 + $0x14] sm:$0xf] %vm4522_vm3, %v4485_v15  ;;  %4529 = vst.msk [vmem:[#allocation5 + $0x18] sm:$0xf] %vm4522_vm3, %v4487_v55  ;;  %v7751_v15 = vld [vmem:[%s8335_s10 + $0x30] sm:$0xff] }
 0x819   : > { %v4489_v58 = vpop.permute.xlu1 %4488 }
 0x81a   : > { %4530 = vst.msk [vmem:[#allocation5 + $0x1c] sm:$0xf] %vm4522_vm3, %v4489_v58 }
 0x838   : > { %v4596_v60 = vpop.permute.xlu0 %4595 }
 0x839   : > { %4640 = vst.msk [vmem:[#allocation5 + $0x10] sm:$0xf] %vm4635_vm4, %v4596_v60  ;;  %v7752_v60 = vld [vmem:[%s8335_s10 + $0x28] sm:$0xff] }
 0x83c   : > { %v4598_v41 = vpop.permute.xlu1 %4597  ;;  %v4600_v1 = vpop.permute.xlu0 %4599 }
 0x83d   : > { %4641 = vst.msk [vmem:[#allocation5 + $0x14] sm:$0xf] %vm4635_vm4, %v4598_v41  ;;  %4642 = vst.msk [vmem:[#allocation5 + $0x18] sm:$0xf] %vm4635_vm4, %v4600_v1  ;;  %v7753_v1 = vld [vmem:[%s8335_s10 + $0x38] sm:$0xff] }
 0x840   : > { %v4602_v33 = vpop.permute.xlu1 %4601  ;;  %v4378_v45 = vpop.permute.xlu0 %4377 }
 0x841   : > { %4643 = vst.msk [vmem:[#allocation5 + $0x1c] sm:$0xf] %vm4635_vm4, %v4602_v33 }
 0x842   : > { %4418 = vst.msk [vmem:[#allocation5 + $0x20] sm:$0xf] %vm4409_vm2, %v4378_v45 }
 0x844   : > { %v4380_v52 = vpop.permute.xlu1 %4379  ;;  %v4382_v37 = vpop.permute.xlu0 %4381  ;;  %v7380_v36 = vld [vmem:[#allocation5 + $0x10] sm:$0xff]  }
 0x845   : > { %4419 = vst.msk [vmem:[#allocation5 + $0x24] sm:$0xf] %vm4409_vm2, %v4380_v52  ;;  %4420 = vst.msk [vmem:[#allocation5 + $0x28] sm:$0xf] %vm4409_vm2, %v4382_v37  ;;  %7054 = vmatprep.mubr.bf16.mxu0 %v7380_v36 }
 0x848   : > { %v4384_v2 = vpop.permute.xlu1 %4383  ;;  %v4491_v28 = vpop.permute.xlu0 %4490  ;;  %v7381_v20 = vld [vmem:[#allocation5 + $0x18] sm:$0xff]  }
 0x849   : > { %4421 = vst.msk [vmem:[#allocation5 + $0x2c] sm:$0xf] %vm4409_vm2, %v4384_v2  ;;  %7055 = vmatmul.mubr.bf16.gmra.mxu0 %v7381_v20 }
 0x84a   : > { %4531 = vst.msk [vmem:[#allocation5 + $0x20] sm:$0xf] %vm4522_vm3, %v4491_v28  ;;  %v7754_v28 = vld [vmem:[%s8335_s10 + $0x40] sm:$0xff] }
 0x84c   : > { %v4493_v49 = vpop.permute.xlu1 %4492  ;;  %v4495_v16 = vpop.permute.xlu0 %4494 }
 0x84d   : > { %4532 = vst.msk [vmem:[#allocation5 + $0x24] sm:$0xf] %vm4522_vm3, %v4493_v49  ;;  %4533 = vst.msk [vmem:[#allocation5 + $0x28] sm:$0xf] %vm4522_vm3, %v4495_v16 }
 0x850   : > { %v4497_v26 = vpop.permute.xlu1 %4496  ;;  %v4604_v25 = vpop.permute.xlu0 %4603 }
 0x851   : > { %4534 = vst.msk [vmem:[#allocation5 + $0x2c] sm:$0xf] %vm4522_vm3, %v4497_v26  ;;  %v7755_v26 = vld [vmem:[%s8335_s10 + $0x50] sm:$0xff] }
 0x852   : > { %4644 = vst.msk [vmem:[#allocation5 + $0x20] sm:$0xf] %vm4635_vm4, %v4604_v25 }
 0x854   : > { %v4606_v8 = vpop.permute.xlu1 %4605  ;;  %v4608_v11 = vpop.permute.xlu0 %4607 }
 0x855   : > { %4645 = vst.msk [vmem:[#allocation5 + $0x24] sm:$0xf] %vm4635_vm4, %v4606_v8  ;;  %4646 = vst.msk [vmem:[#allocation5 + $0x28] sm:$0xf] %vm4635_vm4, %v4608_v11  ;;  %v7756_v11 = vld [vmem:[%s8335_s10 + $0x48] sm:$0xff] }
 0x858   : > { %v4610_v59 = vpop.permute.xlu1 %4609  ;;  %v4386_v10 = vpop.permute.xlu0 %4385 }
 0x859   : > { %4647 = vst.msk [vmem:[#allocation5 + $0x2c] sm:$0xf] %vm4635_vm4, %v4610_v59 }
 0x85a   : > { %4422 = vst.msk [vmem:[#allocation5 + $0x30] sm:$0xf] %vm4409_vm2, %v4386_v10  ;;  %v7757_v10 = vld [vmem:[%s8335_s10 + $0x58] sm:$0xff] }
 0x85c   : > { %v4388_v39 = vpop.permute.xlu1 %4387  ;;  %v4390_v62 = vpop.permute.xlu0 %4389  ;;  %v7382_v9 = vld [vmem:[#allocation5 + $0x20] sm:$0xff]  }
 0x85d   : > { %4423 = vst.msk [vmem:[#allocation5 + $0x34] sm:$0xf] %vm4409_vm2, %v4388_v39  ;;  %4424 = vst.msk [vmem:[#allocation5 + $0x38] sm:$0xf] %vm4409_vm2, %v4390_v62  ;;  %7058 = vmatprep.mubr.bf16.mxu0 %v7382_v9 }
 0x860   : > { %v4392_v34 = vpop.permute.xlu1 %4391  ;;  %v4499_v40 = vpop.permute.xlu0 %4498  ;;  %v7383_v0 = vld [vmem:[#allocation5 + $0x28] sm:$0xff]  }
 0x861   : > { %4425 = vst.msk [vmem:[#allocation5 + $0x3c] sm:$0xf] %vm4409_vm2, %v4392_v34  ;;  %7059 = vmatmul.mubr.bf16.gmra.mxu0 %v7383_v0 }
 0x862   : > { %4535 = vst.msk [vmem:[#allocation5 + $0x30] sm:$0xf] %vm4522_vm3, %v4499_v40 }
 0x864   : > { %v4501_v24 = vpop.permute.xlu1 %4500  ;;  %v4503_v21 = vpop.permute.xlu0 %4502 }
 0x865   : > { %4536 = vst.msk [vmem:[#allocation5 + $0x34] sm:$0xf] %vm4522_vm3, %v4501_v24  ;;  %4537 = vst.msk [vmem:[#allocation5 + $0x38] sm:$0xf] %vm4522_vm3, %v4503_v21  ;;  %v7758_v24 = vld [vmem:[%s8335_s10 + $0x60] sm:$0xff] }
 0x868   : > { %v4505_v35 = vpop.permute.xlu1 %4504  ;;  %v4612_v29 = vpop.permute.xlu0 %4611 }
 0x869   : > { %4538 = vst.msk [vmem:[#allocation5 + $0x3c] sm:$0xf] %vm4522_vm3, %v4505_v35 }
 0x86a   : > { %4648 = vst.msk [vmem:[#allocation5 + $0x30] sm:$0xf] %vm4635_vm4, %v4612_v29 }
 0x86c   : > { %v4614_v61 = vpop.permute.xlu1 %4613  ;;  %v4616_v22 = vpop.permute.xlu0 %4615 }
 0x86d   : > { %4649 = vst.msk [vmem:[#allocation5 + $0x34] sm:$0xf] %vm4635_vm4, %v4614_v61  ;;  %4650 = vst.msk [vmem:[#allocation5 + $0x38] sm:$0xf] %vm4635_vm4, %v4616_v22  ;;  %v7759_v61 = vld [vmem:[%s8335_s10 + $0x70] sm:$0xff] }
 0x870   : > { %v4618_v14 = vpop.permute.xlu1 %4617 }
 0x871   : > { %4651 = vst.msk [vmem:[#allocation5 + $0x3c] sm:$0xf] %vm4635_vm4, %v4618_v14 }
 0x874   : > { %v7384_v17 = vld [vmem:[#allocation5 + $0x30] sm:$0xff]  }
 0x875   : > { %7062 = vmatprep.mubr.bf16.mxu0 %v7384_v17  ;;  %v7760_v17 = vld [vmem:[%s8335_s10 + $0x68] sm:$0xff] }
 0x878   : > { %v7385_v30 = vld [vmem:[#allocation5 + $0x38] sm:$0xff]  }
 0x879   : > { %7063 = vmatmul.mubr.bf16.gmra.mxu0 %v7385_v30 }
 0x8d2   : > { %v7052_v63 = vpop.f32.mrf.mxu0 }
 0x8d3   : > { %v4830_v57 = vadd.f32 %v7052_v63, %v9971_v47  ;;  %v7761_v63 = vld [vmem:[%s8335_s10 + $0x78] sm:$0xff]  ;;  %s8061_s10 = smov [#allocation18]  }
 0x8d4   : > { %v4821_v3 = vpop.f32.mrf.mxu0  ;;  %s7952_s23 = sshll.u32 %s8061_s10, 4  ;;  %s7953_s23 = int_to_ptr.vmem [resolvable:$false] %s7952_s23 }
 0x8d5   : > { %v4822_v56 = vadd.f32 %v9971_v47, %v4821_v3  ;;  %v9981_v13 = vadd.f32 %v7747_v23, %v4830_v57  ;;  %s7954_s28 = scalar_lea.vmem %s7953_s23, 4096  ;;  %p7955_p9 = scmp.lt.s32.totalorder %s10536_s18, %s7953_s23 }
 0x8d6   : > { %v7053_v6 = vpop.f32.mrf.mxu0  ;;  %p7956_p5 = scmp.lt.s32.totalorder %s7954_s28, %s7948_s0 }
 0x8d7   : > { %v9976_v12 = vadd.f32 %v7746_v18, %v4822_v56  ;;  %v4833_v46 = vadd.f32 %v7053_v6, %v9971_v47  ;;  %v7386_v56 = vld [vmem:[#allocation15 + $0x70] ss:$8 sps:$4 sm:$0xff]   ;;  %v7388_v6 = vld [vmem:[#allocation15 + $0x74] ss:$8 sps:$4 sm:$0xff]  }
 0x8d8   : > { %v4824_v19 = vpop.f32.mrf.mxu0  ;;  %5239 = vmatprep.subr.bf16.mxu1 %v7388_v6  ;;  %p7957_p10 = por %p7956_p5, %p7955_p9 }
 0x8d9   : > { %v4825_v32 = vadd.f32 %v9971_v47, %v4824_v19  ;;  %4900 = vadd.xlane.f32.xlu0 %v9976_v12  ;;  %v9990_v5 = vadd.f32 %v7749_v51, %v4833_v46  ;;  %5240 = vmatpush1.bf16.msra.mxu1 %v7386_v56 }
 0x8da   : > { %p7958_p1 = pnand %p7957_p10, %p7951_p8 }
 0x8db   : > { %v9985_v4 = vadd.f32 %v7748_v43, %v4825_v32 }
 0x8dd   : > { %4902 = vadd.xlane.f32.xlu1 %v9985_v4  ;;  %4904 = vadd.xlane.f32.xlu0 %v9981_v13 }
 0x8e1   : > { %4906 = vadd.xlane.f32.xlu0 %v9990_v5 }
 0x909   : > { %v7056_v44 = vpop.f32.mrf.mxu0 }
 0x90a   : > { %v4846_v38 = vadd.f32 %v7056_v44, %v9971_v47 }
 0x90b   : > { %v4837_v7 = vpop.f32.mrf.mxu0 }
 0x90c   : > { %v4838_v27 = vadd.f32 %v9971_v47, %v4837_v7  ;;  %v10001_v55 = vadd.f32 %v7751_v15, %v4846_v38  ;;  %v7397_v15 = vld [vmem:[#allocation15 + $0x44] ss:$8 sps:$4 sm:$0xff]  }
 0x90d   : > { %v7057_v50 = vpop.f32.mrf.mxu0 }
 0x90e   : > { %v9996_v42 = vadd.f32 %v7750_v48, %v4838_v27  ;;  %v4849_v58 = vadd.f32 %v7057_v50, %v9971_v47  ;;  %v7389_v48 = vld [vmem:[#allocation15 + $0x60] ss:$8 sps:$4 sm:$0xff]  }
 0x90f   : > { %v4840_v54 = vpop.f32.mrf.mxu0 }
 0x910   : > { %v4841_v53 = vadd.f32 %v9971_v47, %v4840_v54  ;;  %4908 = vadd.xlane.f32.xlu1 %v9996_v42  ;;  %v10010_v33 = vadd.f32 %v7753_v1, %v4849_v58  ;;  %v7394_v54 = vld [vmem:[#allocation15 + $0x54] ss:$8 sps:$4 sm:$0xff]   ;;  %v7395_v58 = vld [vmem:[#allocation15 + $0x40] ss:$8 sps:$4 sm:$0xff]   ;;  %v7403_v1 = vld [vmem:[#allocation15 + $0x24] ss:$8 sps:$4 sm:$0xff]  }
 0x912   : > { %v10005_v41 = vadd.f32 %v7752_v60, %v4841_v53  ;;  %v7392_v53 = vld [vmem:[#allocation15 + $0x50] ss:$8 sps:$4 sm:$0xff]  }
 0x913   : > { %v7398_v60 = vld [vmem:[#allocation15 + $0x30] ss:$8 sps:$4 sm:$0xff]  }
 0x914   : > { %4910 = vadd.xlane.f32.xlu0 %v10005_v41  ;;  %4912 = vadd.xlane.f32.xlu1 %v10001_v55 }
 0x918   : > { %4914 = vadd.xlane.f32.xlu0 %v10010_v33 }
 0x921   : > { %v7060_v45 = vpop.f32.mrf.mxu0 }
 0x922   : > { %v4862_v2 = vadd.f32 %v7060_v45, %v9971_v47  ;;  %v7401_v45 = vld [vmem:[#allocation15 + $0x20] ss:$8 sps:$4 sm:$0xff]  }
 0x923   : > { %v4853_v52 = vpop.f32.mrf.mxu0 }
 0x924   : > { %v4854_v37 = vadd.f32 %v9971_v47, %v4853_v52  ;;  %v10021_v25 = vadd.f32 %v7755_v26, %v4862_v2  ;;  %v7406_v52 = vld [vmem:[#allocation15 + $0x14] ss:$8 sps:$4 sm:$0xff]   ;;  %v7407_v2 = vld [vmem:[#allocation15] ss:$8 sps:$4 sm:$0xff]  }
 0x925   : > { %v7061_v36 = vpop.f32.mrf.mxu0 }
 0x926   : > { %v10016_v20 = vadd.f32 %v7754_v28, %v4854_v37  ;;  %v4865_v8 = vadd.f32 %v7061_v36, %v9971_v47  ;;  %v7404_v37 = vld [vmem:[#allocation15 + $0x10] ss:$8 sps:$4 sm:$0xff]   ;;  %v7409_v36 = vld [vmem:[#allocation15 + $0x4] ss:$8 sps:$4 sm:$0xff]  }
 0x927   : > { %v4856_v49 = vpop.f32.mrf.mxu0 }
 0x928   : > { %v4857_v16 = vadd.f32 %v9971_v47, %v4856_v49  ;;  %4916 = vadd.xlane.f32.xlu1 %v10016_v20  ;;  %v10030_v39 = vadd.f32 %v7757_v10, %v4865_v8 }
 0x92a   : > { %v10025_v59 = vadd.f32 %v7756_v11, %v4857_v16 }
 0x92c   : > { %4918 = vadd.xlane.f32.xlu0 %v10025_v59  ;;  %4920 = vadd.xlane.f32.xlu1 %v10021_v25 }
 0x930   : > { %4922 = vadd.xlane.f32.xlu0 %v10030_v39 }
 0x939   : > { %v7064_v62 = vpop.f32.mrf.mxu0 }
 0x93a   : > { %v4878_v0 = vadd.f32 %v7064_v62, %v9971_v47 }
 0x93b   : > { %v4869_v9 = vpop.f32.mrf.mxu0 }
 0x93c   : > { %v4870_v34 = vadd.f32 %v9971_v47, %v4869_v9  ;;  %v10041_v22 = vadd.f32 %v7759_v61, %v4878_v0 }
 0x93d   : > { %v7065_v40 = vpop.f32.mrf.mxu0 }
 0x93e   : > { %v10036_v21 = vadd.f32 %v7758_v24, %v4870_v34  ;;  %v4881_v14 = vadd.f32 %v7065_v40, %v9971_v47 }
 0x93f   : > { %v4872_v35 = vpop.f32.mrf.mxu0 }
 0x940   : > { %v4873_v29 = vadd.f32 %v9971_v47, %v4872_v35  ;;  %4924 = vadd.xlane.f32.xlu1 %v10036_v21  ;;  %v10050_v3 = vadd.f32 %v7761_v63, %v4881_v14 }
 0x942   : > { %v10045_v30 = vadd.f32 %v7760_v17, %v4873_v29 }
 0x944   : > { %4926 = vadd.xlane.f32.xlu0 %v10045_v30  ;;  %4928 = vadd.xlane.f32.xlu1 %v10041_v22 }
 0x948   : > { %4930 = vadd.xlane.f32.xlu0 %v10050_v3 }
 0x962   : > { %v4901_v57 = vpop.xlane.xlu0 %4900 }
 0x963   : > { %v4933_v18 = vmul.f32 0.0078125, %v4901_v57 }
 0x965   : > { %v10054_v47 = vsub.f32 %v9976_v12, %v4933_v18 }
 0x966   : > { %v4903_v19 = vpop.xlane.xlu1 %4902  ;;  %v4905_v32 = vpop.xlane.xlu0 %4904 }
 0x967   : > { %v4934_v23 = vmul.f32 0.0078125, %v4903_v19  ;;  %v4935_v46 = vmul.f32 0.0078125, %v4905_v32  ;;  %v4965_v43 = vmul.f32 %v10054_v47, %v10054_v47 }
 0x969   : > { %v10059_v51 = vsub.f32 %v9985_v4, %v4934_v23  ;;  %v10062_v44 = vsub.f32 %v9981_v13, %v4935_v46  ;;  %4981 = vadd.xlane.f32.xlu1 %v4965_v43  ;;  %v7391_v13 = vld [vmem:[#allocation15 + $0x64] ss:$8 sps:$4 sm:$0xff]  }
 0x96a   : > { %v4907_v7 = vpop.xlane.xlu0 %4906  ;;  %5241 = vmatprep.subr.bf16.mxu1 %v7391_v13 }
 0x96b   : > { %v4936_v27 = vmul.f32 0.0078125, %v4907_v7  ;;  %v4966_v12 = vmul.f32 %v10059_v51, %v10059_v51  ;;  %v4967_v50 = vmul.f32 %v10062_v44, %v10062_v44  ;;  %5242 = vmatpush1.bf16.msra.mxu1 %v7389_v48 }
 0x96c   : > { %5243 = vmatprep.subr.bf16.mxu1 %v7394_v54 }
 0x96d   : > { %v10069_v38 = vsub.f32 %v9990_v5, %v4936_v27  ;;  %4983 = vadd.xlane.f32.xlu0 %v4966_v12  ;;  %4985 = vadd.xlane.f32.xlu1 %v4967_v50  ;;  %v7400_v5 = vld [vmem:[#allocation15 + $0x34] ss:$8 sps:$4 sm:$0xff]  }
 0x96f   : > { %v4968_v4 = vmul.f32 %v10069_v38, %v10069_v38  ;;  %5244 = vmatpush1.bf16.msra.mxu1 %v7392_v53 }
 0x970   : > { %5245 = vmatprep.subr.bf16.mxu1 %v7397_v15 }
 0x971   : > { %4987 = vadd.xlane.f32.xlu0 %v4968_v4 }
 0x973   : > { %5246 = vmatpush1.bf16.msra.mxu1 %v7395_v58 }
 0x974   : > { %5247 = vmatprep.subr.bf16.mxu1 %v7400_v5 }
 0x977   : > { %5248 = vmatpush1.bf16.msra.mxu1 %v7398_v60 }
 0x978   : > { %5249 = vmatprep.subr.bf16.mxu1 %v7403_v1 }
 0x97b   : > { %5250 = vmatpush1.bf16.msra.mxu1 %v7401_v45 }
 0x97c   : > { %5251 = vmatprep.subr.bf16.mxu1 %v7406_v52 }
 0x97f   : > { %5252 = vmatpush1.bf16.msra.mxu1 %v7404_v37 }
 0x980   : > { %5253 = vmatprep.subr.bf16.mxu1 %v7409_v36 }
 0x983   : > { %5254 = vmatpush1.bf16.msra.mxu1 %v7407_v2 }
 0x999   : > { %v4909_v28 = vpop.xlane.xlu1 %4908 }
 0x99a   : > { %v4937_v49 = vmul.f32 0.0078125, %v4909_v28 }
 0x99c   : > { %v10074_v16 = vsub.f32 %v9996_v42, %v4937_v49  ;;  %v7410_v49 = vld [vmem:[#allocation17 + $0x78] sm:$0xff]  }
 0x99d   : > { %v4913_v26 = vpop.xlane.xlu1 %4912  ;;  %v4911_v8 = vpop.xlane.xlu0 %4910  ;;  %6682 = vmatprep.subr.bf16.mxu0 %v7410_v49  ;;  %7066 = vmatprep.subr.bf16.mxu1 %v7410_v49 }
 0x99e   : > { %v4939_v11 = vmul.f32 0.0078125, %v4913_v26  ;;  %v4938_v10 = vmul.f32 0.0078125, %v4911_v8  ;;  %v4969_v62 = vmul.f32 %v10074_v16, %v10074_v16  ;;  %v7411_v26 = vld [vmem:[#allocation17 + $0x38] sm:$0xff]   ;;  %v7412_v8 = vld [vmem:[#allocation17 + $0x70] sm:$0xff]  }
 0x99f   : > { %6683 = vmatpush3.bf16.msra.mxu0 %v7411_v26 }
 0x9a0   : > { %v10079_v9 = vsub.f32 %v10001_v55, %v4939_v11  ;;  %v10082_v34 = vsub.f32 %v10005_v41, %v4938_v10  ;;  %4989 = vadd.xlane.f32.xlu1 %v4969_v62  ;;  %v7413_v11 = vld [vmem:[#allocation17 + $0x30] sm:$0xff]   ;;  %6684 = vmatprep.subr.bf16.mxu0 %v7412_v8  ;;  %v7414_v62 = vld [vmem:[#allocation17 + $0x68] sm:$0xff]  }
 0x9a1   : > { %v4915_v40 = vpop.xlane.xlu0 %4914 }
 0x9a2   : > { %v4940_v0 = vmul.f32 0.0078125, %v4915_v40  ;;  %v4971_v42 = vmul.f32 %v10079_v9, %v10079_v9  ;;  %v4970_v24 = vmul.f32 %v10082_v34, %v10082_v34 }
 0x9a3   : > { %6685 = vmatpush3.bf16.msra.mxu0 %v7413_v11 }
 0x9a4   : > { %v10089_v35 = vsub.f32 %v10010_v33, %v4940_v0  ;;  %4993 = vadd.xlane.f32.xlu1 %v4971_v42  ;;  %4991 = vadd.xlane.f32.xlu0 %v4970_v24  ;;  %v10137_v0 = vld [vmem:[%s10594_s8] ss:$0 sm:$0xff]  ;;  %v7415_v42 = vld [vmem:[#allocation17 + $0x28] sm:$0xff]  }
 0x9a5   : > { %6686 = vmatprep.subr.bf16.mxu0 %v7414_v62  ;;  %v7416_v24 = vld [vmem:[#allocation17 + $0x60] sm:$0xff]  }
 0x9a6   : > { %v4972_v55 = vmul.f32 %v10089_v35, %v10089_v35 }
 0x9a7   : > { %6687 = vmatpush3.bf16.msra.mxu0 %v7415_v42 }
 0x9a8   : > { %4995 = vadd.xlane.f32.xlu0 %v4972_v55  ;;  %6688 = vmatprep.subr.bf16.mxu0 %v7416_v24 }
 0x9b1   : > { %v4917_v41 = vpop.xlane.xlu1 %4916 }
 0x9b2   : > { %v4941_v29 = vmul.f32 0.0078125, %v4917_v41 }
 0x9b4   : > { %v10094_v61 = vsub.f32 %v10016_v20, %v4941_v29 }
 0x9b5   : > { %v4921_v14 = vpop.xlane.xlu1 %4920  ;;  %v4919_v17 = vpop.xlane.xlu0 %4918 }
 0x9b6   : > { %v4943_v63 = vmul.f32 0.0078125, %v4921_v14  ;;  %v4942_v56 = vmul.f32 0.0078125, %v4919_v17  ;;  %v4973_v6 = vmul.f32 %v10094_v61, %v10094_v61  ;;  %v10144_v17 = vld [vmem:[%s10595_s9] ss:$0 sm:$0xff] }
 0x9b8   : > { %v10099_v33 = vsub.f32 %v10021_v25, %v4943_v63  ;;  %v10102_v57 = vsub.f32 %v10025_v59, %v4942_v56  ;;  %4997 = vadd.xlane.f32.xlu1 %v4973_v6  ;;  %v7418_v6 = vld [vmem:[#allocation17 + $0x58] sm:$0xff]  }
 0x9b9   : > { %v4923_v18 = vpop.xlane.xlu0 %4922 }
 0x9ba   : > { %v4944_v19 = vmul.f32 0.0078125, %v4923_v18  ;;  %v4975_v20 = vmul.f32 %v10099_v33, %v10099_v33  ;;  %v4974_v32 = vmul.f32 %v10102_v57, %v10102_v57 }
 0x9bc   : > { %v10109_v23 = vsub.f32 %v10030_v39, %v4944_v19  ;;  %5001 = vadd.xlane.f32.xlu1 %v4975_v20  ;;  %4999 = vadd.xlane.f32.xlu0 %v4974_v32  ;;  %v7419_v32 = vld [vmem:[#allocation17 + $0x18] sm:$0xff]  }
 0x9be   : > { %v4976_v25 = vmul.f32 %v10109_v23, %v10109_v23 }
 0x9c0   : > { %5003 = vadd.xlane.f32.xlu0 %v4976_v25 }
 0x9c9   : > { %v4925_v59 = vpop.xlane.xlu1 %4924 }
 0x9ca   : > { %v4945_v46 = vmul.f32 0.0078125, %v4925_v59 }
 0x9cc   : > { %v10114_v43 = vsub.f32 %v10036_v21, %v4945_v46 }
 0x9cd   : > { %v4929_v7 = vpop.xlane.xlu1 %4928  ;;  %v4927_v27 = vpop.xlane.xlu0 %4926 }
 0x9ce   : > { %v4947_v12 = vmul.f32 0.0078125, %v4929_v7  ;;  %v4946_v50 = vmul.f32 0.0078125, %v4927_v27  ;;  %v4977_v4 = vmul.f32 %v10114_v43, %v10114_v43 }
 0x9d0   : > { %v10119_v39 = vsub.f32 %v10041_v22, %v4947_v12  ;;  %v10122_v13 = vsub.f32 %v10045_v30, %v4946_v50  ;;  %5005 = vadd.xlane.f32.xlu1 %v4977_v4 }
 0x9d1   : > { %v4931_v48 = vpop.xlane.xlu0 %4930 }
 0x9d2   : > { %v4948_v54 = vmul.f32 0.0078125, %v4931_v48  ;;  %v4979_v21 = vmul.f32 %v10119_v39, %v10119_v39  ;;  %v4978_v53 = vmul.f32 %v10122_v13, %v10122_v13 }
 0x9d4   : > { %v10129_v15 = vsub.f32 %v10050_v3, %v4948_v54  ;;  %5009 = vadd.xlane.f32.xlu1 %v4979_v21  ;;  %5007 = vadd.xlane.f32.xlu0 %v4978_v53 }
 0x9d6   : > { %v4980_v22 = vmul.f32 %v10129_v15, %v10129_v15 }
 0x9d8   : > { %5011 = vadd.xlane.f32.xlu0 %v4980_v22 }
 0x9f2   : > { %v4982_v30 = vpop.xlane.xlu1 %4981 }
 0x9f3   : > { %v5013_v58 = vmul.f32 0.0078125, %v4982_v30 }
 0x9f5   : > { %v5029_v5 = vadd.f32 1e-06, %v5013_v58 }
 0x9f6   : > { %v4986_v60 = vpop.xlane.xlu1 %4985  ;;  %v4984_v1 = vpop.xlane.xlu0 %4983 }
 0x9f7   : > { %7682 = vrsqrt.f32 %v5029_v5  ;;  %v5015_v45 = vmul.f32 0.0078125, %v4986_v60  ;;  %v5014_v52 = vmul.f32 0.0078125, %v4984_v1 }
 0x9f9   : > { %v5030_v37 = vadd.f32 1e-06, %v5014_v52  ;;  %v5031_v36 = vadd.f32 1e-06, %v5015_v45 }
 0x9fa   : > { %v4988_v2 = vpop.xlane.xlu0 %4987 }
 0x9fb   : > { %v5016_v28 = vmul.f32 0.0078125, %v4988_v2  ;;  %7684 = vrsqrt.f32 %v5030_v37 }
 0x9fc   : > { %7686 = vrsqrt.f32 %v5031_v36 }
 0x9fd   : > { %v5032_v3 = vadd.f32 1e-06, %v5016_v28 }
 0x9ff   : > { %7688 = vrsqrt.f32 %v5032_v3 }
 0xa04   : > { %v7683_v10 = vpop.eup %7682 }
 0xa05   : > { %v5061_v40 = vmul.f32 %v7683_v10, %v10054_v47  ;;  %v7417_v47 = vld [vmem:[#allocation17 + $0x20] sm:$0xff]  }
 0xa06   : > { %6689 = vmatpush3.bf16.msra.mxu0 %v7417_v47 }
 0xa07   : > { %v5084_v29 = vmul.f32 %v10137_v0, %v5061_v40  ;;  %6690 = vmatprep.subr.bf16.mxu0 %v7418_v6 }
 0xa08   : > { %v7685_v55 = vpop.eup %7684 }
 0xa09   : > { %v5062_v41 = vmul.f32 %v7685_v55, %v10059_v51  ;;  %v7687_v14 = vpop.eup %7686  ;;  %v10149_v19 = vadd.f32 %v10144_v17, %v5084_v29 }
 0xa0a   : > { %v5063_v20 = vmul.f32 %v7687_v14, %v10062_v44  ;;  %6691 = vmatpush3.bf16.msra.mxu0 %v7419_v32 }
 0xa0b   : > { %v5085_v56 = vmul.f32 %v10137_v0, %v5062_v41 }
 0xa0c   : > { %v7689_v63 = vpop.eup %7688  ;;  %v5086_v46 = vmul.f32 %v10137_v0, %v5063_v20  ;;  %v7420_v20 = vld [vmem:[#allocation17 + $0x50] sm:$0xff]  }
 0xa0d   : > { %v5064_v18 = vmul.f32 %v7689_v63, %v10069_v38  ;;  %v10152_v51 = vadd.f32 %v10144_v17, %v5085_v56  ;;  %6692 = vmatprep.subr.bf16.mxu0 %v7420_v20 }
 0xa0e   : > { %v10164_v44 = vadd.f32 %v10144_v17, %v5086_v46 }
 0xa0f   : > { %v5123_v25 = vpack.c.bf16 %v10152_v51, %v10149_v19  ;;  %v5087_v59 = vmul.f32 %v10137_v0, %v5064_v18 }
 0xa11   : > { %5272 = vmatmul.mubr.bf16.vlgmr.msra.gmra.mxu1 %v5123_v25  ;;  %v10161_v38 = vadd.f32 %v10144_v17, %v5087_v59  ;;  %v7422_v59 = vld [vmem:[#allocation17 + $0x48] sm:$0xff]  }
 0xa12   : > { %5281 = vmatprep.mubr.bf16.mxu1 %v10825_v31  ;;  %7074 = vmatpush3.bf16.msra.mxu1 %v7411_v26 }
 0xa13   : > { %7067 = vmatprep.subr.bf16.mxu1 %v7412_v8  ;;  %v5124_v7 = vpack.c.bf16 %v10161_v38, %v10164_v44 }
 0xa16   : > { %7075 = vmatpush3.bf16.msra.mxu1 %v7413_v11 }
 0xa17   : > { %7068 = vmatprep.subr.bf16.mxu1 %v7414_v62 }
 0xa19   : > { %5282 = vmatmul.mubr.bf16.gmra.mxu1 %v5124_v7  ;;  %v7423_v7 = vld [vmem:[#allocation17 + $0x8] sm:$0xff]  }
 0xa1a   : > { %5291 = vmatprep.mubr.bf16.mxu1 %v10825_v31  ;;  %7076 = vmatpush3.bf16.msra.mxu1 %v7415_v42 }
 0xa1b   : > { %7069 = vmatprep.subr.bf16.mxu1 %v7416_v24 }
 0xa1e   : > { %7077 = vmatpush3.bf16.msra.mxu1 %v7417_v47 }
 0xa1f   : > { %7070 = vmatprep.subr.bf16.mxu1 %v7418_v6 }
 0xa22   : > { %7078 = vmatpush3.bf16.msra.mxu1 %v7419_v32  ;;  %v7421_v32 = vld [vmem:[#allocation17 + $0x10] sm:$0xff]  }
 0xa23   : > { %7071 = vmatprep.subr.bf16.mxu1 %v7420_v20  ;;  %6693 = vmatpush3.bf16.msra.mxu0 %v7421_v32 }
 0xa24   : > { %6694 = vmatprep.subr.bf16.mxu0 %v7422_v59 }
 0xa26   : > { %7079 = vmatpush3.bf16.msra.mxu1 %v7421_v32 }
 0xa27   : > { %7072 = vmatprep.subr.bf16.mxu1 %v7422_v59  ;;  %6695 = vmatpush3.bf16.msra.mxu0 %v7423_v7 }
 0xa29   : > { %v4990_v27 = vpop.xlane.xlu1 %4989 }
 0xa2a   : > { %v5017_v12 = vmul.f32 0.0078125, %v4990_v27  ;;  %7080 = vmatpush3.bf16.msra.mxu1 %v7423_v7 }
 0xa2c   : > { %v5033_v50 = vadd.f32 1e-06, %v5017_v12 }
 0xa2d   : > { %v4994_v4 = vpop.xlane.xlu1 %4993  ;;  %v4992_v48 = vpop.xlane.xlu0 %4991 }
 0xa2e   : > { %7690 = vrsqrt.f32 %v5033_v50  ;;  %v5019_v54 = vmul.f32 0.0078125, %v4994_v4  ;;  %v5018_v21 = vmul.f32 0.0078125, %v4992_v48 }
 0xa30   : > { %v5034_v53 = vadd.f32 1e-06, %v5018_v21  ;;  %v5035_v22 = vadd.f32 1e-06, %v5019_v54  ;;  %v7424_v21 = vld [vmem:[#allocation17 + $0x40] sm:$0xff]  }
 0xa31   : > { %v4996_v30 = vpop.xlane.xlu0 %4995  ;;  %6696 = vmatprep.subr.bf16.mxu0 %v7424_v21  ;;  %7073 = vmatprep.subr.bf16.mxu1 %v7424_v21 }
 0xa32   : > { %v5020_v58 = vmul.f32 0.0078125, %v4996_v30  ;;  %7692 = vrsqrt.f32 %v5034_v53  ;;  %v7425_v30 = vld [vmem:[#allocation17] sm:$0xff]  }
 0xa33   : > { %7694 = vrsqrt.f32 %v5035_v22  ;;  %6697 = vmatpush3.bf16.msra.mxu0 %v7425_v30  ;;  %7081 = vmatpush3.bf16.msra.mxu1 %v7425_v30 }
 0xa34   : > { %v5036_v5 = vadd.f32 1e-06, %v5020_v58 }
 0xa36   : > { %7696 = vrsqrt.f32 %v5036_v5 }
 0xa3b   : > { %v7691_v60 = vpop.eup %7690 }
 0xa3c   : > { %v5065_v1 = vmul.f32 %v7691_v60, %v10074_v16 }
 0xa3e   : > { %v5088_v36 = vmul.f32 %v10137_v0, %v5065_v1 }
 0xa3f   : > { %v7693_v45 = vpop.eup %7692 }
 0xa40   : > { %v5066_v37 = vmul.f32 %v7693_v45, %v10082_v34  ;;  %v7695_v2 = vpop.eup %7694  ;;  %v10175_v62 = vadd.f32 %v10144_v17, %v5088_v36 }
 0xa41   : > { %v4998_v52 = vpop.xlane.xlu1 %4997  ;;  %v5067_v34 = vmul.f32 %v7695_v2, %v10079_v9 }
 0xa42   : > { %v5021_v28 = vmul.f32 0.0078125, %v4998_v52  ;;  %v5089_v49 = vmul.f32 %v10137_v0, %v5066_v37 }
 0xa43   : > { %v7697_v3 = vpop.eup %7696  ;;  %v5090_v14 = vmul.f32 %v10137_v0, %v5067_v34 }
 0xa44   : > { %v5037_v26 = vadd.f32 1e-06, %v5021_v28  ;;  %v5068_v8 = vmul.f32 %v7697_v3, %v10089_v35  ;;  %v10178_v16 = vadd.f32 %v10144_v17, %v5089_v49 }
 0xa45   : > { %v5002_v11 = vpop.xlane.xlu1 %5001  ;;  %v5000_v10 = vpop.xlane.xlu0 %4999  ;;  %v10190_v56 = vadd.f32 %v10144_v17, %v5090_v14 }
 0xa46   : > { %7698 = vrsqrt.f32 %v5037_v26  ;;  %v5023_v40 = vmul.f32 0.0078125, %v5002_v11  ;;  %v5022_v42 = vmul.f32 0.0078125, %v5000_v10  ;;  %v5125_v24 = vpack.c.bf16 %v10178_v16, %v10175_v62 }
 0xa47   : > { %v5091_v55 = vmul.f32 %v10137_v0, %v5068_v8 }
 0xa48   : > { %v5038_v41 = vadd.f32 1e-06, %v5022_v42  ;;  %v5039_v35 = vadd.f32 1e-06, %v5023_v40  ;;  %5292 = vmatmul.mubr.bf16.gmra.mxu1 %v5125_v24 }
 0xa49   : > { %v5004_v29 = vpop.xlane.xlu0 %5003  ;;  %5301 = vmatprep.mubr.bf16.mxu1 %v10825_v31  ;;  %v10187_v9 = vadd.f32 %v10144_v17, %v5091_v55 }
 0xa4a   : > { %v5024_v47 = vmul.f32 0.0078125, %v5004_v29  ;;  %7700 = vrsqrt.f32 %v5038_v41 }
 0xa4b   : > { %7702 = vrsqrt.f32 %v5039_v35  ;;  %v5126_v6 = vpack.c.bf16 %v10187_v9, %v10190_v56 }
 0xa4c   : > { %v5040_v63 = vadd.f32 1e-06, %v5024_v47 }
 0xa4e   : > { %7704 = vrsqrt.f32 %v5040_v63 }
 0xa50   : > { %5302 = vmatmul.mubr.bf16.gmra.mxu1 %v5126_v6 }
 0xa51   : > { %5311 = vmatprep.mubr.bf16.mxu1 %v10825_v31 }
 0xa53   : > { %v7699_v18 = vpop.eup %7698 }
 0xa54   : > { %v5069_v25 = vmul.f32 %v7699_v18, %v10094_v61 }
 0xa56   : > { %v5092_v50 = vmul.f32 %v10137_v0, %v5069_v25  ;;  %v10826_v25 = vld [vmem:[#allocation32_spill] sm:$0xff] }
 0xa57   : > { %v7701_v46 = vpop.eup %7700  ;;  %v10827_v59 = vsub.s32 1, %v10826_v25 }
 0xa58   : > { %v5070_v12 = vmul.f32 %v7701_v46, %v10102_v57  ;;  %v7703_v4 = vpop.eup %7702  ;;  %v10201_v57 = vadd.f32 %v10144_v17, %v5092_v50 }
 0xa59   : > { %v5006_v27 = vpop.xlane.xlu1 %5005  ;;  %v5071_v1 = vmul.f32 %v7703_v4, %v10099_v33 }
 0xa5a   : > { %v5025_v48 = vmul.f32 0.0078125, %v5006_v27  ;;  %v5093_v61 = vmul.f32 %v10137_v0, %v5070_v12 }
 0xa5b   : > { %v7705_v54 = vpop.eup %7704  ;;  %v5094_v3 = vmul.f32 %v10137_v0, %v5071_v1 }
 0xa5c   : > { %v5041_v53 = vadd.f32 1e-06, %v5025_v48  ;;  %v5072_v22 = vmul.f32 %v7705_v54, %v10109_v23  ;;  %v10204_v60 = vadd.f32 %v10144_v17, %v5093_v61 }
 0xa5d   : > { %v5010_v58 = vpop.xlane.xlu1 %5009  ;;  %v5008_v5 = vpop.xlane.xlu0 %5007  ;;  %v10216_v8 = vadd.f32 %v10144_v17, %v5094_v3 }
 0xa5e   : > { %7706 = vrsqrt.f32 %v5041_v53  ;;  %v5027_v45 = vmul.f32 0.0078125, %v5010_v58  ;;  %v5026_v52 = vmul.f32 0.0078125, %v5008_v5  ;;  %v5127_v23 = vpack.c.bf16 %v10204_v60, %v10201_v57 }
 0xa5f   : > { %v5095_v37 = vmul.f32 %v10137_v0, %v5072_v22 }
 0xa60   : > { %v5042_v36 = vadd.f32 1e-06, %v5026_v52  ;;  %v5043_v2 = vadd.f32 1e-06, %v5027_v45  ;;  %5312 = vmatmul.mubr.bf16.gmra.mxu1 %v5127_v23 }
 0xa61   : > { %v5012_v28 = vpop.xlane.xlu0 %5011  ;;  %5321 = vmatprep.mubr.bf16.mxu1 %v10825_v31  ;;  %v10213_v33 = vadd.f32 %v10144_v17, %v5095_v37 }
 0xa62   : > { %v5028_v49 = vmul.f32 0.0078125, %v5012_v28  ;;  %7708 = vrsqrt.f32 %v5042_v36 }
 0xa63   : > { %7710 = vrsqrt.f32 %v5043_v2  ;;  %v5128_v11 = vpack.c.bf16 %v10213_v33, %v10216_v8 }
 0xa64   : > { %v5044_v26 = vadd.f32 1e-06, %v5028_v49 }
 0xa66   : > { %7712 = vrsqrt.f32 %v5044_v26 }
 0xa68   : > { %5322 = vmatmul.mubr.bf16.gmra.mxu1 %v5128_v11 }
 0xa69   : > { %5331 = vmatprep.mubr.bf16.mxu1 %v10825_v31 }
 0xa6b   : > { %v7707_v10 = vpop.eup %7706 }
 0xa6c   : > { %v5073_v34 = vmul.f32 %v7707_v10, %v10114_v43 }
 0xa6e   : > { %v5096_v24 = vmul.f32 %v10137_v0, %v5073_v34 }
 0xa6f   : > { %v7709_v40 = vpop.eup %7708 }
 0xa70   : > { %v5074_v42 = vmul.f32 %v7709_v40, %v10122_v13  ;;  %v7711_v55 = vpop.eup %7710  ;;  %v10227_v14 = vadd.f32 %v10144_v17, %v5096_v24 }
 0xa71   : > { %v5075_v63 = vmul.f32 %v7711_v55, %v10119_v39  ;;  %v5147_v39 = vld [vmem:[%s10597_s11] sm:$0x3] }
 0xa72   : > { %v5097_v35 = vmul.f32 %v10137_v0, %v5074_v42 }
 0xa73   : > { %v7713_v41 = vpop.eup %7712  ;;  %v5098_v6 = vmul.f32 %v10137_v0, %v5075_v63 }
 0xa74   : > { %v5076_v29 = vmul.f32 %v7713_v41, %v10129_v15  ;;  %v10230_v47 = vadd.f32 %v10144_v17, %v5097_v35 }
 0xa75   : > { %v10242_v18 = vadd.f32 %v10144_v17, %v5098_v6 }
 0xa76   : > { %v5129_v43 = vpack.c.bf16 %v10230_v47, %v10227_v14  ;;  %v5099_v13 = vmul.f32 %v10137_v0, %v5076_v29  ;;  %v10251_v0 = vrot.slane %v5147_v39, %v10827_v59 }
 0xa78   : > { %5332 = vmatmul.mubr.bf16.gmra.mxu1 %v5129_v43  ;;  %v10239_v15 = vadd.f32 %v10144_v17, %v5099_v13 }
 0xa79   : > { %5341 = vmatprep.mubr.bf16.mxu1 %v10825_v31  ;;  %v10828_v31 = vsub.s32 0, %v10826_v25 }
 0xa7a   : > { %v5130_v20 = vpack.c.bf16 %v10239_v15, %v10242_v18 }
 0xa7b   : > { %v10255_v46 = vrot.slane %v5147_v39, %v10828_v31 }
 0xa80   : > { %5342 = vmatmul.mubr.bf16.gmra.mxu1 %v5130_v20 }
 0xad1   : > { %v5273_v32 = vpop.f32.mrf.mxu1 }
 0xad2   : > { %v5274_v50 = vadd.f32 %v5273_v32, %v10255_v46 }
 0xad3   : > { %v5275_v7 = vpop.f32.mrf.mxu1 }
 0xad4   : > { %v5276_v27 = vadd.f32 %v5275_v7, %v10251_v0  ;;  %v5352_v22 = vmax.f32 %v5274_v50, 0.0 }
 0xad5   : > { %v5277_v17 = vpop.f32.mrf.mxu1 }
 0xad6   : > { %v5278_v12 = vadd.f32 %v5277_v17, %v10255_v46  ;;  %v5353_v21 = vmax.f32 %v5276_v27, 0.0 }
 0xad7   : > { %v5279_v4 = vpop.f32.mrf.mxu1 }
 0xad8   : > { %v5280_v48 = vadd.f32 %v5279_v4, %v10251_v0  ;;  %v5354_v54 = vmax.f32 %v5278_v12, 0.0 }
 0xad9   : > { %v5283_v61 = vpop.f32.mrf.mxu1 }
 0xada   : > { %v5355_v53 = vmax.f32 %v5280_v48, 0.0  ;;  %v5384_v5 = vpack.c.bf16 %v5354_v54, %v5352_v22  ;;  %v5284_v23 = vadd.f32 %v5283_v61, %v10255_v46 }
 0xadb   : > { %v5285_v30 = vpop.f32.mrf.mxu1 }
 0xadc   : > { %v5385_v58 = vpack.c.bf16 %v5355_v53, %v5353_v21  ;;  %v5286_v45 = vadd.f32 %v5285_v30, %v10251_v0  ;;  %v5356_v49 = vmax.f32 %v5284_v23, 0.0 }
 0xadd   : > { %v5287_v1 = vpop.f32.mrf.mxu1 }
 0xade   : > { %v5288_v52 = vadd.f32 %v5287_v1, %v10255_v46  ;;  %5567 = vmatprep.mubr.bf16.mxu0 %v5385_v58  ;;  %v5357_v28 = vmax.f32 %v5286_v45, 0.0 }
 0xadf   : > { %v5289_v37 = vpop.f32.mrf.mxu1  ;;  %5568 = vmatmul.mubr.bf16.vlgmr.msra.gmra.mxu0 %v5384_v5 }
 0xae0   : > { %v5290_v36 = vadd.f32 %v5289_v37, %v10251_v0  ;;  %v5358_v2 = vmax.f32 %v5288_v52, 0.0 }
 0xae2   : > { %v5359_v3 = vmax.f32 %v5290_v36, 0.0  ;;  %v5386_v11 = vpack.c.bf16 %v5358_v2, %v5356_v49 }
 0xae4   : > { %v5387_v26 = vpack.c.bf16 %v5359_v3, %v5357_v28 }
 0xae6   : > { %5575 = vmatprep.mubr.bf16.mxu0 %v5387_v26 }
 0xae7   : > { %5576 = vmatmul.mubr.bf16.gmra.mxu0 %v5386_v11 }
 0xb08   : > { %v5293_v10 = vpop.f32.mrf.mxu1 }
 0xb09   : > { %v5294_v55 = vadd.f32 %v5293_v10, %v10255_v46 }
 0xb0a   : > { %v5295_v34 = vpop.f32.mrf.mxu1 }
 0xb0b   : > { %v5296_v42 = vadd.f32 %v5295_v34, %v10251_v0  ;;  %v5360_v6 = vmax.f32 %v5294_v55, 0.0 }
 0xb0c   : > { %v5297_v40 = vpop.f32.mrf.mxu1 }
 0xb0d   : > { %v5298_v24 = vadd.f32 %v5297_v40, %v10255_v46  ;;  %v5361_v43 = vmax.f32 %v5296_v42, 0.0 }
 0xb0e   : > { %v5299_v41 = vpop.f32.mrf.mxu1 }
 0xb0f   : > { %v5300_v35 = vadd.f32 %v5299_v41, %v10251_v0  ;;  %v5362_v29 = vmax.f32 %v5298_v24, 0.0 }
 0xb10   : > { %v5303_v63 = vpop.f32.mrf.mxu1 }
 0xb11   : > { %v5363_v13 = vmax.f32 %v5300_v35, 0.0  ;;  %v5388_v32 = vpack.c.bf16 %v5362_v29, %v5360_v6  ;;  %v5304_v7 = vadd.f32 %v5303_v63, %v10255_v46 }
 0xb12   : > { %v5305_v20 = vpop.f32.mrf.mxu1 }
 0xb13   : > { %v5389_v39 = vpack.c.bf16 %v5363_v13, %v5361_v43  ;;  %v5306_v59 = vadd.f32 %v5305_v20, %v10251_v0  ;;  %v5364_v48 = vmax.f32 %v5304_v7, 0.0 }
 0xb14   : > { %v5307_v25 = vpop.f32.mrf.mxu1 }
 0xb15   : > { %v5308_v31 = vadd.f32 %v5307_v25, %v10255_v46  ;;  %5583 = vmatprep.mubr.bf16.mxu0 %v5389_v39  ;;  %v5365_v50 = vmax.f32 %v5306_v59, 0.0 }
 0xb16   : > { %v5309_v17 = vpop.f32.mrf.mxu1  ;;  %5584 = vmatmul.mubr.bf16.gmra.mxu0 %v5388_v32 }
 0xb17   : > { %v5310_v27 = vadd.f32 %v5309_v17, %v10251_v0  ;;  %v5366_v12 = vmax.f32 %v5308_v31, 0.0 }
 0xb19   : > { %v5367_v4 = vmax.f32 %v5310_v27, 0.0  ;;  %v5390_v61 = vpack.c.bf16 %v5366_v12, %v5364_v48 }
 0xb1b   : > { %v5391_v54 = vpack.c.bf16 %v5367_v4, %v5365_v50 }
 0xb1d   : > { %5591 = vmatprep.mubr.bf16.mxu0 %v5391_v54 }
 0xb1e   : > { %5592 = vmatmul.mubr.bf16.gmra.mxu0 %v5390_v61 }
 0xb20   : > { %v5313_v21 = vpop.f32.mrf.mxu1 }
 0xb21   : > { %v5314_v5 = vadd.f32 %v5313_v21, %v10255_v46 }
 0xb22   : > { %v5315_v53 = vpop.f32.mrf.mxu1 }
 0xb23   : > { %v5316_v30 = vadd.f32 %v5315_v53, %v10251_v0  ;;  %v5368_v2 = vmax.f32 %v5314_v5, 0.0 }
 0xb24   : > { %v5317_v22 = vpop.f32.mrf.mxu1 }
 0xb25   : > { %v5318_v58 = vadd.f32 %v5317_v22, %v10255_v46  ;;  %v5369_v37 = vmax.f32 %v5316_v30, 0.0 }
 0xb26   : > { %v5319_v1 = vpop.f32.mrf.mxu1 }
 0xb27   : > { %v5320_v45 = vadd.f32 %v5319_v1, %v10251_v0  ;;  %v5370_v52 = vmax.f32 %v5318_v58, 0.0 }
 0xb28   : > { %v5323_v23 = vpop.f32.mrf.mxu1 }
 0xb29   : > { %v5371_v36 = vmax.f32 %v5320_v45, 0.0  ;;  %v5392_v49 = vpack.c.bf16 %v5370_v52, %v5368_v2  ;;  %v5324_v34 = vadd.f32 %v5323_v23, %v10255_v46 }
 0xb2a   : > { %v5325_v28 = vpop.f32.mrf.mxu1 }
 0xb2b   : > { %v5393_v3 = vpack.c.bf16 %v5371_v36, %v5369_v37  ;;  %v5326_v11 = vadd.f32 %v5325_v28, %v10251_v0  ;;  %v5372_v35 = vmax.f32 %v5324_v34, 0.0  ;;  %v10292_v36 = vld [vmem:[%s10599_s13] ss:$0 sm:$0xff] }
 0xb2c   : > { %v5327_v26 = vpop.f32.mrf.mxu1 }
 0xb2d   : > { %v5328_v10 = vadd.f32 %v5327_v26, %v10255_v46  ;;  %5599 = vmatprep.mubr.bf16.mxu0 %v5393_v3  ;;  %v5373_v55 = vmax.f32 %v5326_v11, 0.0 }
 0xb2e   : > { %v5329_v40 = vpop.f32.mrf.mxu1  ;;  %5600 = vmatmul.mubr.bf16.gmra.mxu0 %v5392_v49 }
 0xb2f   : > { %v5330_v42 = vadd.f32 %v5329_v40, %v10251_v0  ;;  %v5374_v24 = vmax.f32 %v5328_v10, 0.0 }
 0xb31   : > { %v5375_v41 = vmax.f32 %v5330_v42, 0.0  ;;  %v5394_v63 = vpack.c.bf16 %v5374_v24, %v5372_v35 }
 0xb33   : > { %v5395_v29 = vpack.c.bf16 %v5375_v41, %v5373_v55 }
 0xb35   : > { %5607 = vmatprep.mubr.bf16.mxu0 %v5395_v29 }
 0xb36   : > { %5608 = vmatmul.mubr.bf16.gmra.mxu0 %v5394_v63 }
 0xb38   : > { %v5333_v43 = vpop.f32.mrf.mxu1 }
 0xb39   : > { %v5334_v32 = vadd.f32 %v5333_v43, %v10255_v46 }
 0xb3a   : > { %v5335_v13 = vpop.f32.mrf.mxu1 }
 0xb3b   : > { %v5336_v20 = vadd.f32 %v5335_v13, %v10251_v0  ;;  %v5376_v12 = vmax.f32 %v5334_v32, 0.0 }
 0xb3c   : > { %v5337_v6 = vpop.f32.mrf.mxu1 }
 0xb3d   : > { %v5338_v39 = vadd.f32 %v5337_v6, %v10255_v46  ;;  %v5377_v17 = vmax.f32 %v5336_v20, 0.0 }
 0xb3e   : > { %v5339_v25 = vpop.f32.mrf.mxu1 }
 0xb3f   : > { %v5340_v59 = vadd.f32 %v5339_v25, %v10251_v0  ;;  %v5378_v31 = vmax.f32 %v5338_v39, 0.0 }
 0xb40   : > { %v5343_v7 = vpop.f32.mrf.mxu1 }
 0xb41   : > { %v5379_v27 = vmax.f32 %v5340_v59, 0.0  ;;  %v5396_v48 = vpack.c.bf16 %v5378_v31, %v5376_v12  ;;  %v5344_v53 = vadd.f32 %v5343_v7, %v10255_v46 }
 0xb42   : > { %v5345_v50 = vpop.f32.mrf.mxu1 }
 0xb43   : > { %v5397_v4 = vpack.c.bf16 %v5379_v27, %v5377_v17  ;;  %v5346_v61 = vadd.f32 %v5345_v50, %v10251_v0  ;;  %v5380_v45 = vmax.f32 %v5344_v53, 0.0 }
 0xb44   : > { %v5347_v54 = vpop.f32.mrf.mxu1 }
 0xb45   : > { %v5348_v21 = vadd.f32 %v5347_v54, %v10255_v46  ;;  %5615 = vmatprep.mubr.bf16.mxu1 %v5397_v4  ;;  %v5381_v5 = vmax.f32 %v5346_v61, 0.0 }
 0xb46   : > { %v5349_v22 = vpop.f32.mrf.mxu1  ;;  %5616 = vmatmul.mubr.bf16.vlgmr.msra.gmra.mxu1 %v5396_v48 }
 0xb47   : > { %v5350_v30 = vadd.f32 %v5349_v22, %v10251_v0  ;;  %v5382_v58 = vmax.f32 %v5348_v21, 0.0 }
 0xb49   : > { %v5383_v1 = vmax.f32 %v5350_v30, 0.0  ;;  %v5398_v23 = vpack.c.bf16 %v5382_v58, %v5380_v45 }
 0xb4b   : > { %v5399_v52 = vpack.c.bf16 %v5383_v1, %v5381_v5 }
 0xb4d   : > { %5623 = vmatprep.mubr.bf16.mxu1 %v5399_v52 }
 0xb4e   : > { %5624 = vmatmul.mubr.bf16.gmra.mxu1 %v5398_v23 }
 0xb9f   : > { %v6698_v37 = vpop.f32.mrf.mxu0 }
 0xba1   : > { %v6699_v2 = vpop.f32.mrf.mxu0 }
 0xba2   : > { %v6700_v46 = vadd.f32 %v6699_v2, %v6698_v37 }
 0xba3   : > { %v6701_v28 = vpop.f32.mrf.mxu0 }
 0xba4   : > { %v5570_v3 = vadd.f32 %v6700_v46, %v10292_v36 }
 0xba5   : > { %v6702_v0 = vpop.f32.mrf.mxu0 }
 0xba6   : > { %v6703_v49 = vadd.f32 %v6702_v0, %v6701_v28  ;;  %v10296_v26 = vadd.f32 %v5570_v3, %v10149_v19 }
 0xba7   : > { %v6704_v11 = vpop.f32.mrf.mxu0 }
 0xba8   : > { %v5573_v10 = vadd.f32 %v6703_v49, %v10292_v36  ;;  %5648 = vadd.xlane.f32.xlu1 %v10296_v26 }
 0xba9   : > { %v6705_v34 = vpop.f32.mrf.mxu0 }
 0xbaa   : > { %v6706_v40 = vadd.f32 %v6705_v34, %v6704_v11  ;;  %v10301_v42 = vadd.f32 %v5573_v10, %v10152_v51 }
 0xbab   : > { %v6707_v24 = vpop.f32.mrf.mxu0 }
 0xbac   : > { %v5578_v55 = vadd.f32 %v6706_v40, %v10292_v36  ;;  %5650 = vadd.xlane.f32.xlu0 %v10301_v42 }
 0xbad   : > { %v6708_v41 = vpop.f32.mrf.mxu0 }
 0xbae   : > { %v6709_v35 = vadd.f32 %v6708_v41, %v6707_v24  ;;  %v10306_v19 = vadd.f32 %v5578_v55, %v10164_v44 }
 0xbb0   : > { %v5581_v29 = vadd.f32 %v6709_v35, %v10292_v36  ;;  %5652 = vadd.xlane.f32.xlu1 %v10306_v19 }
 0xbb2   : > { %v10311_v63 = vadd.f32 %v5581_v29, %v10161_v38 }
 0xbb4   : > { %5654 = vadd.xlane.f32.xlu0 %v10311_v63 }
 0xbd6   : > { %v6710_v51 = vpop.f32.mrf.mxu0 }
 0xbd8   : > { %v6711_v43 = vpop.f32.mrf.mxu0 }
 0xbd9   : > { %v6712_v13 = vadd.f32 %v6711_v43, %v6710_v51 }
 0xbda   : > { %v6713_v6 = vpop.f32.mrf.mxu0 }
 0xbdb   : > { %v5586_v20 = vadd.f32 %v6712_v13, %v10292_v36 }
 0xbdc   : > { %v6714_v39 = vpop.f32.mrf.mxu0 }
 0xbdd   : > { %v6715_v32 = vadd.f32 %v6714_v39, %v6713_v6  ;;  %v10316_v44 = vadd.f32 %v5586_v20, %v10175_v62 }
 0xbde   : > { %v6716_v25 = vpop.f32.mrf.mxu0 }
 0xbdf   : > { %v5589_v59 = vadd.f32 %v6715_v32, %v10292_v36  ;;  %5656 = vadd.xlane.f32.xlu1 %v10316_v44 }
 0xbe0   : > { %v6717_v38 = vpop.f32.mrf.mxu0 }
 0xbe1   : > { %v6718_v31 = vadd.f32 %v6717_v38, %v6716_v25  ;;  %v10321_v7 = vadd.f32 %v5589_v59, %v10178_v16 }
 0xbe2   : > { %v6719_v17 = vpop.f32.mrf.mxu0 }
 0xbe3   : > { %v5594_v27 = vadd.f32 %v6718_v31, %v10292_v36  ;;  %5658 = vadd.xlane.f32.xlu0 %v10321_v7 }
 0xbe4   : > { %v6720_v12 = vpop.f32.mrf.mxu0 }
 0xbe5   : > { %v6721_v50 = vadd.f32 %v6720_v12, %v6719_v17  ;;  %v10326_v62 = vadd.f32 %v5594_v27, %v10190_v56 }
 0xbe7   : > { %v5597_v4 = vadd.f32 %v6721_v50, %v10292_v36  ;;  %5660 = vadd.xlane.f32.xlu1 %v10326_v62 }
 0xbe9   : > { %v10331_v48 = vadd.f32 %v5597_v4, %v10187_v9 }
 0xbeb   : > { %5662 = vadd.xlane.f32.xlu0 %v10331_v48 }
 0xbee   : > { %v6722_v16 = vpop.f32.mrf.mxu0 }
 0xbf0   : > { %v6723_v54 = vpop.f32.mrf.mxu0 }
 0xbf1   : > { %v6724_v61 = vadd.f32 %v6723_v54, %v6722_v16 }
 0xbf2   : > { %v6725_v21 = vpop.f32.mrf.mxu0 }
 0xbf3   : > { %v5602_v53 = vadd.f32 %v6724_v61, %v10292_v36 }
 0xbf4   : > { %v6726_v22 = vpop.f32.mrf.mxu0 }
 0xbf5   : > { %v6727_v30 = vadd.f32 %v6726_v22, %v6725_v21  ;;  %v10336_v56 = vadd.f32 %v5602_v53, %v10201_v57 }
 0xbf6   : > { %v6728_v58 = vpop.f32.mrf.mxu0 }
 0xbf7   : > { %v5605_v5 = vadd.f32 %v6727_v30, %v10292_v36  ;;  %5664 = vadd.xlane.f32.xlu1 %v10336_v56 }
 0xbf8   : > { %v6729_v9 = vpop.f32.mrf.mxu0 }
 0xbf9   : > { %v6730_v1 = vadd.f32 %v6729_v9, %v6728_v58  ;;  %v10341_v45 = vadd.f32 %v5605_v5, %v10204_v60 }
 0xbfa   : > { %v6731_v52 = vpop.f32.mrf.mxu0 }
 0xbfb   : > { %v5610_v23 = vadd.f32 %v6730_v1, %v10292_v36  ;;  %5666 = vadd.xlane.f32.xlu0 %v10341_v45 }
 0xbfc   : > { %v6732_v37 = vpop.f32.mrf.mxu0 }
 0xbfd   : > { %v6733_v2 = vadd.f32 %v6732_v37, %v6731_v52  ;;  %v10346_v57 = vadd.f32 %v5610_v23, %v10216_v8 }
 0xbff   : > { %v5613_v46 = vadd.f32 %v6733_v2, %v10292_v36  ;;  %5668 = vadd.xlane.f32.xlu1 %v10346_v57 }
 0xc01   : > { %v10351_v28 = vadd.f32 %v5613_v46, %v10213_v33 }
 0xc03   : > { %5670 = vadd.xlane.f32.xlu0 %v10351_v28 }
 0xc06   : > { %v6734_v60 = vpop.f32.mrf.mxu1 }
 0xc08   : > { %v6735_v3 = vpop.f32.mrf.mxu1 }
 0xc09   : > { %v6736_v0 = vadd.f32 %v6735_v3, %v6734_v60 }
 0xc0a   : > { %v6737_v49 = vpop.f32.mrf.mxu1 }
 0xc0b   : > { %v5618_v11 = vadd.f32 %v6736_v0, %v10292_v36 }
 0xc0c   : > { %v6738_v10 = vpop.f32.mrf.mxu1 }
 0xc0d   : > { %v6739_v34 = vadd.f32 %v6738_v10, %v6737_v49  ;;  %v10356_v8 = vadd.f32 %v5618_v11, %v10227_v14 }
 0xc0e   : > { %v6740_v40 = vpop.f32.mrf.mxu1 }
 0xc0f   : > { %v5621_v24 = vadd.f32 %v6739_v34, %v10292_v36  ;;  %5672 = vadd.xlane.f32.xlu1 %v10356_v8 }
 0xc10   : > { %v6741_v33 = vpop.f32.mrf.mxu1 }
 0xc11   : > { %v6742_v55 = vadd.f32 %v6741_v33, %v6740_v40  ;;  %v10361_v41 = vadd.f32 %v5621_v24, %v10230_v47 }
 0xc12   : > { %v6743_v35 = vpop.f32.mrf.mxu1 }
 0xc13   : > { %v5626_v29 = vadd.f32 %v6742_v55, %v10292_v36  ;;  %5674 = vadd.xlane.f32.xlu0 %v10361_v41 }
 0xc14   : > { %v6744_v51 = vpop.f32.mrf.mxu1 }
 0xc15   : > { %v6745_v43 = vadd.f32 %v6744_v51, %v6743_v35  ;;  %v10366_v14 = vadd.f32 %v5626_v29, %v10242_v18 }
 0xc17   : > { %v5629_v13 = vadd.f32 %v6745_v43, %v10292_v36  ;;  %5676 = vadd.xlane.f32.xlu1 %v10366_v14 }
 0xc19   : > { %v10371_v6 = vadd.f32 %v5629_v13, %v10239_v15 }
 0xc1b   : > { %5678 = vadd.xlane.f32.xlu0 %v10371_v6 }
 0xc31   : > { %v5649_v47 = vpop.xlane.xlu1 %5648 }
 0xc32   : > { %v5680_v20 = vmul.f32 0.0078125, %v5649_v47 }
 0xc34   : > { %v10375_v39 = vsub.f32 %v10296_v26, %v5680_v20 }
 0xc35   : > { %v5651_v32 = vpop.xlane.xlu0 %5650 }
 0xc36   : > { %v5681_v25 = vmul.f32 0.0078125, %v5651_v32  ;;  %v5712_v18 = vmul.f32 %v10375_v39, %v10375_v39 }
 0xc38   : > { %v10380_v59 = vsub.f32 %v10301_v42, %v5681_v25  ;;  %5728 = vadd.xlane.f32.xlu1 %v5712_v18 }
 0xc39   : > { %v5653_v36 = vpop.xlane.xlu1 %5652 }
 0xc3a   : > { %v5682_v38 = vmul.f32 0.0078125, %v5653_v36  ;;  %v5713_v15 = vmul.f32 %v10380_v59, %v10380_v59 }
 0xc3c   : > { %v10385_v31 = vsub.f32 %v10306_v19, %v5682_v38  ;;  %5730 = vadd.xlane.f32.xlu0 %v5713_v15 }
 0xc3d   : > { %v5655_v26 = vpop.xlane.xlu0 %5654 }
 0xc3e   : > { %v5683_v17 = vmul.f32 0.0078125, %v5655_v26  ;;  %v5714_v27 = vmul.f32 %v10385_v31, %v10385_v31 }
 0xc40   : > { %v10390_v12 = vsub.f32 %v10311_v63, %v5683_v17  ;;  %5732 = vadd.xlane.f32.xlu1 %v5714_v27 }
 0xc42   : > { %v5715_v42 = vmul.f32 %v10390_v12, %v10390_v12 }
 0xc44   : > { %5734 = vadd.xlane.f32.xlu0 %v5715_v42 }
 0xc68   : > { %v5657_v50 = vpop.xlane.xlu1 %5656 }
 0xc69   : > { %v5684_v4 = vmul.f32 0.0078125, %v5657_v50 }
 0xc6b   : > { %v10395_v16 = vsub.f32 %v10316_v44, %v5684_v4  ;;  %v10457_v4 = vld [vmem:[%s10829_s24] ss:$0 sm:$0xff] }
 0xc6c   : > { %v5659_v19 = vpop.xlane.xlu0 %5658 }
 0xc6d   : > { %v5685_v54 = vmul.f32 0.0078125, %v5659_v19  ;;  %v5716_v61 = vmul.f32 %v10395_v16, %v10395_v16 }
 0xc6f   : > { %v10400_v21 = vsub.f32 %v10321_v7, %v5685_v54  ;;  %5736 = vadd.xlane.f32.xlu1 %v5716_v61  ;;  %v10463_v54 = vld [vmem:[%s10830_s15] ss:$0 sm:$0xff] }
 0xc70   : > { %v5661_v63 = vpop.xlane.xlu1 %5660 }
 0xc71   : > { %v5686_v53 = vmul.f32 0.0078125, %v5661_v63  ;;  %v5717_v22 = vmul.f32 %v10400_v21, %v10400_v21 }
 0xc73   : > { %v10405_v30 = vsub.f32 %v10326_v62, %v5686_v53  ;;  %5738 = vadd.xlane.f32.xlu0 %v5717_v22 }
 0xc74   : > { %v5663_v44 = vpop.xlane.xlu0 %5662 }
 0xc75   : > { %v5687_v58 = vmul.f32 0.0078125, %v5663_v44  ;;  %v5718_v5 = vmul.f32 %v10405_v30, %v10405_v30 }
 0xc77   : > { %v10410_v9 = vsub.f32 %v10331_v48, %v5687_v58  ;;  %5740 = vadd.xlane.f32.xlu1 %v5718_v5 }
 0xc79   : > { %v5719_v7 = vmul.f32 %v10410_v9, %v10410_v9 }
 0xc7b   : > { %5742 = vadd.xlane.f32.xlu0 %v5719_v7 }
 0xc80   : > { %v5665_v1 = vpop.xlane.xlu1 %5664 }
 0xc81   : > { %v5688_v52 = vmul.f32 0.0078125, %v5665_v1 }
 0xc83   : > { %v10415_v23 = vsub.f32 %v10336_v56, %v5688_v52 }
 0xc84   : > { %v5667_v62 = vpop.xlane.xlu0 %5666 }
 0xc85   : > { %v5689_v37 = vmul.f32 0.0078125, %v5667_v62  ;;  %v5720_v2 = vmul.f32 %v10415_v23, %v10415_v23 }
 0xc87   : > { %v10420_v46 = vsub.f32 %v10341_v45, %v5689_v37  ;;  %5744 = vadd.xlane.f32.xlu1 %v5720_v2 }
 0xc88   : > { %v5669_v48 = vpop.xlane.xlu1 %5668 }
 0xc89   : > { %v5690_v60 = vmul.f32 0.0078125, %v5669_v48  ;;  %v5721_v3 = vmul.f32 %v10420_v46, %v10420_v46 }
 0xc8b   : > { %v10425_v0 = vsub.f32 %v10346_v57, %v5690_v60  ;;  %5746 = vadd.xlane.f32.xlu0 %v5721_v3 }
 0xc8c   : > { %v5671_v56 = vpop.xlane.xlu0 %5670 }
 0xc8d   : > { %v5691_v49 = vmul.f32 0.0078125, %v5671_v56  ;;  %v5722_v11 = vmul.f32 %v10425_v0, %v10425_v0 }
 0xc8f   : > { %v10430_v10 = vsub.f32 %v10351_v28, %v5691_v49  ;;  %5748 = vadd.xlane.f32.xlu1 %v5722_v11 }
 0xc91   : > { %v5723_v45 = vmul.f32 %v10430_v10, %v10430_v10 }
 0xc93   : > { %5750 = vadd.xlane.f32.xlu0 %v5723_v45 }
 0xc98   : > { %v5673_v34 = vpop.xlane.xlu1 %5672 }
 0xc99   : > { %v5692_v40 = vmul.f32 0.0078125, %v5673_v34 }
 0xc9b   : > { %v10435_v24 = vsub.f32 %v10356_v8, %v5692_v40 }
 0xc9c   : > { %v5675_v57 = vpop.xlane.xlu0 %5674 }
 0xc9d   : > { %v5693_v33 = vmul.f32 0.0078125, %v5675_v57  ;;  %v5724_v55 = vmul.f32 %v10435_v24, %v10435_v24 }
 0xc9f   : > { %v10440_v35 = vsub.f32 %v10361_v41, %v5693_v33  ;;  %5752 = vadd.xlane.f32.xlu1 %v5724_v55 }
 0xca0   : > { %v5677_v28 = vpop.xlane.xlu1 %5676 }
 0xca1   : > { %v5694_v29 = vmul.f32 0.0078125, %v5677_v28  ;;  %v5725_v51 = vmul.f32 %v10440_v35, %v10440_v35 }
 0xca3   : > { %v10445_v43 = vsub.f32 %v10366_v14, %v5694_v29  ;;  %5754 = vadd.xlane.f32.xlu0 %v5725_v51 }
 0xca4   : > { %v5679_v8 = vpop.xlane.xlu0 %5678 }
 0xca5   : > { %v5695_v13 = vmul.f32 0.0078125, %v5679_v8  ;;  %v5726_v47 = vmul.f32 %v10445_v43, %v10445_v43 }
 0xca7   : > { %v10450_v20 = vsub.f32 %v10371_v6, %v5695_v13  ;;  %5756 = vadd.xlane.f32.xlu1 %v5726_v47 }
 0xca9   : > { %v5727_v41 = vmul.f32 %v10450_v20, %v10450_v20 }
 0xcab   : > { %5758 = vadd.xlane.f32.xlu0 %v5727_v41 }
 0xcc1   : > { %v5729_v32 = vpop.xlane.xlu1 %5728 }
 0xcc2   : > { %v5760_v25 = vmul.f32 0.0078125, %v5729_v32 }
 0xcc4   : > { %v5776_v18 = vadd.f32 1e-06, %v5760_v25 }
 0xcc5   : > { %v5731_v36 = vpop.xlane.xlu0 %5730 }
 0xcc6   : > { %7714 = vrsqrt.f32 %v5776_v18  ;;  %v5761_v14 = vmul.f32 0.0078125, %v5731_v36 }
 0xcc8   : > { %v5777_v38 = vadd.f32 1e-06, %v5761_v14 }
 0xcc9   : > { %v5733_v15 = vpop.xlane.xlu1 %5732 }
 0xcca   : > { %7716 = vrsqrt.f32 %v5777_v38  ;;  %v5762_v26 = vmul.f32 0.0078125, %v5733_v15 }
 0xccc   : > { %v5778_v17 = vadd.f32 1e-06, %v5762_v26 }
 0xccd   : > { %v5735_v27 = vpop.xlane.xlu0 %5734 }
 0xcce   : > { %7718 = vrsqrt.f32 %v5778_v17  ;;  %v5763_v6 = vmul.f32 0.0078125, %v5735_v27 }
 0xcd0   : > { %v5779_v42 = vadd.f32 1e-06, %v5763_v6 }
 0xcd2   : > { %7720 = vrsqrt.f32 %v5779_v42 }
 0xcd3   : > { %v7715_v50 = vpop.eup %7714 }
 0xcd4   : > { %v5808_v19 = vmul.f32 %v7715_v50, %v10375_v39 }
 0xcd6   : > { %v5831_v61 = vmul.f32 %v10457_v4, %v5808_v19 }
 0xcd7   : > { %v7717_v63 = vpop.eup %7716 }
 0xcd8   : > { %v5854_v53 = vadd.f32 %v10463_v54, %v5831_v61  ;;  %v5809_v22 = vmul.f32 %v7717_v63, %v10380_v59 }
 0xcda   : > { %5870 = vst [vmem:[%s10469_s25] sm:$0xff] %v5854_v53  ;;  %v5832_v39 = vmul.f32 %v10457_v4, %v5809_v22 }
 0xcdb   : > { %v7719_v44 = vpop.eup %7718 }
 0xcdc   : > { %v5855_v58 = vadd.f32 %v10463_v54, %v5832_v39  ;;  %v5810_v5 = vmul.f32 %v7719_v44, %v10385_v31 }
 0xcde   : > { %5871 = vst [vmem:[%s10469_s25 + $0x8] sm:$0xff] %v5855_v58  ;;  %v5833_v7 = vmul.f32 %v10457_v4, %v5810_v5 }
 0xcdf   : > { %v7721_v1 = vpop.eup %7720 }
 0xce0   : > { %v5856_v59 = vadd.f32 %v10463_v54, %v5833_v7  ;;  %v5811_v52 = vmul.f32 %v7721_v1, %v10390_v12 }
 0xce2   : > { %5872 = vst [vmem:[%s10469_s25 + $0x10] sm:$0xff] %v5856_v59  ;;  %v5834_v62 = vmul.f32 %v10457_v4, %v5811_v52 }
 0xce4   : > { %v5857_v37 = vadd.f32 %v10463_v54, %v5834_v62 }
 0xce6   : > { %5873 = vst [vmem:[%s10469_s25 + $0x18] sm:$0xff] %v5857_v37 }
 0xcf8   : > { %v5737_v2 = vpop.xlane.xlu1 %5736 }
 0xcf9   : > { %v5764_v48 = vmul.f32 0.0078125, %v5737_v2 }
 0xcfb   : > { %v5780_v60 = vadd.f32 1e-06, %v5764_v48 }
 0xcfc   : > { %v5739_v3 = vpop.xlane.xlu0 %5738 }
 0xcfd   : > { %7722 = vrsqrt.f32 %v5780_v60  ;;  %v5765_v31 = vmul.f32 0.0078125, %v5739_v3 }
 0xcff   : > { %v5781_v56 = vadd.f32 1e-06, %v5765_v31 }
 0xd00   : > { %v5741_v49 = vpop.xlane.xlu1 %5740 }
 0xd01   : > { %7724 = vrsqrt.f32 %v5781_v56  ;;  %v5766_v11 = vmul.f32 0.0078125, %v5741_v49 }
 0xd03   : > { %v5782_v45 = vadd.f32 1e-06, %v5766_v11 }
 0xd04   : > { %v5743_v34 = vpop.xlane.xlu0 %5742 }
 0xd05   : > { %7726 = vrsqrt.f32 %v5782_v45  ;;  %v5767_v12 = vmul.f32 0.0078125, %v5743_v34 }
 0xd07   : > { %v5783_v40 = vadd.f32 1e-06, %v5767_v12 }
 0xd09   : > { %7728 = vrsqrt.f32 %v5783_v40 }
 0xd0a   : > { %v7723_v57 = vpop.eup %7722 }
 0xd0b   : > { %v5812_v33 = vmul.f32 %v7723_v57, %v10395_v16 }
 0xd0d   : > { %v5835_v55 = vmul.f32 %v10457_v4, %v5812_v33 }
 0xd0e   : > { %v7725_v28 = vpop.eup %7724 }
 0xd0f   : > { %v5858_v29 = vadd.f32 %v10463_v54, %v5835_v55  ;;  %v5813_v51 = vmul.f32 %v7725_v28, %v10400_v21 }
 0xd10   : > { %v5745_v8 = vpop.xlane.xlu1 %5744 }
 0xd11   : > { %5874 = vst [vmem:[%s10469_s25 + $0x20] sm:$0xff] %v5858_v29  ;;  %v5836_v13 = vmul.f32 %v10457_v4, %v5813_v51  ;;  %v5768_v47 = vmul.f32 0.0078125, %v5745_v8 }
 0xd12   : > { %v7727_v41 = vpop.eup %7726 }
 0xd13   : > { %v5859_v32 = vadd.f32 %v10463_v54, %v5836_v13  ;;  %v5814_v25 = vmul.f32 %v7727_v41, %v10405_v30  ;;  %v5784_v18 = vadd.f32 1e-06, %v5768_v47 }
 0xd14   : > { %v5747_v16 = vpop.xlane.xlu0 %5746 }
 0xd15   : > { %5875 = vst [vmem:[%s10469_s25 + $0x28] sm:$0xff] %v5859_v32  ;;  %v5837_v36 = vmul.f32 %v10457_v4, %v5814_v25  ;;  %7730 = vrsqrt.f32 %v5784_v18  ;;  %v5769_v14 = vmul.f32 0.0078125, %v5747_v16 }
 0xd16   : > { %v7729_v21 = vpop.eup %7728 }
 0xd17   : > { %v5860_v38 = vadd.f32 %v10463_v54, %v5837_v36  ;;  %v5815_v15 = vmul.f32 %v7729_v21, %v10410_v9  ;;  %v5785_v26 = vadd.f32 1e-06, %v5769_v14 }
 0xd18   : > { %v5749_v17 = vpop.xlane.xlu1 %5748 }
 0xd19   : > { %5876 = vst [vmem:[%s10469_s25 + $0x30] sm:$0xff] %v5860_v38  ;;  %v5838_v27 = vmul.f32 %v10457_v4, %v5815_v15  ;;  %7732 = vrsqrt.f32 %v5785_v26  ;;  %v5770_v30 = vmul.f32 0.0078125, %v5749_v17 }
 0xd1b   : > { %v5861_v6 = vadd.f32 %v10463_v54, %v5838_v27  ;;  %v5786_v42 = vadd.f32 1e-06, %v5770_v30 }
 0xd1c   : > { %v5751_v50 = vpop.xlane.xlu0 %5750 }
 0xd1d   : > { %5877 = vst [vmem:[%s10469_s25 + $0x38] sm:$0xff] %v5861_v6  ;;  %7734 = vrsqrt.f32 %v5786_v42  ;;  %v5771_v19 = vmul.f32 0.0078125, %v5751_v50 }
 0xd1f   : > { %v5787_v61 = vadd.f32 1e-06, %v5771_v19 }
 0xd21   : > { %7736 = vrsqrt.f32 %v5787_v61 }
 0xd22   : > { %v7731_v63 = vpop.eup %7730 }
 0xd23   : > { %v5816_v9 = vmul.f32 %v7731_v63, %v10415_v23 }
 0xd25   : > { %v5839_v53 = vmul.f32 %v10457_v4, %v5816_v9 }
 0xd26   : > { %v7733_v22 = vpop.eup %7732 }
 0xd27   : > { %v5862_v39 = vadd.f32 %v10463_v54, %v5839_v53  ;;  %v5817_v44 = vmul.f32 %v7733_v22, %v10420_v46 }
 0xd28   : > { %v5753_v58 = vpop.xlane.xlu1 %5752 }
 0xd29   : > { %5878 = vst [vmem:[%s10469_s25 + $0x40] sm:$0xff] %v5862_v39  ;;  %v5840_v5 = vmul.f32 %v10457_v4, %v5817_v44  ;;  %v5772_v7 = vmul.f32 0.0078125, %v5753_v58 }
 0xd2a   : > { %v7735_v1 = vpop.eup %7734 }
 0xd2b   : > { %v5863_v59 = vadd.f32 %v10463_v54, %v5840_v5  ;;  %v5818_v52 = vmul.f32 %v7735_v1, %v10425_v0  ;;  %v5788_v62 = vadd.f32 1e-06, %v5772_v7 }
 0xd2c   : > { %v5755_v23 = vpop.xlane.xlu0 %5754 }
 0xd2d   : > { %5879 = vst [vmem:[%s10469_s25 + $0x48] sm:$0xff] %v5863_v59  ;;  %v5841_v37 = vmul.f32 %v10457_v4, %v5818_v52  ;;  %7738 = vrsqrt.f32 %v5788_v62  ;;  %v5773_v2 = vmul.f32 0.0078125, %v5755_v23 }
 0xd2e   : > { %v7737_v46 = vpop.eup %7736 }
 0xd2f   : > { %v5864_v48 = vadd.f32 %v10463_v54, %v5841_v37  ;;  %v5819_v60 = vmul.f32 %v7737_v46, %v10430_v10  ;;  %v5789_v3 = vadd.f32 1e-06, %v5773_v2 }
 0xd30   : > { %v5757_v31 = vpop.xlane.xlu1 %5756 }
 0xd31   : > { %5880 = vst [vmem:[%s10469_s25 + $0x50] sm:$0xff] %v5864_v48  ;;  %v5842_v56 = vmul.f32 %v10457_v4, %v5819_v60  ;;  %7740 = vrsqrt.f32 %v5789_v3  ;;  %v5774_v0 = vmul.f32 0.0078125, %v5757_v31 }
 0xd33   : > { %v5865_v49 = vadd.f32 %v10463_v54, %v5842_v56  ;;  %v5790_v11 = vadd.f32 1e-06, %v5774_v0 }
 0xd34   : > { %v5759_v45 = vpop.xlane.xlu0 %5758 }
 0xd35   : > { %5881 = vst [vmem:[%s10469_s25 + $0x58] sm:$0xff] %v5865_v49  ;;  %7742 = vrsqrt.f32 %v5790_v11  ;;  %v5775_v34 = vmul.f32 0.0078125, %v5759_v45 }
 0xd37   : > { %v5791_v12 = vadd.f32 1e-06, %v5775_v34 }
 0xd39   : > { %7744 = vrsqrt.f32 %v5791_v12 }
 0xd3a   : > { %v7739_v40 = vpop.eup %7738 }
 0xd3b   : > { %v5820_v10 = vmul.f32 %v7739_v40, %v10435_v24 }
 0xd3d   : > { %v5843_v57 = vmul.f32 %v10457_v4, %v5820_v10 }
 0xd3e   : > { %v7741_v33 = vpop.eup %7740 }
 0xd3f   : > { %v5866_v55 = vadd.f32 %v10463_v54, %v5843_v57  ;;  %v5821_v28 = vmul.f32 %v7741_v33, %v10440_v35 }
 0xd41   : > { %5882 = vst [vmem:[%s10469_s25 + $0x60] sm:$0xff] %v5866_v55  ;;  %v5844_v29 = vmul.f32 %v10457_v4, %v5821_v28 }
 0xd42   : > { %v7743_v51 = vpop.eup %7742 }
 0xd43   : > { %v5867_v8 = vadd.f32 %v10463_v54, %v5844_v29  ;;  %v5822_v13 = vmul.f32 %v7743_v51, %v10445_v43 }
 0xd45   : > { %5883 = vst [vmem:[%s10469_s25 + $0x68] sm:$0xff] %v5867_v8  ;;  %v5845_v24 = vmul.f32 %v10457_v4, %v5822_v13 }
 0xd46   : > { %v7745_v47 = vpop.eup %7744 }
 0xd47   : > { %v5868_v41 = vadd.f32 %v10463_v54, %v5845_v24  ;;  %v5823_v32 = vmul.f32 %v7745_v47, %v10450_v20 }
 0xd49   : > { %5884 = vst [vmem:[%s10469_s25 + $0x70] sm:$0xff] %v5868_v41  ;;  %v5846_v35 = vmul.f32 %v10457_v4, %v5823_v32 }
 0xd4b   : > { %v5869_v43 = vadd.f32 %v10463_v54, %v5846_v35 }
 0xd4d   : > { %5885 = vst [vmem:[%s10469_s25 + $0x78] sm:$0xff] %v5869_v43 }
 0xd4e   : > { %7961 = shalt.err (!%p7958_p1)
}
 0xd4f   : > { %s7962_s19 = scalar_lea.hbm %s10534_s17, 2048  ;;  %s7966_s16 = scalar_lea.hbm %s10832_s30, 4096 }
 0xd50   : > { %p7963_p3 = scmp.ne.s32.totalorder %s10534_s17, %s7962_s19  ;;  %p7967_p12 = scmp.lt.s32.totalorder %s10534_s17, %s10832_s30 }
 0xd51   : > { %p7968_p4 = scmp.lt.s32.totalorder %s7966_s16, %s7962_s19 }
 0xd52   : > { %p7964_p7 = pnand %p7963_p3, %p8277_p11 }
 0xd53   : > { %p7969_p6 = por %p7968_p4, %p7967_p12 }
 0xd54   : > { %p7965_p0 = pneg %p7964_p7 }
 0xd56   : > { %p7970_p2 = pnand %p7969_p6, %p7965_p0 }
 0xd58   : > { %7973 = shalt.err (!%p7970_p2)
}
 0xd59   : > { %s8062_s25 = smov 128   ;;  %s8063_s21 = smov 8  }
 0xd5a   : > { %7138 = dma.vmem_to_hbm [thread:$0]  (%p8277_p11), %s10536_s18, 2048, %s10534_s17, %s5887_s6, %s8062_s25, %s8062_s25, %s8063_s21  }
 0xd5b PF: > { %s10833_s20 = sld [smem:[#allocation25_spill]]  ;;  %p10835_p8 = scmp.ge.s32.totalorder %s8044_s26, 2 }
 0xd5d   : > { %p7164_p9 = pnand %p10835_p8, %p8285_p13 }
 0xd5f   : > { %p7165_p5 = pneg %p7164_p9 }
 0xd61   : > { %s5917_s2 = sand.u32 1, %s10833_s20  }
 0xd62   : > { %s5918_s0 = scalar_lea.sflag [#allocation8], %s5917_s2 }
 0xd63   : > { %8019 = dma.done.wait (%p7165_p5), %s5918_s0, 2048  }
 0xd64   : > { %8021 = vsyncadd (%p7165_p5), %s5918_s0, 4294965248  ;;  %s37_s26 = sadd.s32 1, %s8044_s26   ;;  %s10836_s10 = sld [smem:[#allocation26_spill]] }
 0xd65   : > { %p34_p10 = scmp.ge.s32.totalorder %s37_s26, 4   ;;  %s10837_s23 = sld [smem:[#allocation30_spill]] }
 0xd66   : > { %s10838_s24 = sld [smem:[#allocation28_spill]]  ;;  %s10840_s21 = smov %s8028_s22 }
 0xd67   : > { %s10839_s25 = sld [smem:[#allocation29_spill]]  ;;  %36 = sbr.rel (!%p34_p10) target bundleno = 20 (0x14), region = 171 }
 0xd6a   : > { %s10841_s22 = smov %s10836_s10 }
 0xd6c   :  { %5923 = vsyncpa [#allocation7], 1 }
 0xd6d   :  { %5925 = vsyncpa [#allocation7 + $0x1], 1 }
 0xd6e   :  { %5926 = vsyncpa [#allocation10], 1 }
 0xd6f   :  { %5928 = vsyncpa [#allocation10 + $0x1], 1 }
 0xd70   :  { %5929 = vsyncpa [#allocation13], 1 }
 0xd71   :  { %5930 = vsyncpa [#allocation16], 1 }
 0xd72   :  { %5931 = vsyncpa [#allocation8], 1 }
 0xd73   :  { %5933 = vsyncpa [#allocation8 + $0x1], 1 }

</bundles_post_ra>
